<compile_context>
chip_gen: v6e
topology: v6e:2x2x1
jax: 0.10.0
libtpu: 0.0.40
codegen_flags: <defaults>
</compile_context>

<pallas_src>
import jax
import jax.numpy as jnp
from jax import lax
from jax.experimental import pallas as pl
from jax.experimental.pallas import tpu as pltpu
from functools import partial

EPS = 1e-5


def _pick_hw_tile(hw):
    """Largest multiple of 128 (<=1024) dividing hw, else the full hw (single tile)."""
    best = None
    t = 128
    while t <= min(hw, 1024):
        if hw % t == 0:
            best = t
        t += 128
    return best if best is not None else hw


def _make_kernel(inv_count):
    def kernel(x_ref, w_ref, g_ref, beta_ref, o_ref,
               sum_ref, sq_ref, scale_ref, shift_ref):
        phase = pl.program_id(0)
        n = pl.program_id(1)
        t = pl.program_id(2)
        is_first = jnp.logical_and(n == 0, t == 0)
        is_last = jnp.logical_and(n == pl.num_programs(1) - 1,
                                  t == pl.num_programs(2) - 1)

        @pl.when(jnp.logical_and(phase == 0, is_first))
        def _():
            sum_ref[...] = jnp.zeros_like(sum_ref)
            sq_ref[...] = jnp.zeros_like(sq_ref)

        # ReLU (VPU) + 1x1 conv as a single matmul (MXU): (Cout,Cin) @ (Cin,hw) -> (Cout,hw)
        x = jnp.maximum(x_ref[0], 0.0)
        y = jnp.dot(w_ref[...], x, preferred_element_type=jnp.float32)

        @pl.when(phase == 0)
        def _():
            # One-pass stats: per-channel sum and sum of squares (lane reductions on XLU).
            sum_ref[...] += jnp.sum(y, axis=1, keepdims=True)
            sq_ref[...] += jnp.sum(y * y, axis=1, keepdims=True)

        @pl.when(jnp.logical_and(phase == 0, is_last))
        def _():
            mean = sum_ref[...] * inv_count
            var = sq_ref[...] * inv_count - mean * mean      # biased variance
            inv_std = lax.rsqrt(var + EPS)
            a = g_ref[...] * inv_std
            scale_ref[...] = a
            shift_ref[...] = beta_ref[...] - mean * a

        @pl.when(phase == 1)
        def _():
            # Folded BN: single FMA on the (Cout, hw) tile.
            o_ref[0] = y * scale_ref[...] + shift_ref[...]

    return kernel


@partial(jax.jit, static_argnames=("hw_tile",))
def relu_conv_bn(x_nchw, w_oihw, gamma, beta, *, hw_tile=None):
    """x_nchw: (N, Cin, H, W); w_oihw: (Cout, Cin, 1, 1); gamma/beta: (Cout,)."""
    N, Cin, H, W = x_nchw.shape
    Cout = w_oihw.shape[0]
    HW = H * W

    # Free, layout-preserving reshapes (no transposes, no extra HBM passes).
    x3 = x_nchw.reshape(N, Cin, HW).astype(jnp.float32)
    w2 = w_oihw.reshape(Cout, Cin).astype(jnp.float32)      # PyTorch OI layout used as-is
    g2 = gamma.reshape(Cout, 1).astype(jnp.float32)
    b2 = beta.reshape(Cout, 1).astype(jnp.float32)

    if hw_tile is None:
        hw_tile = _pick_hw_tile(HW)
    assert HW % hw_tile == 0
    num_t = HW // hw_tile
    inv_count = 1.0 / float(N * HW)

    out3 = pl.pallas_call(
        _make_kernel(inv_count),
        out_shape=jax.ShapeDtypeStruct((N, Cout, HW), jnp.float32),
        grid=(2, N, num_t),                                   # (phase, batch, hw-tile)
        in_specs=[
            pl.BlockSpec((1, Cin, hw_tile), lambda p, n, t: (n, 0, t)),   # x tile
            pl.BlockSpec((Cout, Cin), lambda p, n, t: (0, 0)),            # weight (resident)
            pl.BlockSpec((Cout, 1), lambda p, n, t: (0, 0)),              # gamma
            pl.BlockSpec((Cout, 1), lambda p, n, t: (0, 0)),              # beta
        ],
        # Phase 0 pins the output to one resident block (never written, never flushed
        # with garbage); phase 1 walks the real tiles and writes each exactly once.
        out_specs=pl.BlockSpec((1, Cout, hw_tile),
                               lambda p, n, t: (n * p, 0, t * p)),
        scratch_shapes=[
            pltpu.VMEM((Cout, 1), jnp.float32),   # sum(y)
            pltpu.VMEM((Cout, 1), jnp.float32),   # sum(y*y)
            pltpu.VMEM((Cout, 1), jnp.float32),   # a = gamma * inv_std
            pltpu.VMEM((Cout, 1), jnp.float32),   # b = beta - mean * a
        ],
        # All axes "arbitrary": the phase-1 normalize depends on stats accumulated over
        # ALL (n, t) tiles in phase 0, so the grid must not be split across cores.
        compiler_params=pltpu.CompilerParams(
            dimension_semantics=("arbitrary", "arbitrary", "arbitrary")),
    )(x3, w2, g2, b2)

    return out3.reshape(N, Cout, H, W)


def _reference(x_nchw, w_oihw, gamma, beta):
    """Pure-JAX reference (same math) for a sanity check."""
    Cout, Cin = w_oihw.shape[0], w_oihw.shape[1]
    x = jnp.maximum(x_nchw, 0.0)
    y = jnp.einsum("nchw,oc->nohw", x, w_oihw.reshape(Cout, Cin))
    mean = jnp.mean(y, axis=(0, 2, 3), keepdims=True)
    var = jnp.mean((y - mean) ** 2, axis=(0, 2, 3), keepdims=True)
    return ((y - mean) / jnp.sqrt(var + EPS) * gamma.reshape(1, -1, 1, 1)
            + beta.reshape(1, -1, 1, 1))


if __name__ == "__main__":
    # Channel dims fixed by the module (720 -> 192); small batch / spatial dims.
    N, Cin, H, W = 2, 720, 16, 16
    Cout = 192

    key = jax.random.PRNGKey(0)
    kx, kw, kg, kb = jax.random.split(key, 4)

    x = jax.random.normal(kx, (N, Cin, H, W), dtype=jnp.float32)
    w = jax.random.normal(kw, (Cout, Cin, 1, 1), dtype=jnp.float32) * 0.05
    gamma = 1.0 + 0.1 * jax.random.normal(kg, (Cout,), dtype=jnp.float32)
    beta = 0.1 * jax.random.normal(kb, (Cout,), dtype=jnp.float32)

    out = jax.block_until_ready(relu_conv_bn(x, w, gamma, beta))
    ref = jax.block_until_ready(_reference(x, w, gamma, beta))
    assert out.shape == (N, Cout, H, W)
    assert jnp.allclose(out, ref, atol=2e-3, rtol=2e-3), "mismatch vs reference (tiled path)"

    # Also exercise the single-tile fallback (spatial size not a multiple of 128).
    x2 = jax.random.normal(kx, (1, Cin, 7, 7), dtype=jnp.float32)
    out2 = jax.block_until_ready(relu_conv_bn(x2, w, gamma, beta))
    ref2 = jax.block_until_ready(_reference(x2, w, gamma, beta))
    assert jnp.allclose(out2, ref2, atol=2e-3, rtol=2e-3), "mismatch vs reference (full-tile)"

    print("KERNEL_OK")
</pallas_src>

<mosaic_0001>
module attributes {stable_mosaic.version = 11 : i64} {
  func.func @kernel(%arg0: i32, %arg1: i32, %arg2: i32, %arg3: memref<1x720x256xf32, #tpu.memory_space<vmem>>, %arg4: memref<192x720xf32, #tpu.memory_space<vmem>>, %arg5: memref<192x1xf32, #tpu.memory_space<vmem>>, %arg6: memref<192x1xf32, #tpu.memory_space<vmem>>, %arg7: memref<1x192x256xf32, #tpu.memory_space<vmem>>, %arg8: memref<192x1xf32, #tpu.memory_space<vmem>>, %arg9: memref<192x1xf32, #tpu.memory_space<vmem>>, %arg10: memref<192x1xf32, #tpu.memory_space<vmem>>, %arg11: memref<192x1xf32, #tpu.memory_space<vmem>>) attributes {dimension_semantics = [#tpu.dimension_semantics<arbitrary>, #tpu.dimension_semantics<arbitrary>, #tpu.dimension_semantics<arbitrary>], iteration_bounds = array<i64: 2, 2, 1>, scalar_prefetch = 0 : i64, scratch_operands = 4 : i64, tpu.core_type = #tpu.core_type<tc>, window_params = [{transform_indices = @transform_0, window_bounds = array<i64: 1, 720, 256>}, {pipeline_mode = #tpu.pipeline_mode<synchronous>, transform_indices = @transform_1, window_bounds = array<i64: 192, 720>}, {pipeline_mode = #tpu.pipeline_mode<synchronous>, transform_indices = @transform_2, window_bounds = array<i64: 192, 1>}, {pipeline_mode = #tpu.pipeline_mode<synchronous>, transform_indices = @transform_3, window_bounds = array<i64: 192, 1>}, {transform_indices = @transform_4, window_bounds = array<i64: 1, 192, 256>}]} {
    %c0_i32 = arith.constant 0 : i32
    %0 = arith.cmpi eq, %arg1, %c0_i32 : i32
    %c0_i32_0 = arith.constant 0 : i32
    %1 = arith.cmpi eq, %arg2, %c0_i32_0 : i32
    %2 = arith.andi %0, %1 : i1
    %c1_i32 = arith.constant 1 : i32
    %3 = arith.cmpi eq, %arg1, %c1_i32 : i32
    %c0_i32_1 = arith.constant 0 : i32
    %4 = arith.cmpi eq, %arg2, %c0_i32_1 : i32
    %5 = arith.andi %3, %4 : i1
    %c0_i32_2 = arith.constant 0 : i32
    %6 = arith.cmpi eq, %arg0, %c0_i32_2 : i32
    %7 = arith.andi %6, %2 : i1
    %8 = arith.extui %7 : i1 to i32
    %c0_i32_3 = arith.constant 0 : i32
    %9 = arith.cmpi ne, %8, %c0_i32_3 : i32
    scf.if %9 {
      %cst_15 = arith.constant 0.000000e+00 : f32
      %26 = vector.broadcast %cst_15 : f32 to vector<192x1xf32>
      %c0_16 = arith.constant 0 : index
      %c0_17 = arith.constant 0 : index
      %27 = vector.load %arg8[%c0_16, %c0_17] : memref<192x1xf32, #tpu.memory_space<vmem>>, vector<192x1xf32>
      tpu.vector_store %arg8[%c0_16, %c0_17], %26 {strides = array<i32>} : memref<192x1xf32, #tpu.memory_space<vmem>>, vector<192x1xf32>,
      %cst_18 = arith.constant 0.000000e+00 : f32
      %28 = vector.broadcast %cst_18 : f32 to vector<192x1xf32>
      %c0_19 = arith.constant 0 : index
      %c0_20 = arith.constant 0 : index
      %29 = vector.load %arg9[%c0_19, %c0_20] : memref<192x1xf32, #tpu.memory_space<vmem>>, vector<192x1xf32>
      tpu.vector_store %arg9[%c0_19, %c0_20], %28 {strides = array<i32>} : memref<192x1xf32, #tpu.memory_space<vmem>>, vector<192x1xf32>,
    } else {
    }
    %c0 = arith.constant 0 : index
    %c0_4 = arith.constant 0 : index
    %c0_5 = arith.constant 0 : index
    %10 = vector.load %arg3[%c0, %c0_4, %c0_5] : memref<1x720x256xf32, #tpu.memory_space<vmem>>, vector<1x720x256xf32>
    %11 = vector.shape_cast %10 : vector<1x720x256xf32> to vector<720x256xf32>
    %cst = arith.constant 0.000000e+00 : f32
    %12 = vector.broadcast %cst : f32 to vector<720x256xf32>
    %13 = arith.maximumf %11, %12 : vector<720x256xf32>
    %c0_6 = arith.constant 0 : index
    %c0_7 = arith.constant 0 : index
    %14 = vector.load %arg4[%c0_6, %c0_7] : memref<192x720xf32, #tpu.memory_space<vmem>>, vector<192x720xf32>
    %cst_8 = arith.constant dense<0.000000e+00> : vector<192x256xf32>
    %15 = tpu.matmul %14, %13, %cst_8 {dimension_numbers = #tpu.dot_dimension_numbers<[1], [0], [0], [1], [0, 0, 1, 1], [], []>} : vector<192x720xf32>, vector<720x256xf32>, vector<192x256xf32> -> vector<192x256xf32>
    %c0_i32_9 = arith.constant 0 : i32
    %16 = arith.cmpi eq, %arg0, %c0_i32_9 : i32
    %17 = arith.extui %16 : i1 to i32
    %c0_i32_10 = arith.constant 0 : i32
    %18 = arith.cmpi ne, %17, %c0_i32_10 : i32
    scf.if %18 {
      %c0_15 = arith.constant 0 : index
      %c0_16 = arith.constant 0 : index
      %26 = vector.load %arg8[%c0_15, %c0_16] : memref<192x1xf32, #tpu.memory_space<vmem>>, vector<192x1xf32>
      %cst_17 = arith.constant dense<0.000000e+00> : vector<192xf32>
      %27 = vector.multi_reduction <add>, %15, %cst_17 [1] : vector<192x256xf32> to vector<192xf32>
      %28 = vector.shape_cast %27 : vector<192xf32> to vector<192x1xf32>
      %29 = arith.addf %26, %28 : vector<192x1xf32>
      %c0_18 = arith.constant 0 : index
      %c0_19 = arith.constant 0 : index
      %30 = vector.load %arg8[%c0_18, %c0_19] : memref<192x1xf32, #tpu.memory_space<vmem>>, vector<192x1xf32>
      tpu.vector_store %arg8[%c0_18, %c0_19], %29 {strides = array<i32>} : memref<192x1xf32, #tpu.memory_space<vmem>>, vector<192x1xf32>,
      %c0_20 = arith.constant 0 : index
      %c0_21 = arith.constant 0 : index
      %31 = vector.load %arg9[%c0_20, %c0_21] : memref<192x1xf32, #tpu.memory_space<vmem>>, vector<192x1xf32>
      %32 = arith.mulf %15, %15 : vector<192x256xf32>
      %cst_22 = arith.constant dense<0.000000e+00> : vector<192xf32>
      %33 = vector.multi_reduction <add>, %32, %cst_22 [1] : vector<192x256xf32> to vector<192xf32>
      %34 = vector.shape_cast %33 : vector<192xf32> to vector<192x1xf32>
      %35 = arith.addf %31, %34 : vector<192x1xf32>
      %c0_23 = arith.constant 0 : index
      %c0_24 = arith.constant 0 : index
      %36 = vector.load %arg9[%c0_23, %c0_24] : memref<192x1xf32, #tpu.memory_space<vmem>>, vector<192x1xf32>
      tpu.vector_store %arg9[%c0_23, %c0_24], %35 {strides = array<i32>} : memref<192x1xf32, #tpu.memory_space<vmem>>, vector<192x1xf32>,
    } else {
    }
    %c0_i32_11 = arith.constant 0 : i32
    %19 = arith.cmpi eq, %arg0, %c0_i32_11 : i32
    %20 = arith.andi %19, %5 : i1
    %21 = arith.extui %20 : i1 to i32
    %c0_i32_12 = arith.constant 0 : i32
    %22 = arith.cmpi ne, %21, %c0_i32_12 : i32
    scf.if %22 {
      %c0_15 = arith.constant 0 : index
      %c0_16 = arith.constant 0 : index
      %26 = vector.load %arg8[%c0_15, %c0_16] : memref<192x1xf32, #tpu.memory_space<vmem>>, vector<192x1xf32>
      %cst_17 = arith.constant 0.001953125 : f32
      %27 = vector.broadcast %cst_17 : f32 to vector<192x1xf32>
      %28 = arith.mulf %26, %27 : vector<192x1xf32>
      %c0_18 = arith.constant 0 : index
      %c0_19 = arith.constant 0 : index
      %29 = vector.load %arg9[%c0_18, %c0_19] : memref<192x1xf32, #tpu.memory_space<vmem>>, vector<192x1xf32>
      %cst_20 = arith.constant 0.001953125 : f32
      %30 = vector.broadcast %cst_20 : f32 to vector<192x1xf32>
      %31 = arith.mulf %29, %30 : vector<192x1xf32>
      %32 = arith.mulf %28, %28 : vector<192x1xf32>
      %33 = arith.subf %31, %32 : vector<192x1xf32>
      %cst_21 = arith.constant 9.99999974E-6 : f32
      %34 = vector.broadcast %cst_21 : f32 to vector<192x1xf32>
      %35 = arith.addf %33, %34 : vector<192x1xf32>
      %36 = math.rsqrt %35 : vector<192x1xf32>
      %c0_22 = arith.constant 0 : index
      %c0_23 = arith.constant 0 : index
      %37 = vector.load %arg5[%c0_22, %c0_23] : memref<192x1xf32, #tpu.memory_space<vmem>>, vector<192x1xf32>
      %38 = arith.mulf %37, %36 : vector<192x1xf32>
      %c0_24 = arith.constant 0 : index
      %c0_25 = arith.constant 0 : index
      %39 = vector.load %arg10[%c0_24, %c0_25] : memref<192x1xf32, #tpu.memory_space<vmem>>, vector<192x1xf32>
      tpu.vector_store %arg10[%c0_24, %c0_25], %38 {strides = array<i32>} : memref<192x1xf32, #tpu.memory_space<vmem>>, vector<192x1xf32>,
      %c0_26 = arith.constant 0 : index
      %c0_27 = arith.constant 0 : index
      %40 = vector.load %arg6[%c0_26, %c0_27] : memref<192x1xf32, #tpu.memory_space<vmem>>, vector<192x1xf32>
      %41 = arith.mulf %28, %38 : vector<192x1xf32>
      %42 = arith.subf %40, %41 : vector<192x1xf32>
      %c0_28 = arith.constant 0 : index
      %c0_29 = arith.constant 0 : index
      %43 = vector.load %arg11[%c0_28, %c0_29] : memref<192x1xf32, #tpu.memory_space<vmem>>, vector<192x1xf32>
      tpu.vector_store %arg11[%c0_28, %c0_29], %42 {strides = array<i32>} : memref<192x1xf32, #tpu.memory_space<vmem>>, vector<192x1xf32>,
    } else {
    }
    %c1_i32_13 = arith.constant 1 : i32
    %23 = arith.cmpi eq, %arg0, %c1_i32_13 : i32
    %24 = arith.extui %23 : i1 to i32
    %c0_i32_14 = arith.constant 0 : i32
    %25 = arith.cmpi ne, %24, %c0_i32_14 : i32
    scf.if %25 {
      %c0_15 = arith.constant 0 : index
      %c0_16 = arith.constant 0 : index
      %26 = vector.load %arg10[%c0_15, %c0_16] : memref<192x1xf32, #tpu.memory_space<vmem>>, vector<192x1xf32>
      %27 = vector.broadcast %26 : vector<192x1xf32> to vector<192x256xf32>
      %28 = arith.mulf %15, %27 : vector<192x256xf32>
      %c0_17 = arith.constant 0 : index
      %c0_18 = arith.constant 0 : index
      %29 = vector.load %arg11[%c0_17, %c0_18] : memref<192x1xf32, #tpu.memory_space<vmem>>, vector<192x1xf32>
      %30 = vector.broadcast %29 : vector<192x1xf32> to vector<192x256xf32>
      %31 = arith.addf %28, %30 : vector<192x256xf32>
      %c0_19 = arith.constant 0 : index
      %c0_20 = arith.constant 0 : index
      %c0_21 = arith.constant 0 : index
      %32 = vector.load %arg7[%c0_19, %c0_20, %c0_21] : memref<1x192x256xf32, #tpu.memory_space<vmem>>, vector<1x192x256xf32>
      %33 = vector.shape_cast %32 : vector<1x192x256xf32> to vector<192x256xf32>
      %34 = vector.shape_cast %31 : vector<192x256xf32> to vector<1x192x256xf32>
      tpu.vector_store %arg7[%c0_19, %c0_20, %c0_21], %34 {strides = array<i32>} : memref<1x192x256xf32, #tpu.memory_space<vmem>>, vector<1x192x256xf32>,
    } else {
    }
    return
  }
  func.func @transform_0(%arg0: i32, %arg1: i32, %arg2: i32) -> (i32, i32, i32) {
    %c0_i32 = arith.constant 0 : i32
    %c0_i32_0 = arith.constant 0 : i32
    return %arg1, %c0_i32, %arg2 : i32, i32, i32
  }
  func.func @transform_1(%arg0: i32, %arg1: i32, %arg2: i32) -> (i32, i32) {
    %c0_i32 = arith.constant 0 : i32
    %c0_i32_0 = arith.constant 0 : i32
    %c0_i32_1 = arith.constant 0 : i32
    return %c0_i32, %c0_i32_0 : i32, i32
  }
  func.func @transform_2(%arg0: i32, %arg1: i32, %arg2: i32) -> (i32, i32) {
    %c0_i32 = arith.constant 0 : i32
    %c0_i32_0 = arith.constant 0 : i32
    %c0_i32_1 = arith.constant 0 : i32
    return %c0_i32, %c0_i32_0 : i32, i32
  }
  func.func @transform_3(%arg0: i32, %arg1: i32, %arg2: i32) -> (i32, i32) {
    %c0_i32 = arith.constant 0 : i32
    %c0_i32_0 = arith.constant 0 : i32
    %c0_i32_1 = arith.constant 0 : i32
    return %c0_i32, %c0_i32_0 : i32, i32
  }
  func.func @transform_4(%arg0: i32, %arg1: i32, %arg2: i32) -> (i32, i32, i32) {
    %0 = arith.muli %arg1, %arg0 : i32
    %1 = arith.muli %arg2, %arg0 : i32
    %c0_i32 = arith.constant 0 : i32
    %c0_i32_0 = arith.constant 0 : i32
    return %0, %c0_i32, %1 : i32, i32, i32
  }
}

</mosaic_0001>

<bundles_post_ra>
// kernel: relu_conv_bn.1
= control target key start
LH: loop header
LB: loop body
LE: loop exit
PB: predicated region body
PF: predicated region fallthrough
CT: control target
= control target key end

     0   :  { %s3011_s15 = smov 0   ;;  %s3013_s16 = smov 0   ;;  %s4756_s0 = inlined_call_operand.vmem [shape: f32[2,720,256], index: 0, kind: input, shape index: {}]   ;;  %s4757_s1 = inlined_call_operand.vmem [shape: f32[192,720], index: 1, kind: input, shape index: {}]   ;;  %s4758_s2 = inlined_call_operand.vmem [shape: f32[192,1], index: 2, kind: input, shape index: {}]   ;;  %s4759_s3 = inlined_call_operand.vmem [shape: f32[192,1], index: 3, kind: input, shape index: {}]   ;;  %s4760_s4 = inlined_call_operand.vmem [shape: f32[2,192,256], index: 4, kind: output, shape index: {}]  }
   0x1   :  { %s3015_s17 = smov 0   ;;  %s3017_s18 = smov 0  }
   0x2   :  { %s3019_s19 = smov 0  }
   0x3 LB: > { %s29_s20 = sadd.s32 1, %s2974_s17  ;;  %s33_s21 = sadd.s32 1, %s2978_s18  ;;  %s2982_s19 = sphi %s3019_s19, %s14_s19   ;;  %s2978_s18 = sphi %s3017_s18, %s4891_s18   ;;  %s2974_s17 = sphi %s3015_s17, %s4890_s17   ;;  %s2970_s16 = sphi %s3013_s16, %s4889_s16   ;;  %s2966_s15 = sphi %s3011_s15, %s4888_s15  }
   0x4   : > { %p31_p0 = scmp.ge.s32.totalorder %s29_s20, 2  ;;  %p2763_p1 = scmp.ge.s32.totalorder %s2982_s19, 1 }
   0x5   : > { %p194_p2 = scmp.lt.s32.totalorder %s2982_s19, 5 }
   0x6   : > { %s4893_s20 = smov (%p31_p0, %s29_s20), 0  ;;  %s4895_s21 = smov (!%p31_p0, %s33_s21), %s2978_s18 }
   0x7   : > { %p195_p3 = pnand %p2763_p1, %p194_p2  ;;  %p35_p4 = scmp.ge.s32.totalorder %s4895_s21, 2 }
   0x9   : > { %s4897_s21 = smov (%p35_p4, %s4895_s21), 0  ;;  %198 = sbr.rel (%p195_p3) target bundleno = 998 (0x3e6), region = 36 }
   0xe   : > { %p231_p5 = scmp.lt.s32.totalorder %s2966_s15, 1  ;;  %s240_s22 = smul.u32 %s2966_s15, %s2970_s16 }
   0xf   : > { %p254_p6 = scmp.eq.s32.totalorder %s2966_s15, 0  ;;  %p258_p7 = scmp.eq.s32.totalorder %s2966_s15, 1 }
  0x10   : > { %s232_s23 = scalar_select %p231_p5, %s2966_s15, 1 }
  0x11   : > { %p243_p8 = scmp.lt.s32.totalorder %s240_s22, 1  ;;  %p261_p9 = scmp.eq.s32.totalorder %s2970_s16, 0 }
  0x12   : > { %s2850_s24 = smul.u32 1440, %s232_s23 }
  0x13   : > { %s4899_s22 = smov (!%p243_p8, %s240_s22), 1  ;;  %p262_p10 = pnand %p261_p9, %p254_p6 }
  0x14   : > { %s3055_s27 = scalar_lea.vmem %s4756_s0, %s2850_s24  ;;  %s2851_s28 = smul.u32 384, %s4899_s22 }
  0x15   : > { %265 = sbr.rel (%p262_p10) target bundleno = 51 (0x33), region = 40 }
  0x16   : > { %s3062_s5 = scalar_lea.vmem %s4760_s4, %s2851_s28 }
  0x1a   : > { %vm266_vm0 = vcmask 7168   ;;  %v2984_v0 = vmov 0.0  }
  0x1b   : > { %267 = vst.msk [vmem:[#allocation2] sm:$0xff] %vm266_vm0, %v2984_v0  ;;  %268 = vst.msk [vmem:[#allocation2 + $0x8] sm:$0xff] %vm266_vm0, %v2984_v0 }
  0x1c   : > { %269 = vst.msk [vmem:[#allocation2 + $0x10] sm:$0xff] %vm266_vm0, %v2984_v0  ;;  %270 = vst.msk [vmem:[#allocation2 + $0x18] sm:$0xff] %vm266_vm0, %v2984_v0 }
  0x1d   : > { %271 = vst.msk [vmem:[#allocation2 + $0x20] sm:$0xff] %vm266_vm0, %v2984_v0  ;;  %272 = vst.msk [vmem:[#allocation2 + $0x28] sm:$0xff] %vm266_vm0, %v2984_v0 }
  0x1e   : > { %273 = vst.msk [vmem:[#allocation2 + $0x30] sm:$0xff] %vm266_vm0, %v2984_v0  ;;  %274 = vst.msk [vmem:[#allocation2 + $0x38] sm:$0xff] %vm266_vm0, %v2984_v0 }
  0x1f   : > { %275 = vst.msk [vmem:[#allocation2 + $0x40] sm:$0xff] %vm266_vm0, %v2984_v0  ;;  %276 = vst.msk [vmem:[#allocation2 + $0x48] sm:$0xff] %vm266_vm0, %v2984_v0 }
  0x20   : > { %277 = vst.msk [vmem:[#allocation2 + $0x50] sm:$0xff] %vm266_vm0, %v2984_v0  ;;  %278 = vst.msk [vmem:[#allocation2 + $0x58] sm:$0xff] %vm266_vm0, %v2984_v0 }
  0x21   : > { %279 = vst.msk [vmem:[#allocation2 + $0x60] sm:$0xff] %vm266_vm0, %v2984_v0  ;;  %280 = vst.msk [vmem:[#allocation2 + $0x68] sm:$0xff] %vm266_vm0, %v2984_v0 }
  0x22   : > { %281 = vst.msk [vmem:[#allocation2 + $0x70] sm:$0xff] %vm266_vm0, %v2984_v0  ;;  %282 = vst.msk [vmem:[#allocation2 + $0x78] sm:$0xff] %vm266_vm0, %v2984_v0 }
  0x23   : > { %283 = vst.msk [vmem:[#allocation2 + $0x80] sm:$0xff] %vm266_vm0, %v2984_v0  ;;  %284 = vst.msk [vmem:[#allocation2 + $0x88] sm:$0xff] %vm266_vm0, %v2984_v0 }
  0x24   : > { %285 = vst.msk [vmem:[#allocation2 + $0x90] sm:$0xff] %vm266_vm0, %v2984_v0  ;;  %286 = vst.msk [vmem:[#allocation2 + $0x98] sm:$0xff] %vm266_vm0, %v2984_v0 }
  0x25   : > { %287 = vst.msk [vmem:[#allocation2 + $0xa0] sm:$0xff] %vm266_vm0, %v2984_v0  ;;  %288 = vst.msk [vmem:[#allocation2 + $0xa8] sm:$0xff] %vm266_vm0, %v2984_v0 }
  0x26   : > { %289 = vst.msk [vmem:[#allocation2 + $0xb0] sm:$0xff] %vm266_vm0, %v2984_v0  ;;  %290 = vst.msk [vmem:[#allocation2 + $0xb8] sm:$0xff] %vm266_vm0, %v2984_v0 }
  0x27   : > { %291 = vst.msk [vmem:[#allocation3] sm:$0xff] %vm266_vm0, %v2984_v0  ;;  %292 = vst.msk [vmem:[#allocation3 + $0x8] sm:$0xff] %vm266_vm0, %v2984_v0 }
  0x28   : > { %293 = vst.msk [vmem:[#allocation3 + $0x10] sm:$0xff] %vm266_vm0, %v2984_v0  ;;  %294 = vst.msk [vmem:[#allocation3 + $0x18] sm:$0xff] %vm266_vm0, %v2984_v0 }
  0x29   : > { %295 = vst.msk [vmem:[#allocation3 + $0x20] sm:$0xff] %vm266_vm0, %v2984_v0  ;;  %296 = vst.msk [vmem:[#allocation3 + $0x28] sm:$0xff] %vm266_vm0, %v2984_v0 }
  0x2a   : > { %297 = vst.msk [vmem:[#allocation3 + $0x30] sm:$0xff] %vm266_vm0, %v2984_v0  ;;  %298 = vst.msk [vmem:[#allocation3 + $0x38] sm:$0xff] %vm266_vm0, %v2984_v0 }
  0x2b   : > { %299 = vst.msk [vmem:[#allocation3 + $0x40] sm:$0xff] %vm266_vm0, %v2984_v0  ;;  %300 = vst.msk [vmem:[#allocation3 + $0x48] sm:$0xff] %vm266_vm0, %v2984_v0 }
  0x2c   : > { %301 = vst.msk [vmem:[#allocation3 + $0x50] sm:$0xff] %vm266_vm0, %v2984_v0  ;;  %302 = vst.msk [vmem:[#allocation3 + $0x58] sm:$0xff] %vm266_vm0, %v2984_v0 }
  0x2d   : > { %303 = vst.msk [vmem:[#allocation3 + $0x60] sm:$0xff] %vm266_vm0, %v2984_v0  ;;  %304 = vst.msk [vmem:[#allocation3 + $0x68] sm:$0xff] %vm266_vm0, %v2984_v0 }
  0x2e   : > { %305 = vst.msk [vmem:[#allocation3 + $0x70] sm:$0xff] %vm266_vm0, %v2984_v0  ;;  %306 = vst.msk [vmem:[#allocation3 + $0x78] sm:$0xff] %vm266_vm0, %v2984_v0 }
  0x2f   : > { %307 = vst.msk [vmem:[#allocation3 + $0x80] sm:$0xff] %vm266_vm0, %v2984_v0  ;;  %308 = vst.msk [vmem:[#allocation3 + $0x88] sm:$0xff] %vm266_vm0, %v2984_v0 }
  0x30   : > { %309 = vst.msk [vmem:[#allocation3 + $0x90] sm:$0xff] %vm266_vm0, %v2984_v0  ;;  %310 = vst.msk [vmem:[#allocation3 + $0x98] sm:$0xff] %vm266_vm0, %v2984_v0 }
  0x31   : > { %311 = vst.msk [vmem:[#allocation3 + $0xa0] sm:$0xff] %vm266_vm0, %v2984_v0  ;;  %312 = vst.msk [vmem:[#allocation3 + $0xa8] sm:$0xff] %vm266_vm0, %v2984_v0 }
  0x32   : > { %313 = vst.msk [vmem:[#allocation3 + $0xb0] sm:$0xff] %vm266_vm0, %v2984_v0  ;;  %314 = vst.msk [vmem:[#allocation3 + $0xb8] sm:$0xff] %vm266_vm0, %v2984_v0 }
  0x33 PF: > { %v346_v1 = vld [vmem:[%s3055_s27 + $0xf8] sm:$0xff]  ;;  %v345_v3 = vld [vmem:[%s3055_s27 + $0xf0] sm:$0xff]  ;;  %v344_v8 = vld [vmem:[%s3055_s27 + $0xe8] sm:$0xff]  ;;  %vm819_vm1 = vcmask 654336   ;;  %p2792_p11 = scmp.ne.s32.totalorder %s2970_s16, 0 }
  0x34   : > { %v410_v2 = vld [vmem:[%s3055_s27 + $0x2f8] sm:$0xff]  ;;  %v526_v4 = vmax.f32 %v346_v1, 0.0  ;;  %v525_v6 = vmax.f32 %v345_v3, 0.0  ;;  %v409_v7 = vld [vmem:[%s3055_s27 + $0x2f0] sm:$0xff]  ;;  %v408_v9 = vld [vmem:[%s3055_s27 + $0x2e8] sm:$0xff]  ;;  %v524_v11 = vmax.f32 %v344_v8, 0.0 }
  0x35   : > { %v590_v5 = vmax.f32 %v410_v2, 0.0  ;;  %v589_v10 = vmax.f32 %v409_v7, 0.0  ;;  %v588_v12 = vmax.f32 %v408_v9, 0.0  ;;  %v343_v13 = vld [vmem:[%s3055_s27 + $0xe0] sm:$0xff]  ;;  %v342_v15 = vld [vmem:[%s3055_s27 + $0xd8] sm:$0xff]  ;;  %v341_v20 = vld [vmem:[%s3055_s27 + $0xd0] sm:$0xff] }
  0x36   : > { %v407_v14 = vld [vmem:[%s3055_s27 + $0x2e0] sm:$0xff]  ;;  %892 = vmatprep.subr.mxu0 %v526_v4  ;;  %v523_v16 = vmax.f32 %v343_v13, 0.0  ;;  %v522_v18 = vmax.f32 %v342_v15, 0.0  ;;  %v406_v19 = vld [vmem:[%s3055_s27 + $0x2d8] sm:$0xff]  ;;  %v405_v21 = vld [vmem:[%s3055_s27 + $0x2d0] sm:$0xff]  ;;  %v521_v23 = vmax.f32 %v341_v20, 0.0 }
  0x37   : > { %1101 = vmatprep.subr.mxu1 %v590_v5  ;;  %v587_v17 = vmax.f32 %v407_v14, 0.0  ;;  %893 = vmatpush1.msra.mxu0 %v525_v6  ;;  %v586_v22 = vmax.f32 %v406_v19, 0.0  ;;  %v585_v24 = vmax.f32 %v405_v21, 0.0  ;;  %v340_v25 = vld [vmem:[%s3055_s27 + $0xc8] sm:$0xff]  ;;  %v339_v27 = vld [vmem:[%s3055_s27 + $0xc0] sm:$0xff]  ;;  %v338_v31 = vld [vmem:[%s3055_s27 + $0xb8] sm:$0xff] }
  0x38   : > { %1102 = vmatpush1.msra.mxu1 %v589_v10  ;;  %v404_v26 = vld [vmem:[%s3055_s27 + $0x2c8] sm:$0xff]  ;;  %894 = vmatprep.subr.mxu0 %v524_v11  ;;  %v520_v28 = vmax.f32 %v340_v25, 0.0  ;;  %v403_v30 = vld [vmem:[%s3055_s27 + $0x2c0] sm:$0xff]  ;;  %v402_v32 = vld [vmem:[%s3055_s27 + $0x2b8] sm:$0xff]  ;;  %v519_v33 = vmax.f32 %v339_v27, 0.0  ;;  %v518_v38 = vmax.f32 %v338_v31, 0.0 }
  0x39   : > { %1103 = vmatprep.subr.mxu1 %v588_v12  ;;  %v584_v29 = vmax.f32 %v404_v26, 0.0  ;;  %895 = vmatpush1.msra.mxu0 %v523_v16  ;;  %v583_v34 = vmax.f32 %v403_v30, 0.0  ;;  %v337_v35 = vld [vmem:[%s3055_s27 + $0xb0] sm:$0xff]  ;;  %v336_v37 = vld [vmem:[%s3055_s27 + $0xa8] sm:$0xff]  ;;  %v582_v39 = vmax.f32 %v402_v32, 0.0  ;;  %v335_v41 = vld [vmem:[%s3055_s27 + $0xa0] sm:$0xff] }
  0x3a   : > { %1104 = vmatpush1.msra.mxu1 %v587_v17  ;;  %v401_v36 = vld [vmem:[%s3055_s27 + $0x2b0] sm:$0xff]  ;;  %896 = vmatprep.subr.mxu0 %v522_v18  ;;  %v400_v40 = vld [vmem:[%s3055_s27 + $0x2a8] sm:$0xff]  ;;  %v399_v42 = vld [vmem:[%s3055_s27 + $0x2a0] sm:$0xff]  ;;  %v517_v43 = vmax.f32 %v337_v35, 0.0  ;;  %v516_v47 = vmax.f32 %v336_v37, 0.0  ;;  %v515_v51 = vmax.f32 %v335_v41, 0.0 }
  0x3b   : > { %1105 = vmatprep.subr.mxu1 %v586_v22  ;;  %897 = vmatpush1.msra.mxu0 %v521_v23  ;;  %v581_v44 = vmax.f32 %v401_v36, 0.0  ;;  %v334_v45 = vld [vmem:[%s3055_s27 + $0x98] sm:$0xff]  ;;  %v580_v48 = vmax.f32 %v400_v40, 0.0  ;;  %v333_v49 = vld [vmem:[%s3055_s27 + $0x90] sm:$0xff]  ;;  %v579_v52 = vmax.f32 %v399_v42, 0.0  ;;  %v332_v53 = vld [vmem:[%s3055_s27 + $0x88] sm:$0xff] }
  0x3c   : > { %1106 = vmatpush1.msra.mxu1 %v585_v24  ;;  %v398_v46 = vld [vmem:[%s3055_s27 + $0x298] sm:$0xff]  ;;  %898 = vmatprep.subr.mxu0 %v520_v28  ;;  %v397_v50 = vld [vmem:[%s3055_s27 + $0x290] sm:$0xff]  ;;  %v396_v54 = vld [vmem:[%s3055_s27 + $0x288] sm:$0xff]  ;;  %v514_v55 = vmax.f32 %v334_v45, 0.0  ;;  %v513_v59 = vmax.f32 %v333_v49, 0.0  ;;  %v512_v63 = vmax.f32 %v332_v53, 0.0 }
  0x3d   : > { %1107 = vmatprep.subr.mxu1 %v584_v29  ;;  %899 = vmatpush1.msra.mxu0 %v519_v33  ;;  %v578_v56 = vmax.f32 %v398_v46, 0.0  ;;  %v331_v57 = vld [vmem:[%s3055_s27 + $0x80] sm:$0xff]  ;;  %v577_v60 = vmax.f32 %v397_v50, 0.0  ;;  %v330_v61 = vld [vmem:[%s3055_s27 + $0x78] sm:$0xff]  ;;  %v576_v0 = vmax.f32 %v396_v54, 0.0  ;;  %v329_v1 = vld [vmem:[%s3055_s27 + $0x70] sm:$0xff] }
  0x3e   : > { %1108 = vmatpush1.msra.mxu1 %v583_v34  ;;  %900 = vmatprep.subr.mxu0 %v518_v38  ;;  %v395_v58 = vld [vmem:[%s3055_s27 + $0x280] sm:$0xff]  ;;  %v394_v62 = vld [vmem:[%s3055_s27 + $0x278] sm:$0xff]  ;;  %v393_v2 = vld [vmem:[%s3055_s27 + $0x270] sm:$0xff]  ;;  %v511_v3 = vmax.f32 %v331_v57, 0.0  ;;  %v510_v7 = vmax.f32 %v330_v61, 0.0  ;;  %v509_v11 = vmax.f32 %v329_v1, 0.0 }
  0x3f   : > { %1109 = vmatprep.subr.mxu1 %v582_v39  ;;  %901 = vmatpush1.msra.mxu0 %v517_v43  ;;  %v575_v4 = vmax.f32 %v395_v58, 0.0  ;;  %v328_v5 = vld [vmem:[%s3055_s27 + $0x68] sm:$0xff]  ;;  %v574_v8 = vmax.f32 %v394_v62, 0.0  ;;  %v327_v9 = vld [vmem:[%s3055_s27 + $0x60] sm:$0xff]  ;;  %v573_v12 = vmax.f32 %v393_v2, 0.0  ;;  %v326_v13 = vld [vmem:[%s3055_s27 + $0x58] sm:$0xff] }
  0x40   : > { %1110 = vmatpush1.msra.mxu1 %v581_v44  ;;  %902 = vmatprep.subr.mxu0 %v516_v47  ;;  %v392_v6 = vld [vmem:[%s3055_s27 + $0x268] sm:$0xff]  ;;  %v391_v10 = vld [vmem:[%s3055_s27 + $0x260] sm:$0xff]  ;;  %v390_v14 = vld [vmem:[%s3055_s27 + $0x258] sm:$0xff]  ;;  %v508_v15 = vmax.f32 %v328_v5, 0.0  ;;  %v507_v19 = vmax.f32 %v327_v9, 0.0  ;;  %v506_v23 = vmax.f32 %v326_v13, 0.0 }
  0x41   : > { %1111 = vmatprep.subr.mxu1 %v580_v48  ;;  %903 = vmatpush1.msra.mxu0 %v515_v51  ;;  %v572_v16 = vmax.f32 %v392_v6, 0.0  ;;  %v325_v17 = vld [vmem:[%s3055_s27 + $0x50] sm:$0xff]  ;;  %v571_v20 = vmax.f32 %v391_v10, 0.0  ;;  %v324_v21 = vld [vmem:[%s3055_s27 + $0x48] sm:$0xff]  ;;  %v570_v24 = vmax.f32 %v390_v14, 0.0  ;;  %v323_v25 = vld [vmem:[%s3055_s27 + $0x40] sm:$0xff] }
  0x42   : > { %1112 = vmatpush1.msra.mxu1 %v579_v52  ;;  %904 = vmatprep.subr.mxu0 %v514_v55  ;;  %v389_v18 = vld [vmem:[%s3055_s27 + $0x250] sm:$0xff]  ;;  %v388_v22 = vld [vmem:[%s3055_s27 + $0x248] sm:$0xff]  ;;  %v387_v26 = vld [vmem:[%s3055_s27 + $0x240] sm:$0xff]  ;;  %v505_v27 = vmax.f32 %v325_v17, 0.0  ;;  %v504_v31 = vmax.f32 %v324_v21, 0.0  ;;  %v503_v35 = vmax.f32 %v323_v25, 0.0 }
  0x43   : > { %1113 = vmatprep.subr.mxu1 %v578_v56  ;;  %905 = vmatpush1.msra.mxu0 %v513_v59  ;;  %v569_v28 = vmax.f32 %v389_v18, 0.0  ;;  %v322_v29 = vld [vmem:[%s3055_s27 + $0x38] sm:$0xff]  ;;  %v568_v32 = vmax.f32 %v388_v22, 0.0  ;;  %v321_v33 = vld [vmem:[%s3055_s27 + $0x30] sm:$0xff]  ;;  %v567_v36 = vmax.f32 %v387_v26, 0.0  ;;  %v320_v37 = vld [vmem:[%s3055_s27 + $0x28] sm:$0xff] }
  0x44   : > { %1114 = vmatpush1.msra.mxu1 %v577_v60  ;;  %906 = vmatprep.subr.mxu0 %v512_v63  ;;  %v386_v30 = vld [vmem:[%s3055_s27 + $0x238] sm:$0xff]  ;;  %v385_v34 = vld [vmem:[%s3055_s27 + $0x230] sm:$0xff]  ;;  %v384_v38 = vld [vmem:[%s3055_s27 + $0x228] sm:$0xff]  ;;  %v502_v39 = vmax.f32 %v322_v29, 0.0  ;;  %v501_v43 = vmax.f32 %v321_v33, 0.0  ;;  %v500_v47 = vmax.f32 %v320_v37, 0.0 }
  0x45   : > { %1115 = vmatprep.subr.mxu1 %v576_v0  ;;  %907 = vmatpush1.msra.mxu0 %v511_v3  ;;  %v566_v40 = vmax.f32 %v386_v30, 0.0  ;;  %v319_v41 = vld [vmem:[%s3055_s27 + $0x20] sm:$0xff]  ;;  %v565_v44 = vmax.f32 %v385_v34, 0.0  ;;  %v318_v45 = vld [vmem:[%s3055_s27 + $0x18] sm:$0xff]  ;;  %v564_v48 = vmax.f32 %v384_v38, 0.0  ;;  %v317_v49 = vld [vmem:[%s3055_s27 + $0x10] sm:$0xff] }
  0x46   : > { %1116 = vmatpush1.msra.mxu1 %v575_v4  ;;  %908 = vmatprep.subr.mxu0 %v510_v7  ;;  %v383_v42 = vld [vmem:[%s3055_s27 + $0x220] sm:$0xff]  ;;  %v382_v46 = vld [vmem:[%s3055_s27 + $0x218] sm:$0xff]  ;;  %v381_v50 = vld [vmem:[%s3055_s27 + $0x210] sm:$0xff]  ;;  %v499_v51 = vmax.f32 %v319_v41, 0.0  ;;  %v498_v55 = vmax.f32 %v318_v45, 0.0  ;;  %v497_v59 = vmax.f32 %v317_v49, 0.0 }
  0x47   : > { %1117 = vmatprep.subr.mxu1 %v574_v8  ;;  %909 = vmatpush1.msra.mxu0 %v509_v11  ;;  %v563_v52 = vmax.f32 %v383_v42, 0.0  ;;  %v316_v53 = vld [vmem:[%s3055_s27 + $0x8] sm:$0xff]  ;;  %v562_v56 = vmax.f32 %v382_v46, 0.0  ;;  %v315_v57 = vld [vmem:[%s3055_s27] sm:$0xff]  ;;  %v561_v60 = vmax.f32 %v381_v50, 0.0  ;;  %v378_v61 = vld [vmem:[%s3055_s27 + $0x1f8] sm:$0xff] }
  0x48   : > { %1118 = vmatpush1.msra.mxu1 %v573_v12  ;;  %910 = vmatprep.subr.mxu0 %v508_v15  ;;  %v380_v54 = vld [vmem:[%s3055_s27 + $0x208] sm:$0xff]  ;;  %v379_v58 = vld [vmem:[%s3055_s27 + $0x200] sm:$0xff]  ;;  %v442_v62 = vld [vmem:[%s3055_s27 + $0x3f8] sm:$0xff]  ;;  %v496_v63 = vmax.f32 %v316_v53, 0.0  ;;  %v495_v3 = vmax.f32 %v315_v57, 0.0  ;;  %v558_v7 = vmax.f32 %v378_v61, 0.0 }
  0x49   : > { %1119 = vmatprep.subr.mxu1 %v572_v16  ;;  %911 = vmatpush1.msra.mxu0 %v507_v19  ;;  %v560_v0 = vmax.f32 %v380_v54, 0.0  ;;  %v377_v1 = vld [vmem:[%s3055_s27 + $0x1f0] sm:$0xff]  ;;  %v559_v4 = vmax.f32 %v379_v58, 0.0  ;;  %v376_v5 = vld [vmem:[%s3055_s27 + $0x1e8] sm:$0xff]  ;;  %v622_v8 = vmax.f32 %v442_v62, 0.0  ;;  %v375_v9 = vld [vmem:[%s3055_s27 + $0x1e0] sm:$0xff] }
  0x4a   : > { %1120 = vmatpush1.msra.mxu1 %v571_v20  ;;  %912 = vmatprep.subr.mxu0 %v506_v23  ;;  %v441_v2 = vld [vmem:[%s3055_s27 + $0x3f0] sm:$0xff]  ;;  %v440_v6 = vld [vmem:[%s3055_s27 + $0x3e8] sm:$0xff]  ;;  %v439_v10 = vld [vmem:[%s3055_s27 + $0x3e0] sm:$0xff]  ;;  %v557_v11 = vmax.f32 %v377_v1, 0.0  ;;  %v556_v15 = vmax.f32 %v376_v5, 0.0  ;;  %v555_v19 = vmax.f32 %v375_v9, 0.0 }
  0x4b   : > { %1121 = vmatprep.subr.mxu1 %v570_v24  ;;  %913 = vmatpush1.msra.mxu0 %v505_v27  ;;  %v621_v12 = vmax.f32 %v441_v2, 0.0  ;;  %v374_v13 = vld [vmem:[%s3055_s27 + $0x1d8] sm:$0xff]  ;;  %v620_v16 = vmax.f32 %v440_v6, 0.0  ;;  %v373_v17 = vld [vmem:[%s3055_s27 + $0x1d0] sm:$0xff]  ;;  %v619_v20 = vmax.f32 %v439_v10, 0.0  ;;  %v372_v21 = vld [vmem:[%s3055_s27 + $0x1c8] sm:$0xff] }
  0x4c   : > { %1122 = vmatpush1.msra.mxu1 %v569_v28  ;;  %914 = vmatprep.subr.mxu0 %v504_v31  ;;  %v438_v14 = vld [vmem:[%s3055_s27 + $0x3d8] sm:$0xff]  ;;  %v437_v18 = vld [vmem:[%s3055_s27 + $0x3d0] sm:$0xff]  ;;  %v436_v22 = vld [vmem:[%s3055_s27 + $0x3c8] sm:$0xff]  ;;  %v554_v23 = vmax.f32 %v374_v13, 0.0  ;;  %v553_v27 = vmax.f32 %v373_v17, 0.0  ;;  %v552_v31 = vmax.f32 %v372_v21, 0.0 }
  0x4d   : > { %1123 = vmatprep.subr.mxu1 %v568_v32  ;;  %915 = vmatpush1.msra.mxu0 %v503_v35  ;;  %v618_v24 = vmax.f32 %v438_v14, 0.0  ;;  %v371_v25 = vld [vmem:[%s3055_s27 + $0x1c0] sm:$0xff]  ;;  %v617_v28 = vmax.f32 %v437_v18, 0.0  ;;  %v370_v29 = vld [vmem:[%s3055_s27 + $0x1b8] sm:$0xff]  ;;  %v616_v32 = vmax.f32 %v436_v22, 0.0  ;;  %v369_v33 = vld [vmem:[%s3055_s27 + $0x1b0] sm:$0xff] }
  0x4e   : > { %1124 = vmatpush1.msra.mxu1 %v567_v36  ;;  %916 = vmatprep.subr.mxu0 %v502_v39  ;;  %v435_v26 = vld [vmem:[%s3055_s27 + $0x3c0] sm:$0xff]  ;;  %v434_v30 = vld [vmem:[%s3055_s27 + $0x3b8] sm:$0xff]  ;;  %v433_v34 = vld [vmem:[%s3055_s27 + $0x3b0] sm:$0xff]  ;;  %v551_v35 = vmax.f32 %v371_v25, 0.0  ;;  %v550_v39 = vmax.f32 %v370_v29, 0.0 }
  0x4f   : > { %1125 = vmatprep.subr.mxu1 %v566_v40  ;;  %917 = vmatpush1.msra.mxu0 %v501_v43  ;;  %v615_v36 = vmax.f32 %v435_v26, 0.0  ;;  %v368_v37 = vld [vmem:[%s3055_s27 + $0x1a8] sm:$0xff]  ;;  %v614_v40 = vmax.f32 %v434_v30, 0.0  ;;  %v367_v41 = vld [vmem:[%s3055_s27 + $0x1a0] sm:$0xff]  ;;  %v549_v43 = vmax.f32 %v369_v33, 0.0  ;;  %v366_v45 = vld [vmem:[%s3055_s27 + $0x198] sm:$0xff] }
  0x50   : > { %1126 = vmatpush1.msra.mxu1 %v565_v44  ;;  %918 = vmatprep.subr.mxu0 %v500_v47  ;;  %v432_v38 = vld [vmem:[%s3055_s27 + $0x3a8] sm:$0xff]  ;;  %v431_v42 = vld [vmem:[%s3055_s27 + $0x3a0] sm:$0xff]  ;;  %v613_v44 = vmax.f32 %v433_v34, 0.0  ;;  %v430_v46 = vld [vmem:[%s3055_s27 + $0x398] sm:$0xff]  ;;  %v548_v47 = vmax.f32 %v368_v37, 0.0 }
  0x51   : > { %1127 = vmatprep.subr.mxu1 %v564_v48  ;;  %919 = vmatpush1.msra.mxu0 %v499_v51  ;;  %v612_v48 = vmax.f32 %v432_v38, 0.0  ;;  %v365_v49 = vld [vmem:[%s3055_s27 + $0x190] sm:$0xff]  ;;  %v547_v51 = vmax.f32 %v367_v41, 0.0  ;;  %v364_v53 = vld [vmem:[%s3055_s27 + $0x188] sm:$0xff]  ;;  %v363_v57 = vld [vmem:[%s3055_s27 + $0x180] sm:$0xff] }
  0x52   : > { %1128 = vmatpush1.msra.mxu1 %v563_v52  ;;  %920 = vmatprep.subr.mxu0 %v498_v55  ;;  %v429_v50 = vld [vmem:[%s3055_s27 + $0x390] sm:$0xff]  ;;  %v611_v52 = vmax.f32 %v431_v42, 0.0  ;;  %v428_v54 = vld [vmem:[%s3055_s27 + $0x388] sm:$0xff]  ;;  %v546_v55 = vmax.f32 %v366_v45, 0.0  ;;  %v427_v58 = vld [vmem:[%s3055_s27 + $0x380] sm:$0xff] }
  0x53   : > { %1129 = vmatprep.subr.mxu1 %v562_v56  ;;  %921 = vmatpush1.msra.mxu0 %v497_v59  ;;  %v610_v56 = vmax.f32 %v430_v46, 0.0  ;;  %v545_v59 = vmax.f32 %v365_v49, 0.0  ;;  %v362_v61 = vld [vmem:[%s3055_s27 + $0x178] sm:$0xff]  ;;  %v361_v1 = vld [vmem:[%s3055_s27 + $0x170] sm:$0xff]  ;;  %v360_v5 = vld [vmem:[%s3055_s27 + $0x168] sm:$0xff] }
  0x54   : > { %1130 = vmatpush1.msra.mxu1 %v561_v60  ;;  %922 = vmatprep.subr.mxu0 %v496_v63  ;;  %v609_v60 = vmax.f32 %v429_v50, 0.0  ;;  %v426_v62 = vld [vmem:[%s3055_s27 + $0x378] sm:$0xff]  ;;  %v544_v63 = vmax.f32 %v364_v53, 0.0  ;;  %v425_v2 = vld [vmem:[%s3055_s27 + $0x370] sm:$0xff]  ;;  %v424_v6 = vld [vmem:[%s3055_s27 + $0x368] sm:$0xff] }
  0x55   : > { %1131 = vmatprep.subr.mxu1 %v560_v0  ;;  %923 = vmatpush1.msra.mxu0 %v495_v3  ;;  %v608_v0 = vmax.f32 %v428_v54, 0.0  ;;  %v543_v3 = vmax.f32 %v363_v57, 0.0  ;;  %v359_v9 = vld [vmem:[%s3055_s27 + $0x160] sm:$0xff]  ;;  %v358_v13 = vld [vmem:[%s3055_s27 + $0x158] sm:$0xff]  ;;  %v357_v17 = vld [vmem:[%s3055_s27 + $0x150] sm:$0xff] }
  0x56   : > { %1132 = vmatpush1.msra.mxu1 %v559_v4  ;;  %924 = vmatprep.subr.mxu0 %v558_v7  ;;  %v607_v4 = vmax.f32 %v427_v58, 0.0  ;;  %v542_v7 = vmax.f32 %v362_v61, 0.0  ;;  %v423_v10 = vld [vmem:[%s3055_s27 + $0x360] sm:$0xff]  ;;  %v422_v14 = vld [vmem:[%s3055_s27 + $0x358] sm:$0xff]  ;;  %v421_v18 = vld [vmem:[%s3055_s27 + $0x350] sm:$0xff] }
  0x57   : > { %1133 = vmatprep.subr.mxu1 %v622_v8  ;;  %925 = vmatpush2.msra.mxu0 %v557_v11  ;;  %v606_v8 = vmax.f32 %v426_v62, 0.0  ;;  %v541_v11 = vmax.f32 %v361_v1, 0.0  ;;  %v356_v21 = vld [vmem:[%s3055_s27 + $0x148] sm:$0xff]  ;;  %v355_v25 = vld [vmem:[%s3055_s27 + $0x140] sm:$0xff]  ;;  %v354_v29 = vld [vmem:[%s3055_s27 + $0x138] sm:$0xff] }
  0x58   : > { %1134 = vmatpush2.msra.mxu1 %v621_v12  ;;  %926 = vmatprep.subr.mxu0 %v556_v15  ;;  %v605_v12 = vmax.f32 %v425_v2, 0.0  ;;  %v540_v15 = vmax.f32 %v360_v5, 0.0  ;;  %v420_v22 = vld [vmem:[%s3055_s27 + $0x348] sm:$0xff]  ;;  %v419_v26 = vld [vmem:[%s3055_s27 + $0x340] sm:$0xff]  ;;  %v418_v30 = vld [vmem:[%s3055_s27 + $0x338] sm:$0xff] }
  0x59   : > { %1135 = vmatprep.subr.mxu1 %v620_v16  ;;  %927 = vmatpush2.msra.mxu0 %v555_v19  ;;  %v604_v16 = vmax.f32 %v424_v6, 0.0  ;;  %v539_v19 = vmax.f32 %v359_v9, 0.0  ;;  %v353_v33 = vld [vmem:[%s3055_s27 + $0x130] sm:$0xff]  ;;  %v352_v37 = vld [vmem:[%s3055_s27 + $0x128] sm:$0xff]  ;;  %v351_v41 = vld [vmem:[%s3055_s27 + $0x120] sm:$0xff] }
  0x5a   : > { %1136 = vmatpush2.msra.mxu1 %v619_v20  ;;  %928 = vmatprep.subr.mxu0 %v554_v23  ;;  %v603_v20 = vmax.f32 %v423_v10, 0.0  ;;  %v538_v23 = vmax.f32 %v358_v13, 0.0  ;;  %v417_v34 = vld [vmem:[%s3055_s27 + $0x330] sm:$0xff]  ;;  %v416_v38 = vld [vmem:[%s3055_s27 + $0x328] sm:$0xff]  ;;  %v415_v42 = vld [vmem:[%s3055_s27 + $0x320] sm:$0xff] }
  0x5b   : > { %1137 = vmatprep.subr.mxu1 %v618_v24  ;;  %929 = vmatpush2.msra.mxu0 %v553_v27  ;;  %v602_v24 = vmax.f32 %v422_v14, 0.0  ;;  %v537_v27 = vmax.f32 %v357_v17, 0.0  ;;  %v350_v45 = vld [vmem:[%s3055_s27 + $0x118] sm:$0xff]  ;;  %v349_v49 = vld [vmem:[%s3055_s27 + $0x110] sm:$0xff]  ;;  %v348_v53 = vld [vmem:[%s3055_s27 + $0x108] sm:$0xff] }
  0x5c   : > { %1138 = vmatpush2.msra.mxu1 %v617_v28  ;;  %930 = vmatprep.subr.mxu0 %v552_v31  ;;  %v601_v28 = vmax.f32 %v421_v18, 0.0  ;;  %v536_v31 = vmax.f32 %v356_v21, 0.0  ;;  %v414_v46 = vld [vmem:[%s3055_s27 + $0x318] sm:$0xff]  ;;  %v413_v50 = vld [vmem:[%s3055_s27 + $0x310] sm:$0xff]  ;;  %v412_v54 = vld [vmem:[%s3055_s27 + $0x308] sm:$0xff]  ;;  %v529_v58 = vmax.f32 %v349_v49, 0.0 }
  0x5d   : > { %1139 = vmatprep.subr.mxu1 %v616_v32  ;;  %931 = vmatpush2.msra.mxu0 %v551_v35  ;;  %v600_v32 = vmax.f32 %v420_v22, 0.0  ;;  %v535_v35 = vmax.f32 %v355_v25, 0.0  ;;  %v347_v57 = vld [vmem:[%s3055_s27 + $0x100] sm:$0xff]  ;;  %v528_v61 = vmax.f32 %v348_v53, 0.0  ;;  %v592_v62 = vmax.f32 %v412_v54, 0.0  ;;  %v676_v1 = vld [vmem:[%s4757_s1 + $0x8] sm:$0xff] }
  0x5e   : > { %1140 = vmatpush2.msra.mxu1 %v615_v36  ;;  %932 = vmatprep.subr.mxu0 %v550_v39  ;;  %v599_v36 = vmax.f32 %v419_v26, 0.0  ;;  %v534_v39 = vmax.f32 %v354_v29, 0.0  ;;  %v675_v5 = vld [vmem:[%s4757_s1] sm:$0xff]  ;;  %v677_v6 = vld [vmem:[%s4757_s1 + $0x10] sm:$0xff]  ;;  %v472_v9 = vld [vmem:[%s3055_s27 + $0x4e8] sm:$0xff] }
  0x5f   : > { %1141 = vmatprep.subr.mxu1 %v614_v40  ;;  %933 = vmatpush2.msra.mxu0 %v549_v43  ;;  %v598_v40 = vmax.f32 %v418_v30, 0.0  ;;  %v533_v43 = vmax.f32 %v353_v33, 0.0  ;;  %v471_v10 = vld [vmem:[%s3055_s27 + $0x4e0] sm:$0xff]  ;;  %v681_v13 = vld [vmem:[%s4757_s1 + $0x30] sm:$0xff]  ;;  %v470_v17 = vld [vmem:[%s3055_s27 + $0x4d8] sm:$0xff] }
  0x60   : > { %1142 = vmatpush2.msra.mxu1 %v613_v44  ;;  %934 = vmatprep.subr.mxu0 %v548_v47  ;;  %v597_v44 = vmax.f32 %v417_v34, 0.0  ;;  %v532_v47 = vmax.f32 %v352_v37, 0.0  ;;  %v683_v14 = vld [vmem:[%s4757_s1 + $0x40] sm:$0xff]  ;;  %v469_v18 = vld [vmem:[%s3055_s27 + $0x4d0] sm:$0xff]  ;;  %v468_v25 = vld [vmem:[%s3055_s27 + $0x4c8] sm:$0xff] }
  0x61   : > { %1143 = vmatprep.subr.mxu1 %v612_v48  ;;  %935 = vmatpush2.msra.mxu0 %v547_v51  ;;  %v596_v48 = vmax.f32 %v416_v38, 0.0  ;;  %v531_v51 = vmax.f32 %v351_v41, 0.0  ;;  %v687_v21 = vld [vmem:[%s4757_s1 + $0x60] sm:$0xff]  ;;  %v689_v22 = vld [vmem:[%s4757_s1 + $0x70] sm:$0xff]  ;;  %v464_v38 = vld [vmem:[%s3055_s27 + $0x4a8] sm:$0xff] }
  0x62   : > { %1144 = vmatpush2.msra.mxu1 %v611_v52  ;;  %936 = vmatprep.subr.mxu0 %v546_v55  ;;  %v595_v52 = vmax.f32 %v415_v42, 0.0  ;;  %v530_v55 = vmax.f32 %v350_v45, 0.0  ;;  %v467_v26 = vld [vmem:[%s3055_s27 + $0x4c0] sm:$0xff]  ;;  %v693_v29 = vld [vmem:[%s4757_s1 + $0x90] sm:$0xff]  ;;  %v644_v45 = vmax.f32 %v464_v38, 0.0  ;;  %v460_v54 = vld [vmem:[%s3055_s27 + $0x488] sm:$0xff] }
  0x63   : > { %1145 = vmatprep.subr.mxu1 %v610_v56  ;;  %937 = vmatpush2.msra.mxu0 %v545_v59  ;;  %v594_v56 = vmax.f32 %v414_v46, 0.0  ;;  %v593_v59 = vmax.f32 %v413_v50, 0.0  ;;  %v695_v30 = vld [vmem:[%s4757_s1 + $0xa0] sm:$0xff]  ;;  %v647_v33 = vmax.f32 %v467_v26, 0.0  ;;  %v465_v34 = vld [vmem:[%s3055_s27 + $0x4b0] sm:$0xff]  ;;  %v462_v46 = vld [vmem:[%s3055_s27 + $0x498] sm:$0xff] }
  0x64   : > { %1146 = vmatpush2.msra.mxu1 %v609_v60  ;;  %938 = vmatprep.subr.mxu0 %v544_v63  ;;  %v411_v60 = vld [vmem:[%s3055_s27 + $0x300] sm:$0xff]  ;;  %v527_v63 = vmax.f32 %v347_v57, 0.0  ;;  %v645_v41 = vmax.f32 %v465_v34, 0.0  ;;  %v461_v50 = vld [vmem:[%s3055_s27 + $0x490] sm:$0xff]  ;;  %v642_v53 = vmax.f32 %v462_v46, 0.0 }
  0x65   : > { %1147 = vmatprep.subr.mxu1 %v608_v0  ;;  %939 = vmatpush2.msra.mxu0 %v543_v3  ;;  %v474_v0 = vld [vmem:[%s3055_s27 + $0x4f8] sm:$0xff]  ;;  %v591_v2 = vmax.f32 %v411_v60, 0.0  ;;  %v473_v3 = vld [vmem:[%s3055_s27 + $0x4f0] sm:$0xff]  ;;  %v463_v42 = vld [vmem:[%s3055_s27 + $0x4a0] sm:$0xff]  ;;  %v641_v57 = vmax.f32 %v461_v50, 0.0 }
  0x66   : > { %1148 = vmatpush2.msra.mxu1 %v607_v4  ;;  %940 = vmatprep.subr.mxu0 %v542_v7  ;;  %v678_v4 = vld [vmem:[%s4757_s1 + $0x18] sm:$0xff]  ;;  %v654_v7 = vmax.f32 %v474_v0, 0.0  ;;  %v643_v49 = vmax.f32 %v463_v42, 0.0  ;;  %v457_v0 = vld [vmem:[%s3055_s27 + $0x470] sm:$0xff]  ;;  %v743_v34 = vld [vmem:[%s4757_s1 + $0x220] sm:$0xff] }
  0x67   : > { %1149 = vmatprep.subr.mxu1 %v606_v8  ;;  %941 = vmatpush2.msra.mxu0 %v541_v11  ;;  %v653_v8 = vmax.f32 %v473_v3, 0.0  ;;  %v682_v11 = vld [vmem:[%s4757_s1 + $0x38] sm:$0xff]  ;;  %v737_v26 = vld [vmem:[%s4757_s1 + $0x1f0] sm:$0xff]  ;;  %v447_v38 = vld [vmem:[%s3055_s27 + $0x420] sm:$0xff] }
  0x68   : > { %1150 = vmatpush2.msra.mxu1 %v605_v12  ;;  %942 = vmatprep.subr.mxu0 %v540_v15  ;;  %v684_v12 = vld [vmem:[%s4757_s1 + $0x48] sm:$0xff]  ;;  %v652_v15 = vmax.f32 %v472_v9, 0.0  ;;  %v458_v60 = vld [vmem:[%s3055_s27 + $0x478] sm:$0xff]  ;;  %v723_v9 = vld [vmem:[%s4757_s1 + $0x180] sm:$0xff] }
  0x69   : > { %1151 = vmatprep.subr.mxu1 %v604_v16  ;;  %943 = vmatpush2.msra.mxu0 %v539_v19  ;;  %v651_v16 = vmax.f32 %v471_v10, 0.0  ;;  %v688_v19 = vld [vmem:[%s4757_s1 + $0x68] sm:$0xff]  ;;  %v638_v3 = vmax.f32 %v458_v60, 0.0  ;;  %v725_v10 = vld [vmem:[%s4757_s1 + $0x190] sm:$0xff]  ;;  %v755_v50 = vld [vmem:[%s4757_s1 + $0x280] sm:$0xff] }
  0x6a   : > { %1152 = vmatpush2.msra.mxu1 %v603_v20  ;;  %944 = vmatprep.subr.mxu0 %v538_v23  ;;  %v690_v20 = vld [vmem:[%s4757_s1 + $0x78] sm:$0xff]  ;;  %v650_v23 = vmax.f32 %v470_v17, 0.0  ;;  %v729_v17 = vld [vmem:[%s4757_s1 + $0x1b0] sm:$0xff] }
  0x6b   : > { %1153 = vmatprep.subr.mxu1 %v602_v24  ;;  %945 = vmatpush2.msra.mxu0 %v537_v27  ;;  %v649_v24 = vmax.f32 %v469_v18, 0.0  ;;  %v694_v27 = vld [vmem:[%s4757_s1 + $0x98] sm:$0xff]  ;;  %v731_v18 = vld [vmem:[%s4757_s1 + $0x1c0] sm:$0xff]  ;;  %v749_v42 = vld [vmem:[%s4757_s1 + $0x250] sm:$0xff] }
  0x6c   : > { %1154 = vmatpush2.msra.mxu1 %v601_v28  ;;  %946 = vmatprep.subr.mxu0 %v536_v31  ;;  %v696_v28 = vld [vmem:[%s4757_s1 + $0xa8] sm:$0xff]  ;;  %v648_v31 = vmax.f32 %v468_v25, 0.0  ;;  %v735_v25 = vld [vmem:[%s4757_s1 + $0x1e0] sm:$0xff]  ;;  %v445_v46 = vld [vmem:[%s3055_s27 + $0x410] sm:$0xff] }
  0x6d   : > { %1155 = vmatprep.subr.mxu1 %v600_v32  ;;  %947 = vmatpush2.msra.mxu0 %v535_v35  ;;  %v466_v32 = vld [vmem:[%s3055_s27 + $0x4b8] sm:$0xff]  ;;  %v700_v35 = vld [vmem:[%s4757_s1 + $0xc8] sm:$0xff] }
  0x6e   : > { %1156 = vmatpush2.msra.mxu1 %v599_v36  ;;  %948 = vmatprep.subr.mxu0 %v534_v39  ;;  %v702_v36 = vld [vmem:[%s4757_s1 + $0xd8] sm:$0xff]  ;;  %v646_v37 = vmax.f32 %v466_v32, 0.0  ;;  %v699_v39 = vld [vmem:[%s4757_s1 + $0xc0] sm:$0xff]  ;;  %v744_v32 = vld [vmem:[%s4757_s1 + $0x228] sm:$0xff] }
  0x6f   : > { %1157 = vmatprep.subr.mxu1 %v598_v40  ;;  %949 = vmatpush2.msra.mxu0 %v533_v43  ;;  %v701_v40 = vld [vmem:[%s4757_s1 + $0xd0] sm:$0xff]  ;;  %v706_v43 = vld [vmem:[%s4757_s1 + $0xf8] sm:$0xff] }
  0x70   : > { %1158 = vmatpush2.msra.mxu1 %v597_v44  ;;  %950 = vmatprep.subr.mxu0 %v532_v47  ;;  %v708_v44 = vld [vmem:[%s4757_s1 + $0x108] sm:$0xff]  ;;  %v705_v47 = vld [vmem:[%s4757_s1 + $0xf0] sm:$0xff] }
  0x71   : > { %1159 = vmatprep.subr.mxu1 %v596_v48  ;;  %951 = vmatpush2.msra.mxu0 %v531_v51  ;;  %v707_v48 = vld [vmem:[%s4757_s1 + $0x100] sm:$0xff]  ;;  %v712_v51 = vld [vmem:[%s4757_s1 + $0x128] sm:$0xff] }
  0x72   : > { %1160 = vmatpush2.msra.mxu1 %v595_v52  ;;  %952 = vmatprep.subr.mxu0 %v530_v55  ;;  %v714_v52 = vld [vmem:[%s4757_s1 + $0x138] sm:$0xff]  ;;  %v711_v55 = vld [vmem:[%s4757_s1 + $0x120] sm:$0xff] }
  0x73   : > { %1161 = vmatprep.subr.mxu1 %v594_v56  ;;  %953 = vmatpush2.msra.mxu0 %v529_v58  ;;  %v713_v56 = vld [vmem:[%s4757_s1 + $0x130] sm:$0xff]  ;;  %v459_v58 = vld [vmem:[%s3055_s27 + $0x480] sm:$0xff] }
  0x74   : > { %1162 = vmatpush2.msra.mxu1 %v593_v59  ;;  %954 = vmatprep.subr.mxu0 %v528_v61  ;;  %v640_v59 = vmax.f32 %v460_v54, 0.0  ;;  %v718_v61 = vld [vmem:[%s4757_s1 + $0x158] sm:$0xff]  ;;  %v443_v54 = vld [vmem:[%s3055_s27 + $0x400] sm:$0xff] }
  0x75   : > { %1163 = vmatprep.subr.mxu1 %v592_v62  ;;  %955 = vmatpush2.msra.mxu0 %v527_v63  ;;  %v720_v62 = vld [vmem:[%s4757_s1 + $0x168] sm:$0xff]  ;;  %v639_v63 = vmax.f32 %v459_v58, 0.0  ;;  %v761_v58 = vld [vmem:[%s4757_s1 + $0x2b0] sm:$0xff]  ;;  %v623_v60 = vmax.f32 %v443_v54, 0.0  ;;  %v803_v54 = vld [vmem:[%s4757_s1 + $0x400] sm:$0xff] }
  0x76   : > { %956 = vmatprep.mubr.f32.mxu0 %v676_v1  ;;  %1164 = vmatpush2.msra.mxu1 %v591_v2  ;;  %v717_v1 = vld [vmem:[%s4757_s1 + $0x150] sm:$0xff]  ;;  %v719_v2 = vld [vmem:[%s4757_s1 + $0x160] sm:$0xff] }
  0x77   : > { %1165 = vmatprep.mubr.f32.mxu1 %v678_v4  ;;  %957 = vmatmul.mubr.f32.vlgmr.msra.gmra.mxu0 %v675_v5  ;;  %v456_v4 = vld [vmem:[%s3055_s27 + $0x468] sm:$0xff] }
  0x78   : > { %1166 = vmatmul.mubr.f32.vlgmr.msra.gmra.mxu1 %v677_v6  ;;  %1310 = vmatprep.subr.mxu0 %v654_v7  ;;  %v724_v5 = vld [vmem:[%s4757_s1 + $0x188] sm:$0xff]  ;;  %v726_v6 = vld [vmem:[%s4757_s1 + $0x198] sm:$0xff] }
  0x79   : > { %2798 = vmatprep.subr.mxu1 %v654_v7  ;;  %1311 = vmatpush1.msra.mxu0 %v653_v8  ;;  %v637_v7 = vmax.f32 %v457_v0, 0.0  ;;  %v768_v0 = vld [vmem:[%s4757_s1 + $0x2e8] sm:$0xff] }
  0x7a   : > { %2824 = vmatpush1.msra.mxu1 %v653_v8  ;;  %962 = vmatprep.mubr.f32.mxu0 %v682_v11  ;;  %v455_v8 = vld [vmem:[%s3055_s27 + $0x460] sm:$0xff]  ;;  %v636_v11 = vmax.f32 %v456_v4, 0.0  ;;  %v492_v4 = vld [vmem:[%s3055_s27 + $0x588] sm:$0xff] }
  0x7b   : > { %1171 = vmatprep.mubr.f32.mxu1 %v684_v12  ;;  %963 = vmatmul.mubr.f32.gmra.mxu0 %v681_v13  ;;  %v454_v12 = vld [vmem:[%s3055_s27 + $0x458] sm:$0xff] }
  0x7c   : > { %1172 = vmatmul.mubr.f32.gmra.mxu1 %v683_v14  ;;  %1312 = vmatprep.subr.mxu0 %v652_v15  ;;  %v730_v13 = vld [vmem:[%s4757_s1 + $0x1b8] sm:$0xff]  ;;  %v732_v14 = vld [vmem:[%s4757_s1 + $0x1c8] sm:$0xff] }
  0x7d   : > { %2799 = vmatprep.subr.mxu1 %v652_v15  ;;  %1313 = vmatpush1.msra.mxu0 %v651_v16  ;;  %v635_v15 = vmax.f32 %v455_v8, 0.0  ;;  %v774_v8 = vld [vmem:[%s4757_s1 + $0x318] sm:$0xff] }
  0x7e   : > { %2825 = vmatpush1.msra.mxu1 %v651_v16  ;;  %968 = vmatprep.mubr.f32.mxu0 %v688_v19  ;;  %v453_v16 = vld [vmem:[%s3055_s27 + $0x450] sm:$0xff]  ;;  %v634_v19 = vmax.f32 %v454_v12, 0.0 }
  0x7f   : > { %1177 = vmatprep.mubr.f32.mxu1 %v690_v20  ;;  %969 = vmatmul.mubr.f32.gmra.mxu0 %v687_v21  ;;  %v633_v20 = vmax.f32 %v453_v16, 0.0  ;;  %v452_v21 = vld [vmem:[%s3055_s27 + $0x448] sm:$0xff]  ;;  %v773_v12 = vld [vmem:[%s4757_s1 + $0x310] sm:$0xff] }
  0x80   : > { %1178 = vmatmul.mubr.f32.gmra.mxu1 %v689_v22  ;;  %1314 = vmatprep.subr.mxu0 %v650_v23  ;;  %v451_v22 = vld [vmem:[%s3055_s27 + $0x440] sm:$0xff]  ;;  %v780_v16 = vld [vmem:[%s4757_s1 + $0x348] sm:$0xff] }
  0x81   : > { %2800 = vmatprep.subr.mxu1 %v650_v23  ;;  %1315 = vmatpush1.msra.mxu0 %v649_v24  ;;  %v736_v23 = vld [vmem:[%s4757_s1 + $0x1e8] sm:$0xff] }
  0x82   : > { %2826 = vmatpush1.msra.mxu1 %v649_v24  ;;  %974 = vmatprep.mubr.f32.mxu0 %v694_v27  ;;  %v738_v24 = vld [vmem:[%s4757_s1 + $0x1f8] sm:$0xff]  ;;  %v632_v27 = vmax.f32 %v452_v21, 0.0 }
  0x83   : > { %1183 = vmatprep.mubr.f32.mxu1 %v696_v28  ;;  %975 = vmatmul.mubr.f32.gmra.mxu0 %v693_v29  ;;  %v631_v28 = vmax.f32 %v451_v22, 0.0  ;;  %v450_v29 = vld [vmem:[%s3055_s27 + $0x438] sm:$0xff]  ;;  %v487_v22 = vld [vmem:[%s3055_s27 + $0x560] sm:$0xff] }
  0x84   : > { %1184 = vmatmul.mubr.f32.gmra.mxu1 %v695_v30  ;;  %1316 = vmatprep.subr.mxu0 %v648_v31  ;;  %v449_v30 = vld [vmem:[%s3055_s27 + $0x430] sm:$0xff] }
  0x85   : > { %2801 = vmatprep.subr.mxu1 %v648_v31  ;;  %1317 = vmatpush1.msra.mxu0 %v647_v33  ;;  %v742_v31 = vld [vmem:[%s4757_s1 + $0x218] sm:$0xff] }
  0x86   : > { %2827 = vmatpush1.msra.mxu1 %v647_v33  ;;  %980 = vmatprep.mubr.f32.mxu0 %v700_v35  ;;  %v741_v33 = vld [vmem:[%s4757_s1 + $0x210] sm:$0xff]  ;;  %v630_v35 = vmax.f32 %v450_v29, 0.0  ;;  %v667_v29 = vmax.f32 %v487_v22, 0.0  ;;  %v770_v22 = vld [vmem:[%s4757_s1 + $0x2f8] sm:$0xff] }
  0x87   : > { %1189 = vmatprep.mubr.f32.mxu1 %v702_v36  ;;  %1318 = vmatprep.subr.mxu0 %v646_v37  ;;  %v629_v36 = vmax.f32 %v449_v30, 0.0  ;;  %v485_v30 = vld [vmem:[%s3055_s27 + $0x550] sm:$0xff] }
  0x88   : > { %2802 = vmatprep.subr.mxu1 %v646_v37  ;;  %981 = vmatmul.mubr.f32.gmra.mxu0 %v699_v39  ;;  %v448_v37 = vld [vmem:[%s3055_s27 + $0x428] sm:$0xff] }
  0x89   : > { %1190 = vmatmul.mubr.f32.gmra.mxu1 %v701_v40  ;;  %1319 = vmatpush1.msra.mxu0 %v645_v41  ;;  %v748_v39 = vld [vmem:[%s4757_s1 + $0x248] sm:$0xff]  ;;  %v750_v40 = vld [vmem:[%s4757_s1 + $0x258] sm:$0xff] }
  0x8a   : > { %2828 = vmatpush1.msra.mxu1 %v645_v41  ;;  %986 = vmatprep.mubr.f32.mxu0 %v706_v43  ;;  %v747_v41 = vld [vmem:[%s4757_s1 + $0x240] sm:$0xff]  ;;  %v628_v43 = vmax.f32 %v448_v37, 0.0  ;;  %v789_v37 = vld [vmem:[%s4757_s1 + $0x390] sm:$0xff] }
  0x8b   : > { %1195 = vmatprep.mubr.f32.mxu1 %v708_v44  ;;  %1320 = vmatprep.subr.mxu0 %v644_v45  ;;  %v627_v44 = vmax.f32 %v447_v38, 0.0  ;;  %v791_v38 = vld [vmem:[%s4757_s1 + $0x3a0] sm:$0xff] }
  0x8c   : > { %2803 = vmatprep.subr.mxu1 %v644_v45  ;;  %987 = vmatmul.mubr.f32.gmra.mxu0 %v705_v47  ;;  %v446_v45 = vld [vmem:[%s3055_s27 + $0x418] sm:$0xff] }
  0x8d   : > { %1196 = vmatmul.mubr.f32.gmra.mxu1 %v707_v48  ;;  %1321 = vmatpush1.msra.mxu0 %v643_v49  ;;  %v754_v47 = vld [vmem:[%s4757_s1 + $0x278] sm:$0xff]  ;;  %v756_v48 = vld [vmem:[%s4757_s1 + $0x288] sm:$0xff] }
  0x8e   : > { %2829 = vmatpush1.msra.mxu1 %v643_v49  ;;  %992 = vmatprep.mubr.f32.mxu0 %v712_v51  ;;  %v753_v49 = vld [vmem:[%s4757_s1 + $0x270] sm:$0xff]  ;;  %v626_v51 = vmax.f32 %v446_v45, 0.0  ;;  %v795_v45 = vld [vmem:[%s4757_s1 + $0x3c0] sm:$0xff] }
  0x8f   : > { %1201 = vmatprep.mubr.f32.mxu1 %v714_v52  ;;  %1322 = vmatprep.subr.mxu0 %v642_v53  ;;  %v625_v52 = vmax.f32 %v445_v46, 0.0  ;;  %v797_v46 = vld [vmem:[%s4757_s1 + $0x3d0] sm:$0xff] }
  0x90   : > { %2804 = vmatprep.subr.mxu1 %v642_v53  ;;  %993 = vmatmul.mubr.f32.gmra.mxu0 %v711_v55  ;;  %v444_v53 = vld [vmem:[%s3055_s27 + $0x408] sm:$0xff] }
  0x91   : > { %1202 = vmatmul.mubr.f32.gmra.mxu1 %v713_v56  ;;  %1323 = vmatpush1.msra.mxu0 %v641_v57  ;;  %v760_v55 = vld [vmem:[%s4757_s1 + $0x2a8] sm:$0xff]  ;;  %v762_v56 = vld [vmem:[%s4757_s1 + $0x2b8] sm:$0xff] }
  0x92   : > { %2830 = vmatpush1.msra.mxu1 %v641_v57  ;;  %1324 = vmatprep.subr.mxu0 %v640_v59  ;;  %v759_v57 = vld [vmem:[%s4757_s1 + $0x2a0] sm:$0xff] }
  0x93   : > { %2805 = vmatprep.subr.mxu1 %v640_v59  ;;  %998 = vmatprep.mubr.f32.mxu0 %v718_v61  ;;  %v624_v59 = vmax.f32 %v444_v53, 0.0  ;;  %v494_v61 = vld [vmem:[%s3055_s27 + $0x598] sm:$0xff]  ;;  %v801_v53 = vld [vmem:[%s4757_s1 + $0x3f0] sm:$0xff] }
  0x94   : > { %1207 = vmatprep.mubr.f32.mxu1 %v720_v62  ;;  %1325 = vmatpush1.msra.mxu0 %v639_v63  ;;  %v493_v62 = vld [vmem:[%s3055_s27 + $0x590] sm:$0xff] }
  0x95   : > { %2831 = vmatpush1.msra.mxu1 %v639_v63  ;;  %999 = vmatmul.mubr.f32.gmra.mxu0 %v717_v1  ;;  %v766_v63 = vld [vmem:[%s4757_s1 + $0x2d8] sm:$0xff]  ;;  %v765_v1 = vld [vmem:[%s4757_s1 + $0x2d0] sm:$0xff] }
  0x96   : > { %1208 = vmatmul.mubr.f32.gmra.mxu1 %v719_v2  ;;  %1326 = vmatprep.subr.mxu0 %v638_v3  ;;  %v767_v2 = vld [vmem:[%s4757_s1 + $0x2e0] sm:$0xff] }
  0x97   : > { %2806 = vmatprep.subr.mxu1 %v638_v3  ;;  %1004 = vmatprep.mubr.f32.mxu0 %v724_v5  ;;  %v674_v3 = vmax.f32 %v494_v61, 0.0  ;;  %v673_v5 = vmax.f32 %v493_v62, 0.0  ;;  %v807_v61 = vld [vmem:[%s4757_s1 + $0x420] sm:$0xff]  ;;  %v809_v62 = vld [vmem:[%s4757_s1 + $0x430] sm:$0xff] }
  0x98   : > { %1213 = vmatprep.mubr.f32.mxu1 %v726_v6  ;;  %1327 = vmatpush1.msra.mxu0 %v637_v7  ;;  %v491_v6 = vld [vmem:[%s3055_s27 + $0x580] sm:$0xff] }
  0x99   : > { %2832 = vmatpush1.msra.mxu1 %v637_v7  ;;  %1005 = vmatmul.mubr.f32.gmra.mxu0 %v723_v9  ;;  %v772_v7 = vld [vmem:[%s4757_s1 + $0x308] sm:$0xff]  ;;  %v672_v9 = vmax.f32 %v492_v4, 0.0 }
  0x9a   : > { %1214 = vmatmul.mubr.f32.gmra.mxu1 %v725_v10  ;;  %1328 = vmatprep.subr.mxu0 %v636_v11  ;;  %v490_v10 = vld [vmem:[%s3055_s27 + $0x578] sm:$0xff]  ;;  %v816_v4 = vld [vmem:[%s4757_s1 + $0x468] sm:$0xff] }
  0x9b   : > { %2807 = vmatprep.subr.mxu1 %v636_v11  ;;  %1010 = vmatprep.mubr.f32.mxu0 %v730_v13  ;;  %v771_v11 = vld [vmem:[%s4757_s1 + $0x300] sm:$0xff]  ;;  %v671_v13 = vmax.f32 %v491_v6, 0.0 }
  0x9c   : > { %1219 = vmatprep.mubr.f32.mxu1 %v732_v14  ;;  %1329 = vmatpush1.msra.mxu0 %v635_v15  ;;  %v489_v14 = vld [vmem:[%s3055_s27 + $0x570] sm:$0xff]  ;;  %v815_v6 = vld [vmem:[%s4757_s1 + $0x460] sm:$0xff] }
  0x9d   : > { %2833 = vmatpush1.msra.mxu1 %v635_v15  ;;  %1011 = vmatmul.mubr.f32.gmra.mxu0 %v729_v17  ;;  %v778_v15 = vld [vmem:[%s4757_s1 + $0x338] sm:$0xff]  ;;  %v670_v17 = vmax.f32 %v490_v10, 0.0  ;;  %v669_v21 = vmax.f32 %v489_v14, 0.0  ;;  %v752_v10 = vld [vmem:[%s4757_s1 + $0x268] sm:$0xff] }
  0x9e   : > { %1220 = vmatmul.mubr.f32.gmra.mxu1 %v731_v18  ;;  %1330 = vmatprep.subr.mxu0 %v634_v19  ;;  %v488_v18 = vld [vmem:[%s3055_s27 + $0x568] sm:$0xff]  ;;  %v758_v14 = vld [vmem:[%s4757_s1 + $0x298] sm:$0xff] }
  0x9f   : > { %2808 = vmatprep.subr.mxu1 %v634_v19  ;;  %1331 = vmatpush1.msra.mxu0 %v633_v20  ;;  %v777_v19 = vld [vmem:[%s4757_s1 + $0x330] sm:$0xff] }
  0xa0   : > { %2834 = vmatpush1.msra.mxu1 %v633_v20  ;;  %1016 = vmatprep.mubr.f32.mxu0 %v736_v23  ;;  %v779_v20 = vld [vmem:[%s4757_s1 + $0x340] sm:$0xff]  ;;  %v784_v23 = vld [vmem:[%s4757_s1 + $0x368] sm:$0xff] }
  0xa1   : > { %1225 = vmatprep.mubr.f32.mxu1 %v738_v24  ;;  %1017 = vmatmul.mubr.f32.gmra.mxu0 %v735_v25  ;;  %v786_v24 = vld [vmem:[%s4757_s1 + $0x378] sm:$0xff]  ;;  %v668_v25 = vmax.f32 %v488_v18, 0.0  ;;  %v764_v18 = vld [vmem:[%s4757_s1 + $0x2c8] sm:$0xff] }
  0xa2   : > { %1226 = vmatmul.mubr.f32.gmra.mxu1 %v737_v26  ;;  %1332 = vmatprep.subr.mxu0 %v632_v27  ;;  %v486_v26 = vld [vmem:[%s3055_s27 + $0x558] sm:$0xff] }
  0xa3   : > { %2809 = vmatprep.subr.mxu1 %v632_v27  ;;  %1333 = vmatpush1.msra.mxu0 %v631_v28  ;;  %v783_v27 = vld [vmem:[%s4757_s1 + $0x360] sm:$0xff] }
  0xa4   : > { %2835 = vmatpush1.msra.mxu1 %v631_v28  ;;  %1022 = vmatprep.mubr.f32.mxu0 %v742_v31  ;;  %v785_v28 = vld [vmem:[%s4757_s1 + $0x370] sm:$0xff]  ;;  %v666_v31 = vmax.f32 %v486_v26, 0.0  ;;  %v776_v26 = vld [vmem:[%s4757_s1 + $0x328] sm:$0xff] }
  0xa5   : > { %1231 = vmatprep.mubr.f32.mxu1 %v744_v32  ;;  %1023 = vmatmul.mubr.f32.gmra.mxu0 %v741_v33  ;;  %v484_v32 = vld [vmem:[%s3055_s27 + $0x548] sm:$0xff]  ;;  %v790_v33 = vld [vmem:[%s4757_s1 + $0x398] sm:$0xff] }
  0xa6   : > { %1232 = vmatmul.mubr.f32.gmra.mxu1 %v743_v34  ;;  %1334 = vmatprep.subr.mxu0 %v630_v35  ;;  %v792_v34 = vld [vmem:[%s4757_s1 + $0x3a8] sm:$0xff] }
  0xa7   : > { %2810 = vmatprep.subr.mxu1 %v630_v35  ;;  %1335 = vmatpush1.msra.mxu0 %v629_v36  ;;  %v665_v35 = vmax.f32 %v485_v30, 0.0  ;;  %v782_v30 = vld [vmem:[%s4757_s1 + $0x358] sm:$0xff] }
  0xa8   : > { %2836 = vmatpush1.msra.mxu1 %v629_v36  ;;  %1028 = vmatprep.mubr.f32.mxu0 %v748_v39  ;;  %v483_v36 = vld [vmem:[%s3055_s27 + $0x540] sm:$0xff]  ;;  %v664_v39 = vmax.f32 %v484_v32, 0.0  ;;  %v781_v32 = vld [vmem:[%s4757_s1 + $0x350] sm:$0xff] }
  0xa9   : > { %1237 = vmatprep.mubr.f32.mxu1 %v750_v40  ;;  %1029 = vmatmul.mubr.f32.gmra.mxu0 %v747_v41  ;;  %v482_v40 = vld [vmem:[%s3055_s27 + $0x538] sm:$0xff]  ;;  %v796_v41 = vld [vmem:[%s4757_s1 + $0x3c8] sm:$0xff] }
  0xaa   : > { %1238 = vmatmul.mubr.f32.gmra.mxu1 %v749_v42  ;;  %1336 = vmatprep.subr.mxu0 %v628_v43  ;;  %v798_v42 = vld [vmem:[%s4757_s1 + $0x3d8] sm:$0xff] }
  0xab   : > { %2811 = vmatprep.subr.mxu1 %v628_v43  ;;  %1337 = vmatpush1.msra.mxu0 %v627_v44  ;;  %v663_v43 = vmax.f32 %v483_v36, 0.0  ;;  %v787_v36 = vld [vmem:[%s4757_s1 + $0x380] sm:$0xff] }
  0xac   : > { %2837 = vmatpush1.msra.mxu1 %v627_v44  ;;  %1034 = vmatprep.mubr.f32.mxu0 %v754_v47  ;;  %v481_v44 = vld [vmem:[%s3055_s27 + $0x530] sm:$0xff]  ;;  %v662_v47 = vmax.f32 %v482_v40, 0.0 }
  0xad   : > { %1243 = vmatprep.mubr.f32.mxu1 %v756_v48  ;;  %1035 = vmatmul.mubr.f32.gmra.mxu0 %v753_v49  ;;  %v480_v48 = vld [vmem:[%s3055_s27 + $0x528] sm:$0xff]  ;;  %v802_v49 = vld [vmem:[%s4757_s1 + $0x3f8] sm:$0xff]  ;;  %v793_v40 = vld [vmem:[%s4757_s1 + $0x3b0] sm:$0xff] }
  0xae   : > { %1244 = vmatmul.mubr.f32.gmra.mxu1 %v755_v50  ;;  %1338 = vmatprep.subr.mxu0 %v626_v51  ;;  %v804_v50 = vld [vmem:[%s4757_s1 + $0x408] sm:$0xff] }
  0xaf   : > { %2812 = vmatprep.subr.mxu1 %v626_v51  ;;  %1339 = vmatpush1.msra.mxu0 %v625_v52  ;;  %v661_v51 = vmax.f32 %v481_v44, 0.0  ;;  %v799_v44 = vld [vmem:[%s4757_s1 + $0x3e0] sm:$0xff] }
  0xb0   : > { %2838 = vmatpush1.msra.mxu1 %v625_v52  ;;  %1040 = vmatprep.mubr.f32.mxu0 %v760_v55  ;;  %v479_v52 = vld [vmem:[%s3055_s27 + $0x520] sm:$0xff]  ;;  %v660_v55 = vmax.f32 %v480_v48, 0.0  ;;  %v805_v48 = vld [vmem:[%s4757_s1 + $0x410] sm:$0xff] }
  0xb1   : > { %1249 = vmatprep.mubr.f32.mxu1 %v762_v56  ;;  %1041 = vmatmul.mubr.f32.gmra.mxu0 %v759_v57  ;;  %v659_v56 = vmax.f32 %v479_v52, 0.0  ;;  %v478_v57 = vld [vmem:[%s3055_s27 + $0x518] sm:$0xff]  ;;  %v811_v52 = vld [vmem:[%s4757_s1 + $0x440] sm:$0xff] }
  0xb2   : > { %1250 = vmatmul.mubr.f32.gmra.mxu1 %v761_v58  ;;  %1340 = vmatprep.subr.mxu0 %v624_v59  ;;  %v477_v58 = vld [vmem:[%s3055_s27 + $0x510] sm:$0xff] }
  0xb3   : > { %2813 = vmatprep.subr.mxu1 %v624_v59  ;;  %1341 = vmatpush1.msra.mxu0 %v623_v60  ;;  %v808_v59 = vld [vmem:[%s4757_s1 + $0x428] sm:$0xff] }
  0xb4   : > { %2839 = vmatpush1.msra.mxu1 %v623_v60  ;;  %1046 = vmatprep.mubr.f32.mxu0 %v766_v63  ;;  %v810_v60 = vld [vmem:[%s4757_s1 + $0x438] sm:$0xff]  ;;  %v658_v63 = vmax.f32 %v478_v57, 0.0 }
  0xb5   : > { %1255 = vmatprep.mubr.f32.mxu1 %v768_v0  ;;  %1047 = vmatmul.mubr.f32.gmra.mxu0 %v765_v1  ;;  %v657_v0 = vmax.f32 %v477_v58, 0.0  ;;  %v476_v1 = vld [vmem:[%s3055_s27 + $0x508] sm:$0xff] }
  0xb6   : > { %1256 = vmatmul.mubr.f32.gmra.mxu1 %v767_v2  ;;  %1354 = vmatprep.subr.mxu0 %v674_v3  ;;  %v475_v2 = vld [vmem:[%s3055_s27 + $0x500] sm:$0xff] }
  0xb7   : > { %2814 = vmatprep.subr.mxu1 %v674_v3  ;;  %1355 = vmatpush2.msra.mxu0 %v673_v5  ;;  %v814_v3 = vld [vmem:[%s4757_s1 + $0x458] sm:$0xff] }
  0xb8   : > { %2840 = vmatpush2.msra.mxu1 %v673_v5  ;;  %1052 = vmatprep.mubr.f32.mxu0 %v772_v7  ;;  %v813_v5 = vld [vmem:[%s4757_s1 + $0x450] sm:$0xff]  ;;  %v656_v7 = vmax.f32 %v476_v1, 0.0 }
  0xb9   : > { %1261 = vmatprep.mubr.f32.mxu1 %v774_v8  ;;  %1356 = vmatprep.subr.mxu0 %v672_v9  ;;  %v655_v8 = vmax.f32 %v475_v2, 0.0 }
  0xba   : > { %2815 = vmatprep.subr.mxu1 %v672_v9  ;;  %1053 = vmatmul.mubr.f32.gmra.mxu0 %v771_v11  ;;  %v680_v9 = vld [vmem:[%s4757_s1 + $0x28] sm:$0xff]  ;;  %v679_v11 = vld [vmem:[%s4757_s1 + $0x20] sm:$0xff] }
  0xbb   : > { %1262 = vmatmul.mubr.f32.gmra.mxu1 %v773_v12  ;;  %1357 = vmatpush2.msra.mxu0 %v671_v13  ;;  %v751_v12 = vld [vmem:[%s4757_s1 + $0x260] sm:$0xff] }
  0xbc   : > { %2841 = vmatpush2.msra.mxu1 %v671_v13  ;;  %1058 = vmatprep.mubr.f32.mxu0 %v778_v15  ;;  %v686_v13 = vld [vmem:[%s4757_s1 + $0x58] sm:$0xff]  ;;  %v685_v15 = vld [vmem:[%s4757_s1 + $0x50] sm:$0xff] }
  0xbd   : > { %1267 = vmatprep.mubr.f32.mxu1 %v780_v16  ;;  %1358 = vmatprep.subr.mxu0 %v670_v17  ;;  %v757_v16 = vld [vmem:[%s4757_s1 + $0x290] sm:$0xff] }
  0xbe   : > { %2816 = vmatprep.subr.mxu1 %v670_v17  ;;  %1059 = vmatmul.mubr.f32.gmra.mxu0 %v777_v19  ;;  %v692_v17 = vld [vmem:[%s4757_s1 + $0x88] sm:$0xff]  ;;  %v691_v19 = vld [vmem:[%s4757_s1 + $0x80] sm:$0xff] }
  0xbf   : > { %1268 = vmatmul.mubr.f32.gmra.mxu1 %v779_v20  ;;  %1359 = vmatpush2.msra.mxu0 %v669_v21  ;;  %v763_v20 = vld [vmem:[%s4757_s1 + $0x2c0] sm:$0xff] }
  0xc0   : > { %2842 = vmatpush2.msra.mxu1 %v669_v21  ;;  %1064 = vmatprep.mubr.f32.mxu0 %v784_v23  ;;  %v698_v21 = vld [vmem:[%s4757_s1 + $0xb8] sm:$0xff]  ;;  %v697_v23 = vld [vmem:[%s4757_s1 + $0xb0] sm:$0xff] }
  0xc1   : > { %1273 = vmatprep.mubr.f32.mxu1 %v786_v24  ;;  %1360 = vmatprep.subr.mxu0 %v668_v25  ;;  %v769_v24 = vld [vmem:[%s4757_s1 + $0x2f0] sm:$0xff] }
  0xc2   : > { %2817 = vmatprep.subr.mxu1 %v668_v25  ;;  %1065 = vmatmul.mubr.f32.gmra.mxu0 %v783_v27  ;;  %v704_v25 = vld [vmem:[%s4757_s1 + $0xe8] sm:$0xff]  ;;  %v703_v27 = vld [vmem:[%s4757_s1 + $0xe0] sm:$0xff] }
  0xc3   : > { %1274 = vmatmul.mubr.f32.gmra.mxu1 %v785_v28  ;;  %1361 = vmatpush2.msra.mxu0 %v667_v29  ;;  %v775_v28 = vld [vmem:[%s4757_s1 + $0x320] sm:$0xff] }
  0xc4   : > { %2843 = vmatpush2.msra.mxu1 %v667_v29  ;;  %1362 = vmatprep.subr.mxu0 %v666_v31  ;;  %v710_v29 = vld [vmem:[%s4757_s1 + $0x118] sm:$0xff] }
  0xc5   : > { %2818 = vmatprep.subr.mxu1 %v666_v31  ;;  %1070 = vmatprep.mubr.f32.mxu0 %v790_v33  ;;  %v709_v31 = vld [vmem:[%s4757_s1 + $0x110] sm:$0xff]  ;;  %v716_v33 = vld [vmem:[%s4757_s1 + $0x148] sm:$0xff] }
  0xc6   : > { %1279 = vmatprep.mubr.f32.mxu1 %v792_v34  ;;  %1363 = vmatpush2.msra.mxu0 %v665_v35  ;;  %v788_v34 = vld [vmem:[%s4757_s1 + $0x388] sm:$0xff] }
  0xc7   : > { %2844 = vmatpush2.msra.mxu1 %v665_v35  ;;  %1071 = vmatmul.mubr.f32.gmra.mxu0 %v789_v37  ;;  %v715_v35 = vld [vmem:[%s4757_s1 + $0x140] sm:$0xff]  ;;  %v722_v37 = vld [vmem:[%s4757_s1 + $0x178] sm:$0xff] }
  0xc8   : > { %1280 = vmatmul.mubr.f32.gmra.mxu1 %v791_v38  ;;  %1364 = vmatprep.subr.mxu0 %v664_v39  ;;  %v794_v38 = vld [vmem:[%s4757_s1 + $0x3b8] sm:$0xff] }
  0xc9   : > { %2819 = vmatprep.subr.mxu1 %v664_v39  ;;  %1076 = vmatprep.mubr.f32.mxu0 %v796_v41  ;;  %v721_v39 = vld [vmem:[%s4757_s1 + $0x170] sm:$0xff]  ;;  %v728_v41 = vld [vmem:[%s4757_s1 + $0x1a8] sm:$0xff] }
  0xca   : > { %1285 = vmatprep.mubr.f32.mxu1 %v798_v42  ;;  %1365 = vmatpush2.msra.mxu0 %v663_v43  ;;  %v800_v42 = vld [vmem:[%s4757_s1 + $0x3e8] sm:$0xff] }
  0xcb   : > { %2845 = vmatpush2.msra.mxu1 %v663_v43  ;;  %1077 = vmatmul.mubr.f32.gmra.mxu0 %v795_v45  ;;  %v727_v43 = vld [vmem:[%s4757_s1 + $0x1a0] sm:$0xff]  ;;  %v734_v45 = vld [vmem:[%s4757_s1 + $0x1d8] sm:$0xff] }
  0xcc   : > { %1286 = vmatmul.mubr.f32.gmra.mxu1 %v797_v46  ;;  %1366 = vmatprep.subr.mxu0 %v662_v47  ;;  %v806_v46 = vld [vmem:[%s4757_s1 + $0x418] sm:$0xff] }
  0xcd   : > { %2820 = vmatprep.subr.mxu1 %v662_v47  ;;  %1082 = vmatprep.mubr.f32.mxu0 %v802_v49  ;;  %v733_v47 = vld [vmem:[%s4757_s1 + $0x1d0] sm:$0xff]  ;;  %v740_v49 = vld [vmem:[%s4757_s1 + $0x208] sm:$0xff] }
  0xce   : > { %1291 = vmatprep.mubr.f32.mxu1 %v804_v50  ;;  %1367 = vmatpush2.msra.mxu0 %v661_v51  ;;  %v812_v50 = vld [vmem:[%s4757_s1 + $0x448] sm:$0xff] }
  0xcf   : > { %2846 = vmatpush2.msra.mxu1 %v661_v51  ;;  %1083 = vmatmul.mubr.f32.gmra.mxu0 %v801_v53  ;;  %v739_v51 = vld [vmem:[%s4757_s1 + $0x200] sm:$0xff]  ;;  %v746_v53 = vld [vmem:[%s4757_s1 + $0x238] sm:$0xff] }
  0xd0   : > { %1292 = vmatmul.mubr.f32.gmra.mxu1 %v803_v54  ;;  %1368 = vmatprep.subr.mxu0 %v660_v55  ;;  %v818_v54 = vld [vmem:[%s4757_s1 + $0x478] sm:$0xff] }
  0xd1   : > { %2821 = vmatprep.subr.mxu1 %v660_v55  ;;  %1369 = vmatpush2.msra.mxu0 %v659_v56  ;;  %v745_v55 = vld [vmem:[%s4757_s1 + $0x230] sm:$0xff] }
  0xd2   : > { %2847 = vmatpush2.msra.mxu1 %v659_v56  ;;  %1088 = vmatprep.mubr.f32.mxu0 %v808_v59  ;;  %v817_v56 = vld [vmem:[%s4757_s1 + $0x470] sm:$0xff] }
  0xd3   : > { %1297 = vmatprep.mubr.f32.mxu1 %v810_v60  ;;  %1089 = vmatmul.mubr.f32.gmra.mxu0 %v807_v61 }
  0xd4   : > { %1298 = vmatmul.mubr.f32.gmra.mxu1 %v809_v62  ;;  %1370 = vmatprep.subr.mxu0 %v658_v63 }
  0xd5   : > { %2822 = vmatprep.subr.mxu1 %v658_v63  ;;  %1371 = vmatpush2.msra.mxu0 %v657_v0 }
  0xd6   : > { %2848 = vmatpush2.msra.mxu1 %v657_v0  ;;  %1094 = vmatprep.mubr.f32.mxu0 %v814_v3 }
  0xd7   : > { %1303 = vmatprep.mubr.f32.mxu1 %v816_v4  ;;  %1095 = vmatmul.mubr.f32.gmra.mxu0 %v813_v5 }
  0xd8   : > { %1304 = vmatmul.mubr.f32.gmra.mxu1 %v815_v6  ;;  %1372 = vmatprep.subr.mxu0 %v656_v7 }
  0xd9   : > { %2823 = vmatprep.subr.mxu1 %v656_v7  ;;  %1373 = vmatpush2.msra.mxu0 %v655_v8 }
  0xda   : > { %2849 = vmatpush2.msra.mxu1 %v655_v8  ;;  %2768 = vmatprep.mubr.msk.f32.mxu0 %vm819_vm1, %v680_v9 }
  0xdb   : > { %2780 = vmatprep.mubr.msk.f32.mxu1 %vm819_vm1, %v752_v10  ;;  %1375 = vmatmul.mubr.f32.vlgmr.msra.gmra.mxu0 %v679_v11 }
  0xdc   : > { %1447 = vmatmul.mubr.f32.vlgmr.msra.gmra.mxu1 %v751_v12  ;;  %2769 = vmatprep.mubr.msk.f32.mxu0 %vm819_vm1, %v686_v13 }
  0xdd   : > { %2781 = vmatprep.mubr.msk.f32.mxu1 %vm819_vm1, %v758_v14 }
  0xdf   : > { %1381 = vmatmul.mubr.f32.gmra.mxu0 %v685_v15 }
  0xe0   : > { %1453 = vmatmul.mubr.f32.gmra.mxu1 %v757_v16  ;;  %2770 = vmatprep.mubr.msk.f32.mxu0 %vm819_vm1, %v692_v17 }
  0xe1   : > { %2782 = vmatprep.mubr.msk.f32.mxu1 %vm819_vm1, %v764_v18 }
  0xe3   : > { %1387 = vmatmul.mubr.f32.gmra.mxu0 %v691_v19 }
  0xe4   : > { %1459 = vmatmul.mubr.f32.gmra.mxu1 %v763_v20  ;;  %2771 = vmatprep.mubr.msk.f32.mxu0 %vm819_vm1, %v698_v21 }
  0xe5   : > { %2783 = vmatprep.mubr.msk.f32.mxu1 %vm819_vm1, %v770_v22 }
  0xe7   : > { %1393 = vmatmul.mubr.f32.gmra.mxu0 %v697_v23 }
  0xe8   : > { %1465 = vmatmul.mubr.f32.gmra.mxu1 %v769_v24  ;;  %2772 = vmatprep.mubr.msk.f32.mxu0 %vm819_vm1, %v704_v25 }
  0xe9   : > { %2784 = vmatprep.mubr.msk.f32.mxu1 %vm819_vm1, %v776_v26 }
  0xeb   : > { %1399 = vmatmul.mubr.f32.gmra.mxu0 %v703_v27 }
  0xec   : > { %1471 = vmatmul.mubr.f32.gmra.mxu1 %v775_v28  ;;  %2773 = vmatprep.mubr.msk.f32.mxu0 %vm819_vm1, %v710_v29 }
  0xed   : > { %2785 = vmatprep.mubr.msk.f32.mxu1 %vm819_vm1, %v782_v30 }
  0xef   : > { %1405 = vmatmul.mubr.f32.gmra.mxu0 %v709_v31 }
  0xf0   : > { %1477 = vmatmul.mubr.f32.gmra.mxu1 %v781_v32  ;;  %2774 = vmatprep.mubr.msk.f32.mxu0 %vm819_vm1, %v716_v33 }
  0xf1   : > { %2786 = vmatprep.mubr.msk.f32.mxu1 %vm819_vm1, %v788_v34 }
  0xf3   : > { %1411 = vmatmul.mubr.f32.gmra.mxu0 %v715_v35 }
  0xf4   : > { %1483 = vmatmul.mubr.f32.gmra.mxu1 %v787_v36  ;;  %2775 = vmatprep.mubr.msk.f32.mxu0 %vm819_vm1, %v722_v37 }
  0xf5   : > { %2787 = vmatprep.mubr.msk.f32.mxu1 %vm819_vm1, %v794_v38 }
  0xf7   : > { %1417 = vmatmul.mubr.f32.gmra.mxu0 %v721_v39 }
  0xf8   : > { %1489 = vmatmul.mubr.f32.gmra.mxu1 %v793_v40  ;;  %2776 = vmatprep.mubr.msk.f32.mxu0 %vm819_vm1, %v728_v41 }
  0xf9   : > { %2788 = vmatprep.mubr.msk.f32.mxu1 %vm819_vm1, %v800_v42 }
  0xfb   : > { %1423 = vmatmul.mubr.f32.gmra.mxu0 %v727_v43 }
  0xfc   : > { %1495 = vmatmul.mubr.f32.gmra.mxu1 %v799_v44  ;;  %2777 = vmatprep.mubr.msk.f32.mxu0 %vm819_vm1, %v734_v45 }
  0xfd   : > { %2789 = vmatprep.mubr.msk.f32.mxu1 %vm819_vm1, %v806_v46 }
  0xff   : > { %1429 = vmatmul.mubr.f32.gmra.mxu0 %v733_v47 }
 0x100   : > { %1501 = vmatmul.mubr.f32.gmra.mxu1 %v805_v48  ;;  %2778 = vmatprep.mubr.msk.f32.mxu0 %vm819_vm1, %v740_v49 }
 0x101   : > { %2790 = vmatprep.mubr.msk.f32.mxu1 %vm819_vm1, %v812_v50 }
 0x103   : > { %1435 = vmatmul.mubr.f32.gmra.mxu0 %v739_v51 }
 0x104   : > { %1507 = vmatmul.mubr.f32.gmra.mxu1 %v811_v52  ;;  %2779 = vmatprep.mubr.msk.f32.mxu0 %vm819_vm1, %v746_v53 }
 0x105   : > { %2791 = vmatprep.mubr.msk.f32.mxu1 %vm819_vm1, %v818_v54 }
 0x107   : > { %1441 = vmatmul.mubr.f32.gmra.mxu0 %v745_v55 }
 0x108   : > { %1513 = vmatmul.mubr.f32.gmra.mxu1 %v817_v56 }
 0x137   : > { %v958_v57 = vpop.f32.mrf.mxu0 }
 0x138   : > { %v1167_v58 = vpop.f32.mrf.mxu1 }
 0x139   : > { %v3748_v59 = vadd.f32 %v1167_v58, %v958_v57  ;;  %v960_v60 = vpop.f32.mrf.mxu0 }
 0x13a   : > { %v1169_v61 = vpop.f32.mrf.mxu1 }
 0x13b   : > { %v3750_v62 = vadd.f32 %v1169_v61, %v960_v60  ;;  %v964_v63 = vpop.f32.mrf.mxu0 }
 0x13c   : > { %v1173_v0 = vpop.f32.mrf.mxu1 }
 0x13d   : > { %v3752_v1 = vadd.f32 %v1173_v0, %v964_v63  ;;  %v966_v2 = vpop.f32.mrf.mxu0 }
 0x13e   : > { %v1175_v3 = vpop.f32.mrf.mxu1 }
 0x13f   : > { %v3754_v4 = vadd.f32 %v1175_v3, %v966_v2  ;;  %v970_v5 = vpop.f32.mrf.mxu0 }
 0x140   : > { %v1179_v6 = vpop.f32.mrf.mxu1 }
 0x141   : > { %v3756_v7 = vadd.f32 %v1179_v6, %v970_v5  ;;  %v972_v8 = vpop.f32.mrf.mxu0 }
 0x142   : > { %v1181_v9 = vpop.f32.mrf.mxu1 }
 0x143   : > { %v3758_v10 = vadd.f32 %v1181_v9, %v972_v8  ;;  %v976_v11 = vpop.f32.mrf.mxu0 }
 0x144   : > { %v1185_v12 = vpop.f32.mrf.mxu1 }
 0x145   : > { %v3760_v13 = vadd.f32 %v1185_v12, %v976_v11  ;;  %v978_v14 = vpop.f32.mrf.mxu0 }
 0x146   : > { %v1187_v15 = vpop.f32.mrf.mxu1 }
 0x147   : > { %v3762_v16 = vadd.f32 %v1187_v15, %v978_v14 }
 0x148   : > { %v982_v17 = vpop.f32.mrf.mxu0 }
 0x149   : > { %v1191_v18 = vpop.f32.mrf.mxu1 }
 0x14a   : > { %v3764_v19 = vadd.f32 %v1191_v18, %v982_v17  ;;  %v984_v20 = vpop.f32.mrf.mxu0 }
 0x14b   : > { %v1193_v21 = vpop.f32.mrf.mxu1 }
 0x14c   : > { %v3766_v22 = vadd.f32 %v1193_v21, %v984_v20  ;;  %v988_v23 = vpop.f32.mrf.mxu0 }
 0x14d   : > { %v1197_v24 = vpop.f32.mrf.mxu1 }
 0x14e   : > { %v3768_v25 = vadd.f32 %v1197_v24, %v988_v23  ;;  %v990_v26 = vpop.f32.mrf.mxu0 }
 0x14f   : > { %v1199_v27 = vpop.f32.mrf.mxu1 }
 0x150   : > { %v3770_v28 = vadd.f32 %v1199_v27, %v990_v26  ;;  %v994_v29 = vpop.f32.mrf.mxu0 }
 0x151   : > { %v1203_v30 = vpop.f32.mrf.mxu1 }
 0x152   : > { %v3772_v31 = vadd.f32 %v1203_v30, %v994_v29  ;;  %v996_v32 = vpop.f32.mrf.mxu0 }
 0x153   : > { %v1205_v33 = vpop.f32.mrf.mxu1 }
 0x154   : > { %v3774_v34 = vadd.f32 %v1205_v33, %v996_v32 }
 0x155   : > { %v1000_v35 = vpop.f32.mrf.mxu0 }
 0x156   : > { %v1209_v36 = vpop.f32.mrf.mxu1 }
 0x157   : > { %v3776_v37 = vadd.f32 %v1209_v36, %v1000_v35  ;;  %v1002_v38 = vpop.f32.mrf.mxu0 }
 0x158   : > { %v1211_v39 = vpop.f32.mrf.mxu1 }
 0x159   : > { %v3778_v40 = vadd.f32 %v1211_v39, %v1002_v38  ;;  %v1006_v41 = vpop.f32.mrf.mxu0 }
 0x15a   : > { %v1215_v42 = vpop.f32.mrf.mxu1 }
 0x15b   : > { %v3780_v43 = vadd.f32 %v1215_v42, %v1006_v41  ;;  %v1008_v44 = vpop.f32.mrf.mxu0 }
 0x15c   : > { %v1217_v45 = vpop.f32.mrf.mxu1 }
 0x15d   : > { %v3782_v46 = vadd.f32 %v1217_v45, %v1008_v44  ;;  %v1012_v47 = vpop.f32.mrf.mxu0 }
 0x15e   : > { %v1221_v48 = vpop.f32.mrf.mxu1 }
 0x15f   : > { %v3784_v49 = vadd.f32 %v1221_v48, %v1012_v47  ;;  %v1014_v50 = vpop.f32.mrf.mxu0 }
 0x160   : > { %v1223_v51 = vpop.f32.mrf.mxu1 }
 0x161   : > { %v3786_v52 = vadd.f32 %v1223_v51, %v1014_v50  ;;  %v1018_v53 = vpop.f32.mrf.mxu0 }
 0x162   : > { %v1227_v54 = vpop.f32.mrf.mxu1 }
 0x163   : > { %v3788_v55 = vadd.f32 %v1227_v54, %v1018_v53  ;;  %v1020_v56 = vpop.f32.mrf.mxu0 }
 0x164   : > { %v1229_v57 = vpop.f32.mrf.mxu1 }
 0x165   : > { %v3790_v58 = vadd.f32 %v1229_v57, %v1020_v56  ;;  %v1024_v60 = vpop.f32.mrf.mxu0 }
 0x166   : > { %v1233_v61 = vpop.f32.mrf.mxu1 }
 0x167   : > { %4800 = vst [vmem:[#allocation6_spill] sm:$0xff] %v3790_v58  ;;  %v3792_v63 = vadd.f32 %v1233_v61, %v1024_v60  ;;  %v1026_v0 = vpop.f32.mrf.mxu0 }
 0x168   : > { %v1235_v2 = vpop.f32.mrf.mxu1 }
 0x169   : > { %4801 = vst [vmem:[#allocation7_spill] sm:$0xff] %v3792_v63  ;;  %v3794_v3 = vadd.f32 %v1235_v2, %v1026_v0  ;;  %v1030_v5 = vpop.f32.mrf.mxu0 }
 0x16a   : > { %v1239_v6 = vpop.f32.mrf.mxu1 }
 0x16b   : > { %4802 = vst [vmem:[#allocation8_spill] sm:$0xff] %v3794_v3  ;;  %v3796_v8 = vadd.f32 %v1239_v6, %v1030_v5  ;;  %v1032_v9 = vpop.f32.mrf.mxu0 }
 0x16c   : > { %v1241_v11 = vpop.f32.mrf.mxu1 }
 0x16d   : > { %v3798_v12 = vadd.f32 %v1241_v11, %v1032_v9  ;;  %v1036_v14 = vpop.f32.mrf.mxu0 }
 0x16e   : > { %v1245_v15 = vpop.f32.mrf.mxu1 }
 0x16f   : > { %v3800_v17 = vadd.f32 %v1245_v15, %v1036_v14  ;;  %v1038_v18 = vpop.f32.mrf.mxu0 }
 0x170   : > { %v1247_v20 = vpop.f32.mrf.mxu1 }
 0x171   : > { %v3802_v21 = vadd.f32 %v1247_v20, %v1038_v18  ;;  %v1042_v23 = vpop.f32.mrf.mxu0 }
 0x172   : > { %v1251_v24 = vpop.f32.mrf.mxu1 }
 0x173   : > { %v3804_v26 = vadd.f32 %v1251_v24, %v1042_v23  ;;  %v1044_v27 = vpop.f32.mrf.mxu0 }
 0x174   : > { %v1253_v29 = vpop.f32.mrf.mxu1 }
 0x175   : > { %v3806_v30 = vadd.f32 %v1253_v29, %v1044_v27  ;;  %v1048_v32 = vpop.f32.mrf.mxu0 }
 0x176   : > { %v1257_v33 = vpop.f32.mrf.mxu1 }
 0x177   : > { %v3808_v35 = vadd.f32 %v1257_v33, %v1048_v32  ;;  %v1050_v36 = vpop.f32.mrf.mxu0 }
 0x178   : > { %v1259_v38 = vpop.f32.mrf.mxu1 }
 0x179   : > { %v3810_v39 = vadd.f32 %v1259_v38, %v1050_v36 }
 0x17a   : > { %v1054_v41 = vpop.f32.mrf.mxu0 }
 0x17b   : > { %v1263_v42 = vpop.f32.mrf.mxu1 }
 0x17c   : > { %v3812_v44 = vadd.f32 %v1263_v42, %v1054_v41  ;;  %v1056_v45 = vpop.f32.mrf.mxu0 }
 0x17d   : > { %v1265_v47 = vpop.f32.mrf.mxu1 }
 0x17e   : > { %v3814_v48 = vadd.f32 %v1265_v47, %v1056_v45  ;;  %v1060_v50 = vpop.f32.mrf.mxu0 }
 0x17f   : > { %v1269_v51 = vpop.f32.mrf.mxu1 }
 0x180   : > { %v3816_v53 = vadd.f32 %v1269_v51, %v1060_v50  ;;  %v1062_v54 = vpop.f32.mrf.mxu0 }
 0x181   : > { %v1271_v56 = vpop.f32.mrf.mxu1 }
 0x182   : > { %v3818_v57 = vadd.f32 %v1271_v56, %v1062_v54  ;;  %v1066_v60 = vpop.f32.mrf.mxu0 }
 0x183   : > { %v1275_v61 = vpop.f32.mrf.mxu1 }
 0x184   : > { %v3820_v0 = vadd.f32 %v1275_v61, %v1066_v60  ;;  %v1068_v2 = vpop.f32.mrf.mxu0 }
 0x185   : > { %v1277_v5 = vpop.f32.mrf.mxu1 }
 0x186   : > { %v3822_v6 = vadd.f32 %v1277_v5, %v1068_v2 }
 0x187   : > { %v1072_v9 = vpop.f32.mrf.mxu0 }
 0x188   : > { %v1281_v11 = vpop.f32.mrf.mxu1 }
 0x189   : > { %v3824_v14 = vadd.f32 %v1281_v11, %v1072_v9  ;;  %v3826_v15 = vpop.f32.mrf.mxu0 }
 0x18a   : > { %v3828_v18 = vpop.f32.mrf.mxu1 }
 0x18b   : > { %v3830_v20 = vpop.f32.mrf.mxu0 }
 0x18c   : > { %v3832_v23 = vpop.f32.mrf.mxu1 }
 0x18d   : > { %v3834_v24 = vpop.f32.mrf.mxu0 }
 0x18e   : > { %v3836_v27 = vpop.f32.mrf.mxu1 }
 0x18f   : > { %v3838_v29 = vpop.f32.mrf.mxu0 }
 0x190   : > { %v3840_v32 = vpop.f32.mrf.mxu1 }
 0x191   : > { %v3842_v33 = vpop.f32.mrf.mxu0 }
 0x192   : > { %v3844_v36 = vpop.f32.mrf.mxu1 }
 0x193   : > { %v3846_v38 = vpop.f32.mrf.mxu0 }
 0x194   : > { %v3848_v41 = vpop.f32.mrf.mxu1 }
 0x195   : > { %v3850_v42 = vpop.f32.mrf.mxu0 }
 0x196   : > { %v3852_v45 = vpop.f32.mrf.mxu1 }
 0x197   : > { %v3854_v47 = vpop.f32.mrf.mxu0 }
 0x198   : > { %v3856_v50 = vpop.f32.mrf.mxu1 }
 0x199   : > { %v3858_v51 = vpop.f32.mrf.mxu0 }
 0x19a   : > { %4803 = vst [vmem:[#allocation9_spill] sm:$0xff] %v3858_v51  ;;  %v3860_v54 = vpop.f32.mrf.mxu1 }
 0x19b   : > { %4804 = vst [vmem:[#allocation10_spill] sm:$0xff] %v3860_v54  ;;  %v1376_v56 = vpop.f32.mrf.mxu0 }
 0x19c   : > { %v1448_v60 = vpop.f32.mrf.mxu1  ;;  %v3863_v61 = vadd.f32 %v1376_v56, %v3748_v59 }
 0x19d   : > { %v3866_v2 = vadd.f32 %v1448_v60, %v3796_v8  ;;  %v1378_v5 = vpop.f32.mrf.mxu0 }
 0x19e   : > { %v1450_v9 = vpop.f32.mrf.mxu1  ;;  %v3869_v11 = vadd.f32 %v1378_v5, %v3750_v62 }
 0x19f   : > { %4805 = vst [vmem:[#allocation11_spill] sm:$0xff] %v3866_v2  ;;  %v3872_v3 = vadd.f32 %v1450_v9, %v3798_v12  ;;  %v1382_v63 = vpop.f32.mrf.mxu0 }
 0x1a0   : > { %v1454_v51 = vpop.f32.mrf.mxu1  ;;  %v3875_v54 = vadd.f32 %v1382_v63, %v3752_v1 }
 0x1a1   : > { %4806 = vst [vmem:[#allocation12_spill] sm:$0xff] %v3872_v3  ;;  %v3878_v58 = vadd.f32 %v1454_v51, %v3800_v17  ;;  %v1384_v59 = vpop.f32.mrf.mxu0 }
 0x1a2   : > { %v1456_v56 = vpop.f32.mrf.mxu1  ;;  %v3881_v8 = vadd.f32 %v1384_v59, %v3754_v4 }
 0x1a3   : > { %4807 = vst [vmem:[#allocation13_spill] sm:$0xff] %v3878_v58  ;;  %v3884_v60 = vadd.f32 %v1456_v56, %v3802_v21  ;;  %v1388_v62 = vpop.f32.mrf.mxu0 }
 0x1a4   : > { %v1460_v5 = vpop.f32.mrf.mxu1  ;;  %v3887_v12 = vadd.f32 %v1388_v62, %v3756_v7 }
 0x1a5   : > { %4808 = vst [vmem:[#allocation14_spill] sm:$0xff] %v3884_v60  ;;  %v3890_v9 = vadd.f32 %v1460_v5, %v3804_v26  ;;  %v1390_v1 = vpop.f32.mrf.mxu0 }
 0x1a6   : > { %v1462_v63 = vpop.f32.mrf.mxu1  ;;  %v3893_v17 = vadd.f32 %v1390_v1, %v3758_v10 }
 0x1a7   : > { %4809 = vst [vmem:[#allocation15_spill] sm:$0xff] %v3890_v9  ;;  %v3896_v51 = vadd.f32 %v1462_v63, %v3806_v30  ;;  %v1394_v4 = vpop.f32.mrf.mxu0 }
 0x1a8   : > { %v1466_v59 = vpop.f32.mrf.mxu1  ;;  %v3899_v21 = vadd.f32 %v1394_v4, %v3760_v13 }
 0x1a9   : > { %4810 = vst [vmem:[#allocation16_spill] sm:$0xff] %v3896_v51  ;;  %v3902_v56 = vadd.f32 %v1466_v59, %v3808_v35  ;;  %v1396_v7 = vpop.f32.mrf.mxu0 }
 0x1aa   : > { %v1468_v62 = vpop.f32.mrf.mxu1  ;;  %v3905_v26 = vadd.f32 %v1396_v7, %v3762_v16 }
 0x1ab   : > { %4811 = vst [vmem:[#allocation17_spill] sm:$0xff] %v3902_v56  ;;  %v3908_v5 = vadd.f32 %v1468_v62, %v3810_v39  ;;  %v1400_v10 = vpop.f32.mrf.mxu0 }
 0x1ac   : > { %v1472_v1 = vpop.f32.mrf.mxu1  ;;  %v3911_v30 = vadd.f32 %v1400_v10, %v3764_v19 }
 0x1ad   : > { %4812 = vst [vmem:[#allocation18_spill] sm:$0xff] %v3908_v5  ;;  %v3914_v63 = vadd.f32 %v1472_v1, %v3812_v44  ;;  %v1402_v13 = vpop.f32.mrf.mxu0 }
 0x1ae   : > { %4813 = vst [vmem:[#allocation19_spill] sm:$0xff] %v3911_v30  ;;  %v1474_v4 = vpop.f32.mrf.mxu1  ;;  %v3917_v35 = vadd.f32 %v1402_v13, %v3766_v22 }
 0x1af   : > { %4814 = vst [vmem:[#allocation20_spill] sm:$0xff] %v3914_v63  ;;  %v3920_v59 = vadd.f32 %v1474_v4, %v3814_v48  ;;  %v1406_v16 = vpop.f32.mrf.mxu0 }
 0x1b0   : > { %4815 = vst [vmem:[#allocation21_spill] sm:$0xff] %v3917_v35  ;;  %v1478_v7 = vpop.f32.mrf.mxu1  ;;  %v3923_v39 = vadd.f32 %v1406_v16, %v3768_v25 }
 0x1b1   : > { %4816 = vst [vmem:[#allocation22_spill] sm:$0xff] %v3920_v59  ;;  %v3926_v62 = vadd.f32 %v1478_v7, %v3816_v53  ;;  %v1408_v19 = vpop.f32.mrf.mxu0 }
 0x1b2   : > { %v1480_v10 = vpop.f32.mrf.mxu1  ;;  %v3929_v44 = vadd.f32 %v1408_v19, %v3770_v28 }
 0x1b3   : > { %4817 = vst [vmem:[#allocation23_spill] sm:$0xff] %v3926_v62  ;;  %v3932_v1 = vadd.f32 %v1480_v10, %v3818_v57  ;;  %v1412_v22 = vpop.f32.mrf.mxu0  ;;  %v1284_v57 = vadd.f32 %v3828_v18, %v3826_v15  ;;  %v1290_v15 = vadd.f32 %v3836_v27, %v3834_v24  ;;  %v1296_v24 = vadd.f32 %v3844_v36, %v3842_v33 }
 0x1b4   : > { %4818 = vst [vmem:[#allocation24_spill] sm:$0xff] %v3929_v44  ;;  %v1484_v13 = vpop.f32.mrf.mxu1  ;;  %v3935_v48 = vadd.f32 %v1412_v22, %v3772_v31  ;;  %v1302_v33 = vadd.f32 %v3852_v45, %v3850_v42  ;;  %v4843_v45 = vld [vmem:[#allocation7_spill] sm:$0xff] }
 0x1b5   : > { %4819 = vst [vmem:[#allocation25_spill] sm:$0xff] %v3932_v1  ;;  %v3938_v4 = vadd.f32 %v1484_v13, %v3820_v0  ;;  %v1414_v25 = vpop.f32.mrf.mxu0 }
 0x1b6   : > { %4820 = vst [vmem:[#allocation26_spill] sm:$0xff] %v3935_v48  ;;  %v1486_v16 = vpop.f32.mrf.mxu1  ;;  %v3941_v53 = vadd.f32 %v1414_v25, %v3774_v34  ;;  %v1288_v34 = vadd.f32 %v3832_v23, %v3830_v20  ;;  %v1294_v20 = vadd.f32 %v3840_v32, %v3838_v29  ;;  %v1300_v29 = vadd.f32 %v3848_v41, %v3846_v38  ;;  %v4838_v41 = vld [vmem:[#allocation6_spill] sm:$0xff] }
 0x1b7   : > { %4821 = vst [vmem:[#allocation27_spill] sm:$0xff] %v3938_v4  ;;  %v3944_v7 = vadd.f32 %v1486_v16, %v3822_v6  ;;  %v1418_v28 = vpop.f32.mrf.mxu0  ;;  %v1306_v38 = vadd.f32 %v3856_v50, %v3854_v47 }
 0x1b8   : > { %4822 = vst [vmem:[#allocation28_spill] sm:$0xff] %v3941_v53  ;;  %v1490_v19 = vpop.f32.mrf.mxu1  ;;  %v3949_v10 = vadd.f32 %v1418_v28, %v3776_v37 }
 0x1b9   : > { %4823 = vst [vmem:[#allocation29_spill] sm:$0xff] %v3944_v7  ;;  %v3952_v31 = vadd.f32 %v1490_v19, %v3824_v14  ;;  %v1420_v0 = vpop.f32.mrf.mxu0 }
 0x1ba   : > { %4824 = vst [vmem:[#allocation30_spill] sm:$0xff] %v3949_v10  ;;  %v1492_v22 = vpop.f32.mrf.mxu1  ;;  %v3957_v13 = vadd.f32 %v1420_v0, %v3778_v40 }
 0x1bb   : > { %4825 = vst [vmem:[#allocation31_spill] sm:$0xff] %v3952_v31  ;;  %v3959_v6 = vadd.f32 %v1492_v22, %v1284_v57  ;;  %v1424_v25 = vpop.f32.mrf.mxu0 }
 0x1bc   : > { %4826 = vst [vmem:[#allocation32_spill] sm:$0xff] %v3957_v13  ;;  %v1496_v16 = vpop.f32.mrf.mxu1  ;;  %v3964_v37 = vadd.f32 %v1424_v25, %v3780_v43 }
 0x1bd   : > { %4827 = vst [vmem:[#allocation33_spill] sm:$0xff] %v3959_v6  ;;  %v3966_v14 = vadd.f32 %v1496_v16, %v1288_v34  ;;  %v1426_v18 = vpop.f32.mrf.mxu0 }
 0x1be   : > { %4828 = vst [vmem:[#allocation34_spill] sm:$0xff] %v3964_v37  ;;  %v1498_v28 = vpop.f32.mrf.mxu1  ;;  %v3971_v40 = vadd.f32 %v1426_v18, %v3782_v46 }
 0x1bf   : > { %4829 = vst [vmem:[#allocation35_spill] sm:$0xff] %v3966_v14  ;;  %v3973_v23 = vadd.f32 %v1498_v28, %v1290_v15  ;;  %v1430_v19 = vpop.f32.mrf.mxu0 }
 0x1c0   : > { %4830 = vst [vmem:[#allocation36_spill] sm:$0xff] %v3971_v40  ;;  %v1502_v57 = vpop.f32.mrf.mxu1  ;;  %v3978_v43 = vadd.f32 %v1430_v19, %v3784_v49  ;;  %v4841_v19 = vld [vmem:[#allocation9_spill] sm:$0xff] }
 0x1c1   : > { %4831 = vst [vmem:[#allocation37_spill] sm:$0xff] %v3973_v23  ;;  %v3980_v27 = vadd.f32 %v1502_v57, %v1294_v20  ;;  %v1432_v0 = vpop.f32.mrf.mxu0  ;;  %v4842_v57 = vld [vmem:[#allocation10_spill] sm:$0xff] }
 0x1c2   : > { %4832 = vst [vmem:[#allocation38_spill] sm:$0xff] %v3978_v43  ;;  %v1504_v22 = vpop.f32.mrf.mxu1  ;;  %v3985_v46 = vadd.f32 %v1432_v0, %v3786_v52  ;;  %v1308_v42 = vadd.f32 %v4842_v57, %v4841_v19 }
 0x1c3   : > { %4833 = vst [vmem:[#allocation39_spill] sm:$0xff] %v3980_v27  ;;  %v3987_v32 = vadd.f32 %v1504_v22, %v1296_v24  ;;  %v1436_v34 = vpop.f32.mrf.mxu0 }
 0x1c4   : > { %4834 = vst [vmem:[#allocation40_spill] sm:$0xff] %v3985_v46  ;;  %v1508_v25 = vpop.f32.mrf.mxu1  ;;  %v3992_v49 = vadd.f32 %v1436_v34, %v3788_v55 }
 0x1c5   : > { %4835 = vst [vmem:[#allocation41_spill] sm:$0xff] %v3987_v32  ;;  %v3994_v36 = vadd.f32 %v1508_v25, %v1300_v29  ;;  %v1438_v16 = vpop.f32.mrf.mxu0  ;;  %v4846_v29 = vld [vmem:[#allocation8_spill] sm:$0xff] }
 0x1c6   : > { %4836 = vst [vmem:[#allocation42_spill] sm:$0xff] %v3992_v49  ;;  %v1510_v15 = vpop.f32.mrf.mxu1  ;;  %v3999_v52 = vadd.f32 %v1438_v16, %v4838_v41 }
 0x1c7   : > { %4837 = vst [vmem:[#allocation43_spill] sm:$0xff] %v3994_v36  ;;  %v4001_v18 = vadd.f32 %v1510_v15, %v1302_v33  ;;  %v1442_v28 = vpop.f32.mrf.mxu0 }
 0x1c8   : > { %4839 = vst [vmem:[#allocation6_spill] sm:$0xff] %v3999_v52  ;;  %v1514_v20 = vpop.f32.mrf.mxu1  ;;  %v4006_v55 = vadd.f32 %v1442_v28, %v4843_v45 }
 0x1c9   : > { %4840 = vst [vmem:[#allocation44_spill] sm:$0xff] %v4001_v18  ;;  %v4008_v24 = vadd.f32 %v1514_v20, %v1306_v38  ;;  %v1444_v0 = vpop.f32.mrf.mxu0  ;;  %1521 = sbr.rel (%p2792_p11) target bundleno = 697 (0x2b9), region = 44 }
 0x1ca   : > { %4844 = vst [vmem:[#allocation9_spill] sm:$0xff] %v4006_v55  ;;  %v1516_v22 = vpop.f32.mrf.mxu1  ;;  %v4011_v34 = vadd.f32 %v1444_v0, %v4846_v29 }
 0x1cb   : > { %4845 = vst [vmem:[#allocation10_spill] sm:$0xff] %v4008_v24  ;;  %v4013_v47 = vadd.f32 %v1516_v22, %v1308_v42 }
 0x1cc   : > { %4847 = vst [vmem:[#allocation7_spill] sm:$0xff] %v4011_v34 }
 0x1cd   : > { %4848 = vst [vmem:[#allocation8_spill] sm:$0xff] %v4013_v47 }
 0x1ce   : > { %v1552_v50 = vadd.f32 %v3893_v17, %v3887_v12  ;;  %v1546_v25 = vadd.f32 %v3869_v11, %v3863_v61  ;;  %v1555_v33 = vadd.f32 %v3905_v26, %v3899_v21  ;;  %v1549_v16 = vadd.f32 %v3881_v8, %v3875_v54 }
 0x1cf   : > { %v1561_v15 = vadd.f32 %v3929_v44, %v3923_v39  ;;  %v1558_v38 = vadd.f32 %v3917_v35, %v3911_v30  ;;  %v1567_v41 = vadd.f32 %v3957_v13, %v3949_v10  ;;  %v1564_v28 = vadd.f32 %v3941_v53, %v3935_v48 }
 0x1d0   : > { %1553 = vadd.xlane.f32.xlu1 %v1552_v50  ;;  %1547 = vadd.xlane.f32.xlu0 %v1546_v25  ;;  %v1573_v20 = vadd.f32 %v3985_v46, %v3978_v43  ;;  %v1570_v19 = vadd.f32 %v3971_v40, %v3964_v37  ;;  %v1579_v57 = vadd.f32 %v4011_v34, %v4006_v55  ;;  %vm1642_vm2 = vcmask 7168  }
 0x1d1   : > { %v1576_v42 = vadd.f32 %v3999_v52, %v3992_v49  ;;  %v1585_v45 = vadd.f32 %v3884_v60, %v3878_v58  ;;  %v1582_v0 = vadd.f32 %v3872_v3, %v3866_v2  ;;  %v1591_v22 = vadd.f32 %v3908_v5, %v3902_v56 }
 0x1d2   : > { %v1588_v29 = vadd.f32 %v3896_v51, %v3890_v9  ;;  %v1597_v50 = vadd.f32 %v3932_v1, %v3926_v62  ;;  %v1594_v25 = vadd.f32 %v3920_v59, %v3914_v63 }
 0x1d4   : > { %1556 = vadd.xlane.f32.xlu1 %v1555_v33  ;;  %1550 = vadd.xlane.f32.xlu0 %v1549_v16  ;;  %v1603_v33 = vadd.f32 %v3959_v6, %v3952_v31  ;;  %v1600_v16 = vadd.f32 %v3944_v7, %v3938_v4 }
 0x1d8   : > { %1562 = vadd.xlane.f32.xlu1 %v1561_v15  ;;  %1559 = vadd.xlane.f32.xlu0 %v1558_v38  ;;  %v1609_v15 = vadd.f32 %v3987_v32, %v3980_v27  ;;  %v1606_v38 = vadd.f32 %v3973_v23, %v3966_v14 }
 0x1dc   : > { %1568 = vadd.xlane.f32.xlu1 %v1567_v41  ;;  %1565 = vadd.xlane.f32.xlu0 %v1564_v28  ;;  %v1615_v41 = vadd.f32 %v4013_v47, %v4008_v24  ;;  %v1693_v28 = vmul.f32 %v3875_v54, %v3875_v54 }
 0x1e0   : > { %1574 = vadd.xlane.f32.xlu1 %v1573_v20  ;;  %1571 = vadd.xlane.f32.xlu0 %v1570_v19  ;;  %v1694_v20 = vmul.f32 %v3881_v8, %v3881_v8  ;;  %v1612_v19 = vadd.f32 %v4001_v18, %v3994_v36 }
 0x1e4   : > { %1580 = vadd.xlane.f32.xlu1 %v1579_v57  ;;  %1577 = vadd.xlane.f32.xlu0 %v1576_v42  ;;  %v1691_v57 = vmul.f32 %v3863_v61, %v3863_v61  ;;  %v1692_v42 = vmul.f32 %v3869_v11, %v3869_v11 }
 0x1e8   : > { %1586 = vadd.xlane.f32.xlu1 %v1585_v45  ;;  %1583 = vadd.xlane.f32.xlu0 %v1582_v0  ;;  %v1742_v45 = vadd.f32 %v1694_v20, %v1693_v28  ;;  %v1697_v0 = vmul.f32 %v3899_v21, %v3899_v21  ;;  %v1700_v28 = vmul.f32 %v3917_v35, %v3917_v35 }
 0x1ec   : > { %1592 = vadd.xlane.f32.xlu1 %v1591_v22  ;;  %1589 = vadd.xlane.f32.xlu0 %v1588_v29  ;;  %v1698_v22 = vmul.f32 %v3905_v26, %v3905_v26  ;;  %v1739_v29 = vadd.f32 %v1692_v42, %v1691_v57  ;;  %v1706_v57 = vmul.f32 %v3957_v13, %v3957_v13 }
 0x1f0   : > { %1598 = vadd.xlane.f32.xlu1 %v1597_v50  ;;  %1595 = vadd.xlane.f32.xlu0 %v1594_v25  ;;  %v1695_v50 = vmul.f32 %v3887_v12, %v3887_v12  ;;  %v1696_v25 = vmul.f32 %v3893_v17, %v3893_v17 }
 0x1f4   : > { %1604 = vadd.xlane.f32.xlu1 %v1603_v33  ;;  %1601 = vadd.xlane.f32.xlu0 %v1600_v16  ;;  %v1748_v33 = vadd.f32 %v1698_v22, %v1697_v0  ;;  %v1701_v16 = vmul.f32 %v3923_v39, %v3923_v39  ;;  %v1704_v0 = vmul.f32 %v3941_v53, %v3941_v53 }
 0x1f5   : > { %v1709_v22 = vmul.f32 %v3978_v43, %v3978_v43 }
 0x1f8   : > { %1610 = vadd.xlane.f32.xlu1 %v1609_v15  ;;  %1607 = vadd.xlane.f32.xlu0 %v1606_v38  ;;  %v1702_v15 = vmul.f32 %v3929_v44, %v3929_v44  ;;  %v1745_v38 = vadd.f32 %v1696_v25, %v1695_v50  ;;  %v1707_v50 = vmul.f32 %v3964_v37, %v3964_v37 }
 0x1f9   : > { %v1711_v37 = vmul.f32 %v3992_v49, %v3992_v49 }
 0x1fa   : > { %v1754_v20 = vadd.f32 %v1702_v15, %v1701_v16  ;;  %v1708_v16 = vmul.f32 %v3971_v40, %v3971_v40 }
 0x1fc   : > { %1616 = vadd.xlane.f32.xlu1 %v1615_v41  ;;  %1613 = vadd.xlane.f32.xlu0 %v1612_v19  ;;  %v1699_v41 = vmul.f32 %v3911_v30, %v3911_v30  ;;  %v1705_v19 = vmul.f32 %v3949_v10, %v3949_v10 }
 0x1fe   : > { %v1751_v42 = vadd.f32 %v1700_v28, %v1699_v41  ;;  %v1760_v25 = vadd.f32 %v1706_v57, %v1705_v19  ;;  %v1714_v41 = vmul.f32 %v4011_v34, %v4011_v34  ;;  %v1763_v28 = vadd.f32 %v1708_v16, %v1707_v50 }
 0x1ff   : > { %v1717_v57 = vmul.f32 %v3878_v58, %v3878_v58  ;;  %v1721_v50 = vmul.f32 %v3902_v56, %v3902_v56  ;;  %v1719_v16 = vmul.f32 %v3890_v9, %v3890_v9 }
 0x200   : > { %1743 = vadd.xlane.f32.xlu1 %v1742_v45  ;;  %1740 = vadd.xlane.f32.xlu0 %v1739_v29  ;;  %v1703_v45 = vmul.f32 %v3935_v48, %v3935_v48  ;;  %v1710_v29 = vmul.f32 %v3985_v46, %v3985_v46 }
 0x202   : > { %v1766_v15 = vadd.f32 %v1710_v29, %v1709_v22  ;;  %v1716_v22 = vmul.f32 %v3872_v3, %v3872_v3 }
 0x204   : > { %1749 = vadd.xlane.f32.xlu1 %v1748_v33  ;;  %1746 = vadd.xlane.f32.xlu0 %v1745_v38  ;;  %v1757_v33 = vadd.f32 %v1704_v0, %v1703_v45  ;;  %v1713_v38 = vmul.f32 %v4006_v55, %v4006_v55  ;;  %v1715_v0 = vmul.f32 %v3866_v2, %v3866_v2 }
 0x206   : > { %v1772_v19 = vadd.f32 %v1714_v41, %v1713_v38  ;;  %v1725_v38 = vmul.f32 %v3926_v62, %v3926_v62  ;;  %v1726_v41 = vmul.f32 %v3932_v1, %v3932_v1 }
 0x208   : > { %1755 = vadd.xlane.f32.xlu1 %v1754_v20  ;;  %1752 = vadd.xlane.f32.xlu0 %v1751_v42  ;;  %v1712_v20 = vmul.f32 %v3999_v52, %v3999_v52  ;;  %v1718_v42 = vmul.f32 %v3884_v60, %v3884_v60 }
 0x20a   : > { %v1769_v45 = vadd.f32 %v1712_v20, %v1711_v37  ;;  %v1778_v29 = vadd.f32 %v1718_v42, %v1717_v57  ;;  %v1720_v37 = vmul.f32 %v3896_v51, %v3896_v51  ;;  %v1723_v20 = vmul.f32 %v3914_v63, %v3914_v63 }
 0x20b   : > { %v1729_v57 = vmul.f32 %v3952_v31, %v3952_v31  ;;  %v1730_v42 = vmul.f32 %v3959_v6, %v3959_v6 }
 0x20c   : > { %1761 = vadd.xlane.f32.xlu1 %v1760_v25  ;;  %1758 = vadd.xlane.f32.xlu0 %v1757_v33  ;;  %v1722_v25 = vmul.f32 %v3908_v5, %v3908_v5  ;;  %v1775_v33 = vadd.f32 %v1716_v22, %v1715_v0  ;;  %v1790_v0 = vadd.f32 %v1726_v41, %v1725_v38 }
 0x20d   : > { %v1737_v41 = vmul.f32 %v4008_v24, %v4008_v24 }
 0x210   : > { %1767 = vadd.xlane.f32.xlu1 %v1766_v15  ;;  %1764 = vadd.xlane.f32.xlu0 %v1763_v28  ;;  %v1784_v15 = vadd.f32 %v1722_v25, %v1721_v50  ;;  %v1781_v28 = vadd.f32 %v1720_v37, %v1719_v16  ;;  %v1796_v50 = vadd.f32 %v1730_v42, %v1729_v57 }
 0x211   : > { %v1733_v25 = vmul.f32 %v3980_v27, %v3980_v27  ;;  %v1731_v37 = vmul.f32 %v3966_v14, %v3966_v14  ;;  %v1736_v57 = vmul.f32 %v4001_v18, %v4001_v18 }
 0x214   : > { %1773 = vadd.xlane.f32.xlu1 %v1772_v19  ;;  %1770 = vadd.xlane.f32.xlu0 %v1769_v45  ;;  %v1724_v19 = vmul.f32 %v3920_v59, %v3920_v59  ;;  %v1727_v45 = vmul.f32 %v3938_v4, %v3938_v4 }
 0x216   : > { %v1787_v22 = vadd.f32 %v1724_v19, %v1723_v20  ;;  %v1735_v19 = vmul.f32 %v3994_v36, %v3994_v36 }
 0x218   : > { %1779 = vadd.xlane.f32.xlu1 %v1778_v29  ;;  %1776 = vadd.xlane.f32.xlu0 %v1775_v33  ;;  %v1728_v29 = vmul.f32 %v3944_v7, %v3944_v7  ;;  %v1734_v33 = vmul.f32 %v3987_v32, %v3987_v32 }
 0x21a   : > { %v1793_v16 = vadd.f32 %v1728_v29, %v1727_v45  ;;  %v1802_v38 = vadd.f32 %v1734_v33, %v1733_v25  ;;  %v1805_v45 = vadd.f32 %v1736_v57, %v1735_v19  ;;  %v1526_v19 = vld [vmem:[#allocation2 + $0x20] sm:$0xff] }
 0x21c   : > { %1785 = vadd.xlane.f32.xlu1 %v1784_v15  ;;  %1782 = vadd.xlane.f32.xlu0 %v1781_v28  ;;  %v1732_v15 = vmul.f32 %v3973_v23, %v3973_v23  ;;  %v1738_v28 = vmul.f32 %v4013_v47, %v4013_v47 }
 0x21e   : > { %v1799_v20 = vadd.f32 %v1732_v15, %v1731_v37  ;;  %v1808_v42 = vadd.f32 %v1738_v28, %v1737_v41  ;;  %v1523_v37 = vld [vmem:[#allocation2 + $0x8] sm:$0xff] }
 0x21f   : > { %v1527_v28 = vld [vmem:[#allocation2 + $0x28] sm:$0xff] }
 0x220   : > { %1791 = vadd.xlane.f32.xlu1 %v1790_v0  ;;  %1788 = vadd.xlane.f32.xlu0 %v1787_v22  ;;  %v1524_v0 = vld [vmem:[#allocation2 + $0x10] sm:$0xff]  ;;  %v1522_v22 = vld [vmem:[#allocation2] sm:$0xff] }
 0x224   : > { %1797 = vadd.xlane.f32.xlu1 %v1796_v50  ;;  %1794 = vadd.xlane.f32.xlu0 %v1793_v16  ;;  %v1525_v16 = vld [vmem:[#allocation2 + $0x18] sm:$0xff] }
 0x228   : > { %1803 = vadd.xlane.f32.xlu1 %v1802_v38  ;;  %1800 = vadd.xlane.f32.xlu0 %v1799_v20 }
 0x22c   : > { %1809 = vadd.xlane.f32.xlu1 %v1808_v42  ;;  %1806 = vadd.xlane.f32.xlu0 %v1805_v45 }
 0x259   : > { %v1554_v29 = vpop.xlane.xlu1 %1553  ;;  %v1548_v25 = vpop.xlane.xlu0 %1547 }
 0x25a   : > { %v1620_v50 = vadd.f32 %v1554_v29, %v1524_v0  ;;  %v1618_v33 = vadd.f32 %v1548_v25, %v1522_v22  ;;  %v1529_v22 = vld [vmem:[#allocation2 + $0x38] sm:$0xff]  ;;  %v1528_v29 = vld [vmem:[#allocation2 + $0x30] sm:$0xff] }
 0x25c   : > { %1645 = vst.msk [vmem:[#allocation2 + $0x10] sm:$0xff] %vm1642_vm2, %v1620_v50  ;;  %1643 = vst.msk [vmem:[#allocation2] sm:$0xff] %vm1642_vm2, %v1618_v33 }
 0x25d   : > { %v1557_v15 = vpop.xlane.xlu1 %1556  ;;  %v1551_v38 = vpop.xlane.xlu0 %1550 }
 0x25e   : > { %v1621_v20 = vadd.f32 %v1557_v15, %v1525_v16  ;;  %v1619_v41 = vadd.f32 %v1551_v38, %v1523_v37  ;;  %v1531_v37 = vld [vmem:[#allocation2 + $0x48] sm:$0xff]  ;;  %v1530_v15 = vld [vmem:[#allocation2 + $0x40] sm:$0xff] }
 0x260   : > { %1646 = vst.msk [vmem:[#allocation2 + $0x18] sm:$0xff] %vm1642_vm2, %v1621_v20  ;;  %1644 = vst.msk [vmem:[#allocation2 + $0x8] sm:$0xff] %vm1642_vm2, %v1619_v41 }
 0x261   : > { %v1563_v57 = vpop.xlane.xlu1 %1562  ;;  %v1560_v42 = vpop.xlane.xlu0 %1559 }
 0x262   : > { %v1623_v45 = vadd.f32 %v1563_v57, %v1527_v28  ;;  %v1622_v0 = vadd.f32 %v1560_v42, %v1526_v19  ;;  %v1533_v19 = vld [vmem:[#allocation2 + $0x58] sm:$0xff]  ;;  %v1532_v57 = vld [vmem:[#allocation2 + $0x50] sm:$0xff] }
 0x264   : > { %1648 = vst.msk [vmem:[#allocation2 + $0x28] sm:$0xff] %vm1642_vm2, %v1623_v45  ;;  %1647 = vst.msk [vmem:[#allocation2 + $0x20] sm:$0xff] %vm1642_vm2, %v1622_v0 }
 0x265   : > { %v1569_v25 = vpop.xlane.xlu1 %1568  ;;  %v1566_v50 = vpop.xlane.xlu0 %1565 }
 0x266   : > { %v1625_v33 = vadd.f32 %v1569_v25, %v1529_v22  ;;  %v1624_v16 = vadd.f32 %v1566_v50, %v1528_v29  ;;  %v1535_v29 = vld [vmem:[#allocation2 + $0x68] sm:$0xff]  ;;  %v1534_v25 = vld [vmem:[#allocation2 + $0x60] sm:$0xff] }
 0x268   : > { %1650 = vst.msk [vmem:[#allocation2 + $0x38] sm:$0xff] %vm1642_vm2, %v1625_v33  ;;  %1649 = vst.msk [vmem:[#allocation2 + $0x30] sm:$0xff] %vm1642_vm2, %v1624_v16 }
 0x269   : > { %v1575_v38 = vpop.xlane.xlu1 %1574  ;;  %v1572_v20 = vpop.xlane.xlu0 %1571 }
 0x26a   : > { %v1627_v41 = vadd.f32 %v1575_v38, %v1531_v37  ;;  %v1626_v28 = vadd.f32 %v1572_v20, %v1530_v15  ;;  %v1537_v15 = vld [vmem:[#allocation2 + $0x78] sm:$0xff]  ;;  %v1536_v38 = vld [vmem:[#allocation2 + $0x70] sm:$0xff] }
 0x26c   : > { %1652 = vst.msk [vmem:[#allocation2 + $0x48] sm:$0xff] %vm1642_vm2, %v1627_v41  ;;  %1651 = vst.msk [vmem:[#allocation2 + $0x40] sm:$0xff] %vm1642_vm2, %v1626_v28 }
 0x26d   : > { %v1581_v42 = vpop.xlane.xlu1 %1580  ;;  %v1578_v45 = vpop.xlane.xlu0 %1577 }
 0x26e   : > { %v1629_v0 = vadd.f32 %v1581_v42, %v1533_v19  ;;  %v1628_v22 = vadd.f32 %v1578_v45, %v1532_v57  ;;  %v1539_v57 = vld [vmem:[#allocation2 + $0x88] sm:$0xff]  ;;  %v1538_v42 = vld [vmem:[#allocation2 + $0x80] sm:$0xff] }
 0x270   : > { %1654 = vst.msk [vmem:[#allocation2 + $0x58] sm:$0xff] %vm1642_vm2, %v1629_v0  ;;  %1653 = vst.msk [vmem:[#allocation2 + $0x50] sm:$0xff] %vm1642_vm2, %v1628_v22 }
 0x271   : > { %v1587_v50 = vpop.xlane.xlu1 %1586  ;;  %v1584_v33 = vpop.xlane.xlu0 %1583 }
 0x272   : > { %v1631_v16 = vadd.f32 %v1587_v50, %v1535_v29  ;;  %v1630_v37 = vadd.f32 %v1584_v33, %v1534_v25  ;;  %v1541_v25 = vld [vmem:[#allocation2 + $0x98] sm:$0xff]  ;;  %v1540_v50 = vld [vmem:[#allocation2 + $0x90] sm:$0xff] }
 0x274   : > { %1656 = vst.msk [vmem:[#allocation2 + $0x68] sm:$0xff] %vm1642_vm2, %v1631_v16  ;;  %1655 = vst.msk [vmem:[#allocation2 + $0x60] sm:$0xff] %vm1642_vm2, %v1630_v37 }
 0x275   : > { %v1593_v20 = vpop.xlane.xlu1 %1592  ;;  %v1590_v41 = vpop.xlane.xlu0 %1589 }
 0x276   : > { %v1633_v28 = vadd.f32 %v1593_v20, %v1537_v15  ;;  %v1632_v19 = vadd.f32 %v1590_v41, %v1536_v38  ;;  %v1543_v38 = vld [vmem:[#allocation2 + $0xa8] sm:$0xff]  ;;  %v1542_v20 = vld [vmem:[#allocation2 + $0xa0] sm:$0xff] }
 0x278   : > { %1658 = vst.msk [vmem:[#allocation2 + $0x78] sm:$0xff] %vm1642_vm2, %v1633_v28  ;;  %1657 = vst.msk [vmem:[#allocation2 + $0x70] sm:$0xff] %vm1642_vm2, %v1632_v19 }
 0x279   : > { %v1599_v45 = vpop.xlane.xlu1 %1598  ;;  %v1596_v0 = vpop.xlane.xlu0 %1595 }
 0x27a   : > { %v1635_v22 = vadd.f32 %v1599_v45, %v1539_v57  ;;  %v1634_v29 = vadd.f32 %v1596_v0, %v1538_v42  ;;  %v1545_v42 = vld [vmem:[#allocation2 + $0xb8] sm:$0xff]  ;;  %v1544_v45 = vld [vmem:[#allocation2 + $0xb0] sm:$0xff] }
 0x27c   : > { %1660 = vst.msk [vmem:[#allocation2 + $0x88] sm:$0xff] %vm1642_vm2, %v1635_v22  ;;  %1659 = vst.msk [vmem:[#allocation2 + $0x80] sm:$0xff] %vm1642_vm2, %v1634_v29 }
 0x27d   : > { %v1605_v33 = vpop.xlane.xlu1 %1604  ;;  %v1602_v16 = vpop.xlane.xlu0 %1601 }
 0x27e   : > { %v1637_v37 = vadd.f32 %v1605_v33, %v1541_v25  ;;  %v1636_v15 = vadd.f32 %v1602_v16, %v1540_v50  ;;  %v1668_v50 = vld [vmem:[#allocation3 + $0x8] sm:$0xff]  ;;  %v1667_v33 = vld [vmem:[#allocation3] sm:$0xff] }
 0x280   : > { %1662 = vst.msk [vmem:[#allocation2 + $0x98] sm:$0xff] %vm1642_vm2, %v1637_v37  ;;  %1661 = vst.msk [vmem:[#allocation2 + $0x90] sm:$0xff] %vm1642_vm2, %v1636_v15 }
 0x281   : > { %v1611_v41 = vpop.xlane.xlu1 %1610  ;;  %v1608_v28 = vpop.xlane.xlu0 %1607 }
 0x282   : > { %v1639_v19 = vadd.f32 %v1611_v41, %v1543_v38  ;;  %v1638_v57 = vadd.f32 %v1608_v28, %v1542_v20  ;;  %v1670_v20 = vld [vmem:[#allocation3 + $0x18] sm:$0xff]  ;;  %v1669_v41 = vld [vmem:[#allocation3 + $0x10] sm:$0xff] }
 0x284   : > { %1664 = vst.msk [vmem:[#allocation2 + $0xa8] sm:$0xff] %vm1642_vm2, %v1639_v19  ;;  %1663 = vst.msk [vmem:[#allocation2 + $0xa0] sm:$0xff] %vm1642_vm2, %v1638_v57 }
 0x285   : > { %v1617_v0 = vpop.xlane.xlu1 %1616  ;;  %v1614_v22 = vpop.xlane.xlu0 %1613 }
 0x286   : > { %v1641_v29 = vadd.f32 %v1617_v0, %v1545_v42  ;;  %v1640_v25 = vadd.f32 %v1614_v22, %v1544_v45  ;;  %v1672_v45 = vld [vmem:[#allocation3 + $0x28] sm:$0xff]  ;;  %v1671_v0 = vld [vmem:[#allocation3 + $0x20] sm:$0xff] }
 0x288   : > { %1666 = vst.msk [vmem:[#allocation2 + $0xb8] sm:$0xff] %vm1642_vm2, %v1641_v29  ;;  %1665 = vst.msk [vmem:[#allocation2 + $0xb0] sm:$0xff] %vm1642_vm2, %v1640_v25 }
 0x289   : > { %v1744_v16 = vpop.xlane.xlu1 %1743  ;;  %v1741_v37 = vpop.xlane.xlu0 %1740 }
 0x28a   : > { %v1812_v15 = vadd.f32 %v1744_v16, %v1668_v50  ;;  %v1811_v38 = vadd.f32 %v1741_v37, %v1667_v33  ;;  %v1674_v33 = vld [vmem:[#allocation3 + $0x38] sm:$0xff]  ;;  %v1673_v16 = vld [vmem:[#allocation3 + $0x30] sm:$0xff] }
 0x28c   : > { %1836 = vst.msk [vmem:[#allocation3 + $0x8] sm:$0xff] %vm1642_vm2, %v1812_v15  ;;  %1835 = vst.msk [vmem:[#allocation3] sm:$0xff] %vm1642_vm2, %v1811_v38 }
 0x28d   : > { %v1750_v28 = vpop.xlane.xlu1 %1749  ;;  %v1747_v19 = vpop.xlane.xlu0 %1746 }
 0x28e   : > { %v1814_v57 = vadd.f32 %v1750_v28, %v1670_v20  ;;  %v1813_v42 = vadd.f32 %v1747_v19, %v1669_v41  ;;  %v1676_v41 = vld [vmem:[#allocation3 + $0x48] sm:$0xff]  ;;  %v1675_v28 = vld [vmem:[#allocation3 + $0x40] sm:$0xff] }
 0x290   : > { %1838 = vst.msk [vmem:[#allocation3 + $0x18] sm:$0xff] %vm1642_vm2, %v1814_v57  ;;  %1837 = vst.msk [vmem:[#allocation3 + $0x10] sm:$0xff] %vm1642_vm2, %v1813_v42 }
 0x291   : > { %v1756_v22 = vpop.xlane.xlu1 %1755  ;;  %v1753_v29 = vpop.xlane.xlu0 %1752 }
 0x292   : > { %v1816_v25 = vadd.f32 %v1756_v22, %v1672_v45  ;;  %v1815_v50 = vadd.f32 %v1753_v29, %v1671_v0  ;;  %v1678_v0 = vld [vmem:[#allocation3 + $0x58] sm:$0xff]  ;;  %v1677_v22 = vld [vmem:[#allocation3 + $0x50] sm:$0xff] }
 0x294   : > { %1840 = vst.msk [vmem:[#allocation3 + $0x28] sm:$0xff] %vm1642_vm2, %v1816_v25  ;;  %1839 = vst.msk [vmem:[#allocation3 + $0x20] sm:$0xff] %vm1642_vm2, %v1815_v50 }
 0x295   : > { %v1762_v37 = vpop.xlane.xlu1 %1761  ;;  %v1759_v15 = vpop.xlane.xlu0 %1758 }
 0x296   : > { %v1818_v38 = vadd.f32 %v1762_v37, %v1674_v33  ;;  %v1817_v20 = vadd.f32 %v1759_v15, %v1673_v16  ;;  %v1680_v16 = vld [vmem:[#allocation3 + $0x68] sm:$0xff]  ;;  %v1679_v37 = vld [vmem:[#allocation3 + $0x60] sm:$0xff] }
 0x298   : > { %1842 = vst.msk [vmem:[#allocation3 + $0x38] sm:$0xff] %vm1642_vm2, %v1818_v38  ;;  %1841 = vst.msk [vmem:[#allocation3 + $0x30] sm:$0xff] %vm1642_vm2, %v1817_v20 }
 0x299   : > { %v1768_v19 = vpop.xlane.xlu1 %1767  ;;  %v1765_v57 = vpop.xlane.xlu0 %1764 }
 0x29a   : > { %v1820_v42 = vadd.f32 %v1768_v19, %v1676_v41  ;;  %v1819_v45 = vadd.f32 %v1765_v57, %v1675_v28  ;;  %v1682_v28 = vld [vmem:[#allocation3 + $0x78] sm:$0xff]  ;;  %v1681_v19 = vld [vmem:[#allocation3 + $0x70] sm:$0xff] }
 0x29c   : > { %1844 = vst.msk [vmem:[#allocation3 + $0x48] sm:$0xff] %vm1642_vm2, %v1820_v42  ;;  %1843 = vst.msk [vmem:[#allocation3 + $0x40] sm:$0xff] %vm1642_vm2, %v1819_v45 }
 0x29d   : > { %v1774_v29 = vpop.xlane.xlu1 %1773  ;;  %v1771_v25 = vpop.xlane.xlu0 %1770 }
 0x29e   : > { %v1822_v50 = vadd.f32 %v1774_v29, %v1678_v0  ;;  %v1821_v33 = vadd.f32 %v1771_v25, %v1677_v22  ;;  %v1684_v22 = vld [vmem:[#allocation3 + $0x88] sm:$0xff]  ;;  %v1683_v29 = vld [vmem:[#allocation3 + $0x80] sm:$0xff] }
 0x2a0   : > { %1846 = vst.msk [vmem:[#allocation3 + $0x58] sm:$0xff] %vm1642_vm2, %v1822_v50  ;;  %1845 = vst.msk [vmem:[#allocation3 + $0x50] sm:$0xff] %vm1642_vm2, %v1821_v33 }
 0x2a1   : > { %v1780_v15 = vpop.xlane.xlu1 %1779  ;;  %v1777_v38 = vpop.xlane.xlu0 %1776 }
 0x2a2   : > { %v1824_v20 = vadd.f32 %v1780_v15, %v1680_v16  ;;  %v1823_v41 = vadd.f32 %v1777_v38, %v1679_v37  ;;  %v1686_v37 = vld [vmem:[#allocation3 + $0x98] sm:$0xff]  ;;  %v1685_v15 = vld [vmem:[#allocation3 + $0x90] sm:$0xff] }
 0x2a4   : > { %1848 = vst.msk [vmem:[#allocation3 + $0x68] sm:$0xff] %vm1642_vm2, %v1824_v20  ;;  %1847 = vst.msk [vmem:[#allocation3 + $0x60] sm:$0xff] %vm1642_vm2, %v1823_v41 }
 0x2a5   : > { %v1786_v57 = vpop.xlane.xlu1 %1785  ;;  %v1783_v42 = vpop.xlane.xlu0 %1782 }
 0x2a6   : > { %v1826_v45 = vadd.f32 %v1786_v57, %v1682_v28  ;;  %v1825_v0 = vadd.f32 %v1783_v42, %v1681_v19  ;;  %v1688_v19 = vld [vmem:[#allocation3 + $0xa8] sm:$0xff]  ;;  %v1687_v57 = vld [vmem:[#allocation3 + $0xa0] sm:$0xff] }
 0x2a8   : > { %1850 = vst.msk [vmem:[#allocation3 + $0x78] sm:$0xff] %vm1642_vm2, %v1826_v45  ;;  %1849 = vst.msk [vmem:[#allocation3 + $0x70] sm:$0xff] %vm1642_vm2, %v1825_v0 }
 0x2a9   : > { %v1792_v25 = vpop.xlane.xlu1 %1791  ;;  %v1789_v50 = vpop.xlane.xlu0 %1788 }
 0x2aa   : > { %v1828_v33 = vadd.f32 %v1792_v25, %v1684_v22  ;;  %v1827_v16 = vadd.f32 %v1789_v50, %v1683_v29  ;;  %v1690_v29 = vld [vmem:[#allocation3 + $0xb8] sm:$0xff]  ;;  %v1689_v25 = vld [vmem:[#allocation3 + $0xb0] sm:$0xff] }
 0x2ac   : > { %1852 = vst.msk [vmem:[#allocation3 + $0x88] sm:$0xff] %vm1642_vm2, %v1828_v33  ;;  %1851 = vst.msk [vmem:[#allocation3 + $0x80] sm:$0xff] %vm1642_vm2, %v1827_v16 }
 0x2ad   : > { %v1798_v38 = vpop.xlane.xlu1 %1797  ;;  %v1795_v20 = vpop.xlane.xlu0 %1794 }
 0x2ae   : > { %v1830_v41 = vadd.f32 %v1798_v38, %v1686_v37  ;;  %v1829_v28 = vadd.f32 %v1795_v20, %v1685_v15 }
 0x2b0   : > { %1854 = vst.msk [vmem:[#allocation3 + $0x98] sm:$0xff] %vm1642_vm2, %v1830_v41  ;;  %1853 = vst.msk [vmem:[#allocation3 + $0x90] sm:$0xff] %vm1642_vm2, %v1829_v28 }
 0x2b1   : > { %v1804_v42 = vpop.xlane.xlu1 %1803  ;;  %v1801_v45 = vpop.xlane.xlu0 %1800 }
 0x2b2   : > { %v1832_v0 = vadd.f32 %v1804_v42, %v1688_v19  ;;  %v1831_v22 = vadd.f32 %v1801_v45, %v1687_v57 }
 0x2b4   : > { %1856 = vst.msk [vmem:[#allocation3 + $0xa8] sm:$0xff] %vm1642_vm2, %v1832_v0  ;;  %1855 = vst.msk [vmem:[#allocation3 + $0xa0] sm:$0xff] %vm1642_vm2, %v1831_v22 }
 0x2b5   : > { %v1810_v50 = vpop.xlane.xlu1 %1809  ;;  %v1807_v33 = vpop.xlane.xlu0 %1806 }
 0x2b6   : > { %v1834_v16 = vadd.f32 %v1810_v50, %v1690_v29  ;;  %v1833_v37 = vadd.f32 %v1807_v33, %v1689_v25 }
 0x2b8   : > { %1858 = vst.msk [vmem:[#allocation3 + $0xb8] sm:$0xff] %vm1642_vm2, %v1834_v16  ;;  %1857 = vst.msk [vmem:[#allocation3 + $0xb0] sm:$0xff] %vm1642_vm2, %v1833_v37 }
 0x2b9 PF: > { %p1859_p12 = pnand %p261_p9, %p258_p7 }
 0x2bb   : > { %1862 = sbr.rel (%p1859_p12) target bundleno = 769 (0x301), region = 48 }
 0x2c0   : > { %v1863_v15 = vld [vmem:[#allocation2] sm:$0xff]  ;;  %v1864_v28 = vld [vmem:[#allocation2 + $0x8] sm:$0xff]  ;;  %v1865_v45 = vld [vmem:[#allocation2 + $0x10] sm:$0xff]  ;;  %vm2103_vm3 = vcmask 7168  }
 0x2c1   : > { %v1911_v38 = vld [vmem:[#allocation3] sm:$0xff]  ;;  %v4212_v20 = vmul.f32 0.001953125, %v1863_v15  ;;  %v1912_v19 = vld [vmem:[#allocation3 + $0x8] sm:$0xff]  ;;  %v4214_v57 = vmul.f32 0.001953125, %v1864_v28  ;;  %v1913_v0 = vld [vmem:[#allocation3 + $0x10] sm:$0xff]  ;;  %v4218_v29 = vmul.f32 0.001953125, %v1865_v45 }
 0x2c2   : > { %v1935_v41 = vmul.f32 0.001953125, %v1911_v38  ;;  %v1936_v42 = vmul.f32 0.001953125, %v1912_v19  ;;  %v1937_v25 = vmul.f32 0.001953125, %v1913_v0  ;;  %v1866_v50 = vld [vmem:[#allocation2 + $0x18] sm:$0xff]  ;;  %v1867_v38 = vld [vmem:[#allocation2 + $0x20] sm:$0xff]  ;;  %v1868_v45 = vld [vmem:[#allocation2 + $0x28] sm:$0xff] }
 0x2c3   : > { %v1959_v22 = vmul.f32 %v4212_v20, %v4212_v20  ;;  %v1914_v33 = vld [vmem:[#allocation3 + $0x18] sm:$0xff]  ;;  %v1960_v16 = vmul.f32 %v4214_v57, %v4214_v57  ;;  %v4222_v37 = vmul.f32 0.001953125, %v1866_v50  ;;  %v1915_v28 = vld [vmem:[#allocation3 + $0x20] sm:$0xff]  ;;  %v1961_v19 = vmul.f32 %v4218_v29, %v4218_v29  ;;  %v1916_v24 = vld [vmem:[#allocation3 + $0x28] sm:$0xff] }
 0x2c4   : > { %v1938_v15 = vmul.f32 0.001953125, %v1914_v33  ;;  %v4226_v36 = vmul.f32 0.001953125, %v1867_v38  ;;  %v1939_v47 = vmul.f32 0.001953125, %v1915_v28  ;;  %v4230_v14 = vmul.f32 0.001953125, %v1868_v45  ;;  %v1869_v32 = vld [vmem:[#allocation2 + $0x30] sm:$0xff]  ;;  %v1870_v38 = vld [vmem:[#allocation2 + $0x38] sm:$0xff] }
 0x2c5   : > { %v1983_v18 = vsub.f32 %v1935_v41, %v1959_v22  ;;  %v1984_v0 = vsub.f32 %v1936_v42, %v1960_v16  ;;  %v1962_v23 = vmul.f32 %v4222_v37, %v4222_v37  ;;  %v1940_v50 = vmul.f32 0.001953125, %v1916_v24  ;;  %v1917_v33 = vld [vmem:[#allocation3 + $0x30] sm:$0xff]  ;;  %v1918_v6 = vld [vmem:[#allocation3 + $0x38] sm:$0xff]  ;;  %v1919_v59 = vld [vmem:[#allocation3 + $0x40] sm:$0xff] }
 0x2c6   : > { %v1985_v7 = vsub.f32 %v1937_v25, %v1961_v19  ;;  %v1963_v41 = vmul.f32 %v4226_v36, %v4226_v36  ;;  %v4234_v22 = vmul.f32 0.001953125, %v1869_v32  ;;  %v1964_v42 = vmul.f32 %v4230_v14, %v4230_v14  ;;  %v1871_v25 = vld [vmem:[#allocation2 + $0x40] sm:$0xff]  ;;  %v1877_v51 = vld [vmem:[#allocation2 + $0x70] sm:$0xff]  ;;  %v1930_v49 = vld [vmem:[#allocation3 + $0x98] sm:$0xff] }
 0x2c7   : > { %v2007_v27 = vadd.f32 1e-05, %v1983_v18  ;;  %v2008_v28 = vadd.f32 1e-05, %v1984_v0  ;;  %v1986_v4 = vsub.f32 %v1938_v15, %v1962_v23  ;;  %v1941_v16 = vmul.f32 0.001953125, %v1917_v33  ;;  %v1872_v0 = vld [vmem:[#allocation2 + $0x48] sm:$0xff] }
 0x2c8   : > { %v2009_v45 = vadd.f32 1e-05, %v1985_v7  ;;  %v1987_v24 = vsub.f32 %v1939_v47, %v1963_v41  ;;  %v1965_v18 = vmul.f32 %v4234_v22, %v4234_v22  ;;  %v1988_v31 = vsub.f32 %v1940_v50, %v1964_v42  ;;  %v1920_v33 = vld [vmem:[#allocation3 + $0x48] sm:$0xff]  ;;  %v1873_v41 = vld [vmem:[#allocation2 + $0x50] sm:$0xff]  ;;  %v1874_v42 = vld [vmem:[#allocation2 + $0x58] sm:$0xff] }
 0x2c9   : > { %2894 = vrsqrt.f32 %v2007_v27  ;;  %v2010_v19 = vadd.f32 1e-05, %v1986_v4  ;;  %v4240_v32 = vmul.f32 0.001953125, %v1870_v38  ;;  %v1942_v63 = vmul.f32 0.001953125, %v1918_v6  ;;  %v1879_v56 = vld [vmem:[#allocation2 + $0x80] sm:$0xff] }
 0x2ca   : > { %2896 = vrsqrt.f32 %v2008_v28  ;;  %v2011_v23 = vadd.f32 1e-05, %v1987_v24  ;;  %v1989_v15 = vsub.f32 %v1941_v16, %v1965_v18  ;;  %v2012_v27 = vadd.f32 1e-05, %v1988_v31  ;;  %v1921_v28 = vld [vmem:[#allocation3 + $0x50] sm:$0xff]  ;;  %v1875_v24 = vld [vmem:[#allocation2 + $0x60] sm:$0xff] }
 0x2cb   : > { %2898 = vrsqrt.f32 %v2009_v45  ;;  %v1966_v7 = vmul.f32 %v4240_v32, %v4240_v32  ;;  %v4244_v47 = vmul.f32 0.001953125, %v1871_v25  ;;  %v1943_v50 = vmul.f32 0.001953125, %v1919_v59  ;;  %v1922_v45 = vld [vmem:[#allocation3 + $0x58] sm:$0xff]  ;;  %v1923_v18 = vld [vmem:[#allocation3 + $0x60] sm:$0xff] }
 0x2cc   : > { %2900 = vrsqrt.f32 %v2010_v19  ;;  %v2013_v4 = vadd.f32 1e-05, %v1989_v15  ;;  %v4246_v38 = vmul.f32 0.001953125, %v1872_v0  ;;  %v1944_v16 = vmul.f32 0.001953125, %v1920_v33  ;;  %v1876_v0 = vld [vmem:[#allocation2 + $0x68] sm:$0xff] }
 0x2cd   : > { %2902 = vrsqrt.f32 %v2011_v23  ;;  %v1990_v6 = vsub.f32 %v1942_v63, %v1966_v7  ;;  %v1967_v31 = vmul.f32 %v4244_v47, %v4244_v47  ;;  %v4252_v19 = vmul.f32 0.001953125, %v1873_v41  ;;  %v1924_v63 = vld [vmem:[#allocation3 + $0x68] sm:$0xff] }
 0x2ce   : > { %2904 = vrsqrt.f32 %v2012_v27  ;;  %v1968_v25 = vmul.f32 %v4246_v38, %v4246_v38  ;;  %v1945_v59 = vmul.f32 0.001953125, %v1921_v28  ;;  %v4254_v1 = vmul.f32 0.001953125, %v1874_v42 }
 0x2cf   : > { %2906 = vrsqrt.f32 %v2013_v4  ;;  %v2014_v23 = vadd.f32 1e-05, %v1990_v6  ;;  %v1991_v15 = vsub.f32 %v1943_v50, %v1967_v31  ;;  %v1946_v27 = vmul.f32 0.001953125, %v1922_v45  ;;  %v1925_v50 = vld [vmem:[#allocation3 + $0x70] sm:$0xff] }
 0x2d0   : > { %v1992_v7 = vsub.f32 %v1944_v16, %v1968_v25  ;;  %v1969_v33 = vmul.f32 %v4252_v19, %v4252_v19  ;;  %v4258_v62 = vmul.f32 0.001953125, %v1875_v24  ;;  %v1947_v4 = vmul.f32 0.001953125, %v1923_v18  ;;  %v1878_v16 = vld [vmem:[#allocation2 + $0x78] sm:$0xff]  ;;  %v2055_v24 = vld [vmem:[%s4758_s2] sm:$0xff] }
 0x2d1   : > { %2908 = vrsqrt.f32 %v2014_v23  ;;  %v2015_v9 = vadd.f32 1e-05, %v1991_v15  ;;  %v1970_v41 = vmul.f32 %v4254_v1, %v4254_v1  ;;  %v4262_v28 = vmul.f32 0.001953125, %v1876_v0  ;;  %v1926_v0 = vld [vmem:[#allocation3 + $0x78] sm:$0xff] }
 0x2d2   : > { %v2016_v42 = vadd.f32 1e-05, %v1992_v7  ;;  %v1993_v6 = vsub.f32 %v1945_v59, %v1969_v33  ;;  %v1971_v45 = vmul.f32 %v4258_v62, %v4258_v62  ;;  %v1948_v31 = vmul.f32 0.001953125, %v1924_v63  ;;  %v2056_v59 = vld [vmem:[%s4758_s2 + $0x8] sm:$0xff] }
 0x2d3   : > { %2910 = vrsqrt.f32 %v2015_v9  ;;  %v1994_v18 = vsub.f32 %v1946_v27, %v1970_v41  ;;  %v1972_v25 = vmul.f32 %v4262_v28, %v4262_v28  ;;  %v4271_v23 = vmul.f32 0.001953125, %v1877_v51  ;;  %v2057_v9 = vld [vmem:[%s4758_s2 + $0x10] sm:$0xff] }
 0x2d4   : > { %2912 = vrsqrt.f32 %v2016_v42  ;;  %v2017_v15 = vadd.f32 1e-05, %v1993_v6  ;;  %v1995_v63 = vsub.f32 %v1947_v4, %v1971_v45  ;;  %v1949_v7 = vmul.f32 0.001953125, %v1925_v50  ;;  %v2058_v4 = vld [vmem:[%s4758_s2 + $0x18] sm:$0xff]  ;;  %v1927_v6 = vld [vmem:[#allocation3 + $0x80] sm:$0xff] }
 0x2d5   : > { %v2018_v27 = vadd.f32 1e-05, %v1994_v18  ;;  %v1996_v41 = vsub.f32 %v1948_v31, %v1972_v25  ;;  %v1973_v51 = vmul.f32 %v4271_v23, %v4271_v23  ;;  %v4281_v5 = vmul.f32 0.001953125, %v1878_v16  ;;  %v2059_v31 = vld [vmem:[%s4758_s2 + $0x20] sm:$0xff] }
 0x2d6   : > { %v2895_v33 = vpop.eup %2894  ;;  %2914 = vrsqrt.f32 %v2017_v15  ;;  %v2019_v50 = vadd.f32 1e-05, %v1995_v63  ;;  %v1950_v42 = vmul.f32 0.001953125, %v1926_v0  ;;  %v2060_v0 = vld [vmem:[%s4758_s2 + $0x28] sm:$0xff]  ;;  %v1881_v63 = vld [vmem:[#allocation2 + $0x90] sm:$0xff] }
 0x2d7   : > { %v2897_v3 = vpop.eup %2896  ;;  %v4283_v2 = vmul.f32 %v2895_v33, %v2055_v24  ;;  %2916 = vrsqrt.f32 %v2018_v27  ;;  %v2020_v16 = vadd.f32 1e-05, %v1996_v41  ;;  %v1997_v25 = vsub.f32 %v1949_v7, %v1973_v51  ;;  %v1880_v24 = vld [vmem:[#allocation2 + $0x88] sm:$0xff] }
 0x2d8   : > { %v2899_v45 = vpop.eup %2898  ;;  %v4288_v18 = vmul.f32 %v2897_v3, %v2056_v59  ;;  %2918 = vrsqrt.f32 %v2019_v50  ;;  %v1974_v3 = vmul.f32 %v4281_v5, %v4281_v5  ;;  %v4302_v59 = vmul.f32 0.001953125, %v1879_v56  ;;  %v1928_v15 = vld [vmem:[#allocation3 + $0x88] sm:$0xff] }
 0x2d9   : > { %v2901_v33 = vpop.eup %2900  ;;  %2104 = vst.msk [vmem:[#allocation4] sm:$0xff] %vm2103_vm3, %v4283_v2  ;;  %v4295_v60 = vmul.f32 %v2899_v45, %v2057_v9  ;;  %v2061_v9 = vld [vmem:[%s4758_s2 + $0x30] sm:$0xff]  ;;  %2920 = vrsqrt.f32 %v2020_v16  ;;  %v2021_v41 = vadd.f32 1e-05, %v1997_v25  ;;  %v1951_v51 = vmul.f32 0.001953125, %v1927_v6 }
 0x2da   : > { %v2903_v7 = vpop.eup %2902  ;;  %2105 = vst.msk [vmem:[#allocation4 + $0x8] sm:$0xff] %vm2103_vm3, %v4288_v18  ;;  %v4306_v27 = vmul.f32 %v2901_v33, %v2058_v4  ;;  %v1998_v45 = vsub.f32 %v1950_v42, %v1974_v3  ;;  %v1975_v58 = vmul.f32 %v4302_v59, %v4302_v59  ;;  %v4317_v52 = vmul.f32 0.001953125, %v1880_v24  ;;  %v1929_v4 = vld [vmem:[#allocation3 + $0x90] sm:$0xff]  ;;  %v1882_v33 = vld [vmem:[#allocation2 + $0x98] sm:$0xff] }
 0x2db   : > { %v2905_v50 = vpop.eup %2904  ;;  %2106 = vst.msk [vmem:[#allocation4 + $0x10] sm:$0xff] %vm2103_vm3, %v4295_v60  ;;  %v4313_v56 = vmul.f32 %v2903_v7, %v2059_v31  ;;  %2922 = vrsqrt.f32 %v2021_v41  ;;  %v1952_v16 = vmul.f32 0.001953125, %v1928_v15  ;;  %v4323_v25 = vmul.f32 0.001953125, %v1881_v63  ;;  %v1883_v31 = vld [vmem:[#allocation2 + $0xa0] sm:$0xff]  ;;  %v2062_v24 = vld [vmem:[%s4758_s2 + $0x38] sm:$0xff] }
 0x2dc   : > { %v2907_v34 = vpop.eup %2906  ;;  %2107 = vst.msk [vmem:[#allocation4 + $0x18] sm:$0xff] %vm2103_vm3, %v4306_v27  ;;  %v4321_v6 = vmul.f32 %v2905_v50, %v2060_v0  ;;  %v2022_v3 = vadd.f32 1e-05, %v1998_v45  ;;  %v1999_v7 = vsub.f32 %v1951_v51, %v1975_v58  ;;  %v1976_v0 = vmul.f32 %v4317_v52, %v4317_v52  ;;  %v1931_v50 = vld [vmem:[#allocation3 + $0xa0] sm:$0xff] }
 0x2dd   : > { %2108 = vst.msk [vmem:[#allocation4 + $0x20] sm:$0xff] %vm2103_vm3, %v4313_v56  ;;  %v4327_v42 = vmul.f32 %v2907_v34, %v2061_v9  ;;  %v1953_v15 = vmul.f32 0.001953125, %v1929_v4  ;;  %v1977_v63 = vmul.f32 %v4323_v25, %v4323_v25  ;;  %v4338_v41 = vmul.f32 0.001953125, %v1882_v33  ;;  %v1884_v9 = vld [vmem:[#allocation2 + $0xa8] sm:$0xff]  ;;  %v2063_v58 = vld [vmem:[%s4758_s2 + $0x40] sm:$0xff] }
 0x2de   : > { %2109 = vst.msk [vmem:[#allocation4 + $0x28] sm:$0xff] %vm2103_vm3, %v4321_v6  ;;  %v1954_v34 = vmul.f32 0.001953125, %v1930_v49  ;;  %v2909_v55 = vpop.eup %2908  ;;  %2924 = vrsqrt.f32 %v2022_v3  ;;  %v2023_v51 = vadd.f32 1e-05, %v1999_v7  ;;  %v2000_v45 = vsub.f32 %v1952_v16, %v1976_v0  ;;  %v1932_v4 = vld [vmem:[#allocation3 + $0xa8] sm:$0xff]  ;;  %v1885_v3 = vld [vmem:[#allocation2 + $0xb0] sm:$0xff] }
 0x2df   : > { %2110 = vst.msk [vmem:[#allocation4 + $0x30] sm:$0xff] %vm2103_vm3, %v4327_v42  ;;  %v4345_v40 = vmul.f32 0.001953125, %v1883_v31  ;;  %v4347_v46 = vmul.f32 %v2909_v55, %v2062_v24  ;;  %v2064_v49 = vld [vmem:[%s4758_s2 + $0x48] sm:$0xff]  ;;  %v2001_v33 = vsub.f32 %v1953_v15, %v1977_v63  ;;  %v1978_v43 = vmul.f32 %v4338_v41, %v4338_v41  ;;  %v1933_v55 = vld [vmem:[#allocation3 + $0xb0] sm:$0xff] }
 0x2e0   : > { %v1955_v53 = vmul.f32 0.001953125, %v1931_v50  ;;  %v2911_v48 = vpop.eup %2910  ;;  %2926 = vrsqrt.f32 %v2023_v51  ;;  %v2024_v13 = vadd.f32 1e-05, %v2000_v45  ;;  %v4356_v31 = vmul.f32 0.001953125, %v1884_v9  ;;  %v2065_v0 = vld [vmem:[%s4758_s2 + $0x50] sm:$0xff]  ;;  %v1886_v51 = vld [vmem:[#allocation2 + $0xb8] sm:$0xff] }
 0x2e1   : > { %v1979_v16 = vmul.f32 %v4345_v40, %v4345_v40  ;;  %v2913_v24 = vpop.eup %2912  ;;  %2111 = vst.msk [vmem:[#allocation4 + $0x38] sm:$0xff] %vm2103_vm3, %v4347_v46  ;;  %v4360_v7 = vmul.f32 %v2911_v48, %v2063_v58  ;;  %v2025_v50 = vadd.f32 1e-05, %v2001_v33  ;;  %v2002_v15 = vsub.f32 %v1954_v34, %v1978_v43  ;;  %v2066_v9 = vld [vmem:[%s4758_s2 + $0x58] sm:$0xff]  ;;  %v2067_v43 = vld [vmem:[%s4758_s2 + $0x60] sm:$0xff] }
 0x2e2   : > { %v1956_v63 = vmul.f32 0.001953125, %v1932_v4  ;;  %v4365_v45 = vmul.f32 %v2913_v24, %v2064_v49  ;;  %2928 = vrsqrt.f32 %v2024_v13  ;;  %v1980_v48 = vmul.f32 %v4356_v31, %v4356_v31  ;;  %v1934_v58 = vld [vmem:[#allocation3 + $0xb8] sm:$0xff]  ;;  %v2068_v13 = vld [vmem:[%s4758_s2 + $0x68] sm:$0xff] }
 0x2e3   : > { %v2003_v10 = vsub.f32 %v1955_v53, %v1979_v16  ;;  %v2915_v35 = vpop.eup %2914  ;;  %2112 = vst.msk [vmem:[#allocation4 + $0x40] sm:$0xff] %vm2103_vm3, %v4360_v7  ;;  %2930 = vrsqrt.f32 %v2025_v50  ;;  %v2026_v34 = vadd.f32 1e-05, %v2002_v15  ;;  %v4377_v4 = vmul.f32 0.001953125, %v1885_v3 }
 0x2e4   : > { %v1957_v49 = vmul.f32 0.001953125, %v1933_v55  ;;  %v2917_v33 = vpop.eup %2916  ;;  %2113 = vst.msk [vmem:[#allocation4 + $0x48] sm:$0xff] %vm2103_vm3, %v4365_v45  ;;  %v4381_v53 = vmul.f32 %v2915_v35, %v2065_v0  ;;  %v2004_v24 = vsub.f32 %v1956_v63, %v1980_v48  ;;  %v4386_v30 = vmul.f32 0.001953125, %v1886_v51  ;;  %v2128_v51 = vld [vmem:[%s4759_s3] sm:$0xff] }
 0x2e5   : > { %v2027_v16 = vadd.f32 1e-05, %v2003_v10  ;;  %v2919_v44 = vpop.eup %2918  ;;  %v4388_v50 = vmul.f32 %v2917_v33, %v2066_v9  ;;  %2932 = vrsqrt.f32 %v2026_v34  ;;  %v1981_v3 = vmul.f32 %v4377_v4, %v4377_v4  ;;  %v2069_v10 = vld [vmem:[%s4758_s2 + $0x70] sm:$0xff]  ;;  %v2129_v9 = vld [vmem:[%s4759_s3 + $0x8] sm:$0xff]  ;;  %v2131_v33 = vld [vmem:[%s4759_s3 + $0x18] sm:$0xff] }
 0x2e6   : > { %v1958_v55 = vmul.f32 0.001953125, %v1934_v58  ;;  %v2921_v15 = vpop.eup %2920  ;;  %2114 = vst.msk [vmem:[#allocation4 + $0x50] sm:$0xff] %vm2103_vm3, %v4381_v53  ;;  %v4394_v35 = vmul.f32 %v2919_v44, %v2067_v43  ;;  %v2028_v0 = vadd.f32 1e-05, %v2004_v24  ;;  %v1982_v63 = vmul.f32 %v4386_v30, %v4386_v30  ;;  %v2130_v34 = vld [vmem:[%s4759_s3 + $0x10] sm:$0xff] }
 0x2e7   : > { %2934 = vrsqrt.f32 %v2027_v16  ;;  %2115 = vst.msk [vmem:[#allocation4 + $0x58] sm:$0xff] %vm2103_vm3, %v4388_v50  ;;  %v4409_v44 = vmul.f32 %v2921_v15, %v2068_v13  ;;  %v2005_v48 = vsub.f32 %v1957_v49, %v1981_v3  ;;  %v2152_v58 = vmul.f32 %v4283_v2, %v4212_v20 }
 0x2e8   : > { %v2153_v43 = vmul.f32 %v4288_v18, %v4214_v57  ;;  %v2923_v16 = vpop.eup %2922  ;;  %2116 = vst.msk [vmem:[#allocation4 + $0x60] sm:$0xff] %vm2103_vm3, %v4394_v35  ;;  %2936 = vrsqrt.f32 %v2028_v0  ;;  %v2006_v49 = vsub.f32 %v1958_v55, %v1982_v63  ;;  %v2154_v2 = vmul.f32 %v4295_v60, %v4218_v29  ;;  %v2070_v18 = vld [vmem:[%s4758_s2 + $0x78] sm:$0xff]  ;;  %v2132_v55 = vld [vmem:[%s4759_s3 + $0x20] sm:$0xff] }
 0x2e9   : > { %v2155_v20 = vmul.f32 %v4306_v27, %v4222_v37  ;;  %2117 = vst.msk [vmem:[#allocation4 + $0x68] sm:$0xff] %vm2103_vm3, %v4409_v44  ;;  %v2093_v57 = vmul.f32 %v2923_v16, %v2069_v10  ;;  %v2029_v13 = vadd.f32 1e-05, %v2005_v48  ;;  %v2176_v24 = vsub.f32 %v2128_v51, %v2152_v58  ;;  %v2133_v27 = vld [vmem:[%s4759_s3 + $0x28] sm:$0xff]  ;;  %v2134_v10 = vld [vmem:[%s4759_s3 + $0x30] sm:$0xff]  ;;  %v2135_v0 = vld [vmem:[%s4759_s3 + $0x38] sm:$0xff] }
 0x2ea   : > { %v2177_v3 = vsub.f32 %v2129_v9, %v2153_v43  ;;  %v2030_v15 = vadd.f32 1e-05, %v2006_v49  ;;  %v2178_v60 = vsub.f32 %v2130_v34, %v2154_v2  ;;  %v2156_v37 = vmul.f32 %v4313_v56, %v4226_v36  ;;  %v2071_v51 = vld [vmem:[%s4758_s2 + $0x80] sm:$0xff]  ;;  %v2072_v43 = vld [vmem:[%s4758_s2 + $0x88] sm:$0xff]  ;;  %v2138_v49 = vld [vmem:[%s4759_s3 + $0x50] sm:$0xff] }
 0x2eb   : > { %v2179_v29 = vsub.f32 %v2131_v33, %v2155_v20  ;;  %v2925_v63 = vpop.eup %2924  ;;  %2118 = vst.msk [vmem:[#allocation4 + $0x70] sm:$0xff] %vm2103_vm3, %v2093_v57  ;;  %2938 = vrsqrt.f32 %v2029_v13  ;;  %2200 = vst.msk [vmem:[#allocation5] sm:$0xff] %vm2103_vm3, %v2176_v24  ;;  %v2157_v36 = vmul.f32 %v4321_v6, %v4230_v14  ;;  %v2158_v56 = vmul.f32 %v4327_v42, %v4234_v22  ;;  %v2136_v48 = vld [vmem:[%s4759_s3 + $0x40] sm:$0xff]  ;;  %v2073_v6 = vld [vmem:[%s4758_s2 + $0x90] sm:$0xff] }
 0x2ec   : > { %2201 = vst.msk [vmem:[#allocation5 + $0x8] sm:$0xff] %vm2103_vm3, %v2177_v3  ;;  %v2159_v9 = vmul.f32 %v4347_v46, %v4240_v32  ;;  %v2094_v58 = vmul.f32 %v2925_v63, %v2070_v18  ;;  %2940 = vrsqrt.f32 %v2030_v15  ;;  %2202 = vst.msk [vmem:[#allocation5 + $0x10] sm:$0xff] %vm2103_vm3, %v2178_v60  ;;  %v2180_v14 = vsub.f32 %v2132_v55, %v2156_v37  ;;  %v2137_v46 = vld [vmem:[%s4759_s3 + $0x48] sm:$0xff]  ;;  %v2142_v13 = vld [vmem:[%s4759_s3 + $0x70] sm:$0xff] }
 0x2ed   : > { %2203 = vst.msk [vmem:[#allocation5 + $0x18] sm:$0xff] %vm2103_vm3, %v2179_v29  ;;  %v2160_v22 = vmul.f32 %v4360_v7, %v4244_v47  ;;  %v2927_v32 = vpop.eup %2926  ;;  %v2181_v42 = vsub.f32 %v2133_v27, %v2157_v36  ;;  %v2182_v34 = vsub.f32 %v2134_v10, %v2158_v56  ;;  %v2161_v16 = vmul.f32 %v4365_v45, %v4246_v38  ;;  %v2139_v47 = vld [vmem:[%s4759_s3 + $0x58] sm:$0xff]  ;;  %v2140_v45 = vld [vmem:[%s4759_s3 + $0x60] sm:$0xff]  ;;  %v2141_v18 = vld [vmem:[%s4759_s3 + $0x68] sm:$0xff] }
 0x2ee   : > { %v2183_v33 = vsub.f32 %v2135_v0, %v2159_v9  ;;  %2119 = vst.msk [vmem:[#allocation4 + $0x78] sm:$0xff] %vm2103_vm3, %v2094_v58  ;;  %v2095_v7 = vmul.f32 %v2927_v32, %v2071_v51  ;;  %2204 = vst.msk [vmem:[#allocation5 + $0x20] sm:$0xff] %vm2103_vm3, %v2180_v14  ;;  %v2162_v20 = vmul.f32 %v4381_v53, %v4252_v19  ;;  %v2143_v3 = vld [vmem:[%s4759_s3 + $0x78] sm:$0xff]  ;;  %v2144_v27 = vld [vmem:[%s4759_s3 + $0x80] sm:$0xff] }
 0x2ef   : > { %v2184_v2 = vsub.f32 %v2136_v48, %v2160_v22  ;;  %v2163_v38 = vmul.f32 %v4388_v50, %v4254_v1  ;;  %v2929_v24 = vpop.eup %2928  ;;  %2205 = vst.msk [vmem:[#allocation5 + $0x28] sm:$0xff] %vm2103_vm3, %v2181_v42  ;;  %2206 = vst.msk [vmem:[#allocation5 + $0x30] sm:$0xff] %vm2103_vm3, %v2182_v34  ;;  %v2185_v1 = vsub.f32 %v2137_v46, %v2161_v16  ;;  %v2074_v60 = vld [vmem:[%s4758_s2 + $0x98] sm:$0xff]  ;;  %v2145_v10 = vld [vmem:[%s4759_s3 + $0x88] sm:$0xff] }
 0x2f0   : > { %2207 = vst.msk [vmem:[#allocation5 + $0x38] sm:$0xff] %vm2103_vm3, %v2183_v33  ;;  %v2164_v19 = vmul.f32 %v4394_v35, %v4258_v62  ;;  %v2165_v53 = vmul.f32 %v4409_v44, %v4262_v28  ;;  %v2166_v50 = vmul.f32 %v2093_v57, %v4271_v23  ;;  %v2931_v55 = vpop.eup %2930  ;;  %2120 = vst.msk [vmem:[#allocation4 + $0x80] sm:$0xff] %vm2103_vm3, %v2095_v7  ;;  %v2075_v23 = vld [vmem:[%s4758_s2 + $0xa0] sm:$0xff]  ;;  %v2146_v36 = vld [vmem:[%s4759_s3 + $0x90] sm:$0xff] }
 0x2f1   : > { %v2096_v15 = vmul.f32 %v2929_v24, %v2072_v43  ;;  %2208 = vst.msk [vmem:[#allocation5 + $0x40] sm:$0xff] %vm2103_vm3, %v2184_v2  ;;  %v2186_v62 = vsub.f32 %v2138_v49, %v2162_v20  ;;  %v2187_v35 = vsub.f32 %v2139_v47, %v2163_v38  ;;  %v2167_v28 = vmul.f32 %v2094_v58, %v4281_v5  ;;  %v2076_v48 = vld [vmem:[%s4758_s2 + $0xa8] sm:$0xff]  ;;  %v2147_v14 = vld [vmem:[%s4759_s3 + $0x98] sm:$0xff]  ;;  %v2077_v42 = vld [vmem:[%s4758_s2 + $0xb0] sm:$0xff] }
 0x2f2   : > { %v2097_v44 = vmul.f32 %v2931_v55, %v2073_v6  ;;  %2209 = vst.msk [vmem:[#allocation5 + $0x48] sm:$0xff] %vm2103_vm3, %v2185_v1  ;;  %v2188_v57 = vsub.f32 %v2140_v45, %v2164_v19  ;;  %v2189_v29 = vsub.f32 %v2141_v18, %v2165_v53  ;;  %v2190_v37 = vsub.f32 %v2142_v13, %v2166_v50  ;;  %v2933_v0 = vpop.eup %2932  ;;  %v2148_v6 = vld [vmem:[%s4759_s3 + $0xa0] sm:$0xff]  ;;  %v2149_v16 = vld [vmem:[%s4759_s3 + $0xa8] sm:$0xff]  ;;  %v2150_v45 = vld [vmem:[%s4759_s3 + $0xb0] sm:$0xff] }
 0x2f3   : > { %2121 = vst.msk [vmem:[#allocation4 + $0x88] sm:$0xff] %vm2103_vm3, %v2096_v15  ;;  %2210 = vst.msk [vmem:[#allocation5 + $0x50] sm:$0xff] %vm2103_vm3, %v2186_v62  ;;  %v2191_v5 = vsub.f32 %v2143_v3, %v2167_v28  ;;  %v2168_v63 = vmul.f32 %v2095_v7, %v4302_v59  ;;  %v2169_v51 = vmul.f32 %v2096_v15, %v4317_v52 }
 0x2f4   : > { %2211 = vst.msk [vmem:[#allocation5 + $0x58] sm:$0xff] %vm2103_vm3, %v2187_v35  ;;  %v2935_v56 = vpop.eup %2934  ;;  %2122 = vst.msk [vmem:[#allocation4 + $0x90] sm:$0xff] %vm2103_vm3, %v2097_v44  ;;  %v2098_v9 = vmul.f32 %v2933_v0, %v2074_v60  ;;  %v2170_v52 = vmul.f32 %v2097_v44, %v4323_v25 }
 0x2f5   : > { %2212 = vst.msk [vmem:[#allocation5 + $0x60] sm:$0xff] %vm2103_vm3, %v2188_v57  ;;  %2213 = vst.msk [vmem:[#allocation5 + $0x68] sm:$0xff] %vm2103_vm3, %v2189_v29  ;;  %v2099_v59 = vmul.f32 %v2935_v56, %v2075_v23  ;;  %v2192_v58 = vsub.f32 %v2144_v27, %v2168_v63  ;;  %v2193_v43 = vsub.f32 %v2145_v10, %v2169_v51  ;;  %v2937_v22 = vpop.eup %2936 }
 0x2f6   : > { %2214 = vst.msk [vmem:[#allocation5 + $0x70] sm:$0xff] %vm2103_vm3, %v2190_v37  ;;  %2215 = vst.msk [vmem:[#allocation5 + $0x78] sm:$0xff] %vm2103_vm3, %v2191_v5  ;;  %v2194_v46 = vsub.f32 %v2146_v36, %v2170_v52  ;;  %v2171_v32 = vmul.f32 %v2098_v9, %v4338_v41  ;;  %v2100_v25 = vmul.f32 %v2937_v22, %v2076_v48  ;;  %v2078_v41 = vld [vmem:[%s4758_s2 + $0xb8] sm:$0xff] }
 0x2f7   : > { %2123 = vst.msk [vmem:[#allocation4 + $0x98] sm:$0xff] %vm2103_vm3, %v2098_v9  ;;  %2124 = vst.msk [vmem:[#allocation4 + $0xa0] sm:$0xff] %vm2103_vm3, %v2099_v59  ;;  %v2172_v34 = vmul.f32 %v2099_v59, %v4345_v40 }
 0x2f8   : > { %2216 = vst.msk [vmem:[#allocation5 + $0x80] sm:$0xff] %vm2103_vm3, %v2192_v58  ;;  %2217 = vst.msk [vmem:[#allocation5 + $0x88] sm:$0xff] %vm2103_vm3, %v2193_v43  ;;  %v2195_v33 = vsub.f32 %v2147_v14, %v2171_v32  ;;  %v2939_v49 = vpop.eup %2938  ;;  %v2173_v7 = vmul.f32 %v2100_v25, %v4356_v31  ;;  %v2151_v31 = vld [vmem:[%s4759_s3 + $0xb8] sm:$0xff] }
 0x2f9   : > { %2218 = vst.msk [vmem:[#allocation5 + $0x90] sm:$0xff] %vm2103_vm3, %v2194_v46  ;;  %2125 = vst.msk [vmem:[#allocation4 + $0xa8] sm:$0xff] %vm2103_vm3, %v2100_v25  ;;  %v2196_v47 = vsub.f32 %v2148_v6, %v2172_v34  ;;  %v2941_v2 = vpop.eup %2940  ;;  %v2101_v20 = vmul.f32 %v2939_v49, %v2077_v42 }
 0x2fa   : > { %2219 = vst.msk [vmem:[#allocation5 + $0x98] sm:$0xff] %vm2103_vm3, %v2195_v33  ;;  %v2102_v40 = vmul.f32 %v2941_v2, %v2078_v41  ;;  %v2197_v38 = vsub.f32 %v2149_v16, %v2173_v7 }
 0x2fb   : > { %2220 = vst.msk [vmem:[#allocation5 + $0xa0] sm:$0xff] %vm2103_vm3, %v2196_v47  ;;  %2126 = vst.msk [vmem:[#allocation4 + $0xb0] sm:$0xff] %vm2103_vm3, %v2101_v20  ;;  %v2174_v18 = vmul.f32 %v2101_v20, %v4377_v4 }
 0x2fc   : > { %2127 = vst.msk [vmem:[#allocation4 + $0xb8] sm:$0xff] %vm2103_vm3, %v2102_v40  ;;  %2221 = vst.msk [vmem:[#allocation5 + $0xa8] sm:$0xff] %vm2103_vm3, %v2197_v38  ;;  %v2175_v13 = vmul.f32 %v2102_v40, %v4386_v30 }
 0x2fd   : > { %v2198_v24 = vsub.f32 %v2150_v45, %v2174_v18 }
 0x2fe   : > { %v2199_v1 = vsub.f32 %v2151_v31, %v2175_v13 }
 0x2ff   : > { %2222 = vst.msk [vmem:[#allocation5 + $0xb0] sm:$0xff] %vm2103_vm3, %v2198_v24 }
 0x300   : > { %2223 = vst.msk [vmem:[#allocation5 + $0xb8] sm:$0xff] %vm2103_vm3, %v2199_v1 }
 0x301 PF: > { %p2793_p13 = scmp.ne.s32.totalorder %s2970_s16, 1 }
 0x303   : > { %2227 = sbr.rel (%p2793_p13) target bundleno = 998 (0x3e6), region = 52 }
 0x308   : > { %v2230_v4 = vld [vmem:[#allocation4 + $0x10] sm:$0xff]  ;;  %v2228_v19 = vld [vmem:[#allocation4] sm:$0xff]  ;;  %v2985_v53 = vmov 0   ;;  %v2231_v50 = vld [vmem:[#allocation4 + $0x18] sm:$0xff] }
 0x309   : > { %2943 = vset.pattern.permute.xlu1 %v2985_v53  ;;  %2942 = vset.pattern.permute.xlu0 %v2985_v53  ;;  %v2229_v3 = vld [vmem:[#allocation4 + $0x8] sm:$0xff]  ;;  %v2232_v55 = vld [vmem:[#allocation4 + $0x20] sm:$0xff]  ;;  %v2235_v15 = vld [vmem:[#allocation4 + $0x38] sm:$0xff] }
 0x30a   : > { %2264 = vperm.xlu1 %2943, %v2230_v4   ;;  %2254 = vperm.xlu0 %2942, %v2228_v19   ;;  %v2233_v30 = vld [vmem:[#allocation4 + $0x28] sm:$0xff]  ;;  %v2234_v60 = vld [vmem:[#allocation4 + $0x30] sm:$0xff]  ;;  %v2236_v35 = vld [vmem:[#allocation4 + $0x40] sm:$0xff] }
 0x30b   : > { %v2237_v62 = vld [vmem:[#allocation4 + $0x48] sm:$0xff]  ;;  %v2239_v28 = vld [vmem:[#allocation4 + $0x58] sm:$0xff]  ;;  %v2238_v44 = vld [vmem:[#allocation4 + $0x50] sm:$0xff] }
 0x30c   : > { %v2241_v23 = vld [vmem:[#allocation4 + $0x68] sm:$0xff]  ;;  %v2240_v57 = vld [vmem:[#allocation4 + $0x60] sm:$0xff]  ;;  %v2243_v29 = vld [vmem:[#allocation4 + $0x78] sm:$0xff] }
 0x30d   : > { %v2242_v37 = vld [vmem:[#allocation4 + $0x70] sm:$0xff]  ;;  %v2245_v27 = vld [vmem:[#allocation4 + $0x88] sm:$0xff]  ;;  %v2244_v10 = vld [vmem:[#allocation4 + $0x80] sm:$0xff] }
 0x30e   : > { %2269 = vperm.xlu1 %2943, %v2231_v50   ;;  %2259 = vperm.xlu0 %2942, %v2229_v3   ;;  %v2247_v0 = vld [vmem:[#allocation4 + $0x98] sm:$0xff]  ;;  %v2246_v5 = vld [vmem:[#allocation4 + $0x90] sm:$0xff]  ;;  %v2249_v63 = vld [vmem:[#allocation4 + $0xa8] sm:$0xff] }
 0x30f   : > { %v2248_v51 = vld [vmem:[#allocation4 + $0xa0] sm:$0xff]  ;;  %v2251_v36 = vld [vmem:[#allocation4 + $0xb8] sm:$0xff]  ;;  %v2250_v56 = vld [vmem:[#allocation4 + $0xb0] sm:$0xff] }
 0x310   : > { %v2421_v9 = vld [vmem:[#allocation5 + $0x8] sm:$0xff]  ;;  %v2420_v48 = vld [vmem:[#allocation5] sm:$0xff]  ;;  %v2423_v52 = vld [vmem:[#allocation5 + $0x18] sm:$0xff] }
 0x311   : > { %v2422_v59 = vld [vmem:[#allocation5 + $0x10] sm:$0xff]  ;;  %v2425_v58 = vld [vmem:[#allocation5 + $0x28] sm:$0xff]  ;;  %v2424_v43 = vld [vmem:[#allocation5 + $0x20] sm:$0xff] }
 0x312   : > { %2279 = vperm.xlu1 %2943, %v2233_v30   ;;  %2274 = vperm.xlu0 %2942, %v2232_v55   ;;  %v2427_v14 = vld [vmem:[#allocation5 + $0x38] sm:$0xff]  ;;  %v2426_v22 = vld [vmem:[#allocation5 + $0x30] sm:$0xff]  ;;  %v2429_v46 = vld [vmem:[#allocation5 + $0x48] sm:$0xff] }
 0x313   : > { %v2428_v32 = vld [vmem:[#allocation5 + $0x40] sm:$0xff]  ;;  %v2431_v6 = vld [vmem:[#allocation5 + $0x58] sm:$0xff]  ;;  %v2430_v25 = vld [vmem:[#allocation5 + $0x50] sm:$0xff] }
 0x314   : > { %v2433_v42 = vld [vmem:[#allocation5 + $0x68] sm:$0xff]  ;;  %v2432_v34 = vld [vmem:[#allocation5 + $0x60] sm:$0xff]  ;;  %v2435_v41 = vld [vmem:[#allocation5 + $0x78] sm:$0xff] }
 0x315   : > { %v2434_v33 = vld [vmem:[#allocation5 + $0x70] sm:$0xff]  ;;  %v2437_v16 = vld [vmem:[#allocation5 + $0x88] sm:$0xff]  ;;  %v2436_v49 = vld [vmem:[#allocation5 + $0x80] sm:$0xff] }
 0x316   : > { %2289 = vperm.xlu1 %2943, %v2235_v15   ;;  %2284 = vperm.xlu0 %2942, %v2234_v60   ;;  %v2439_v47 = vld [vmem:[#allocation5 + $0x98] sm:$0xff]  ;;  %v2438_v7 = vld [vmem:[#allocation5 + $0x90] sm:$0xff]  ;;  %v2441_v2 = vld [vmem:[#allocation5 + $0xa8] sm:$0xff] }
 0x317   : > { %v2440_v20 = vld [vmem:[#allocation5 + $0xa0] sm:$0xff]  ;;  %v2443_v40 = vld [vmem:[#allocation5 + $0xb8] sm:$0xff]  ;;  %v2442_v38 = vld [vmem:[#allocation5 + $0xb0] sm:$0xff] }
 0x31a   : > { %2299 = vperm.xlu1 %2943, %v2237_v62   ;;  %2294 = vperm.xlu0 %2942, %v2236_v35  }
 0x31e   : > { %2309 = vperm.xlu1 %2943, %v2239_v28   ;;  %2304 = vperm.xlu0 %2942, %v2238_v44  }
 0x322   : > { %2319 = vperm.xlu1 %2943, %v2241_v23   ;;  %2314 = vperm.xlu0 %2942, %v2240_v57  }
 0x326   : > { %2329 = vperm.xlu1 %2943, %v2243_v29   ;;  %2324 = vperm.xlu0 %2942, %v2242_v37  }
 0x32a   : > { %2339 = vperm.xlu1 %2943, %v2245_v27   ;;  %2334 = vperm.xlu0 %2942, %v2244_v10  }
 0x32e   : > { %2349 = vperm.xlu1 %2943, %v2247_v0   ;;  %2344 = vperm.xlu0 %2942, %v2246_v5  }
 0x332   : > { %2359 = vperm.xlu1 %2943, %v2249_v63   ;;  %2354 = vperm.xlu0 %2942, %v2248_v51  }
 0x336   : > { %2369 = vperm.xlu1 %2943, %v2251_v36   ;;  %2364 = vperm.xlu0 %2942, %v2250_v56  }
 0x33a   : > { %2451 = vperm.xlu1 %2943, %v2421_v9   ;;  %2446 = vperm.xlu0 %2942, %v2420_v48  }
 0x33e   : > { %2461 = vperm.xlu1 %2943, %v2423_v52   ;;  %2456 = vperm.xlu0 %2942, %v2422_v59  }
 0x342   : > { %2471 = vperm.xlu1 %2943, %v2425_v58   ;;  %2466 = vperm.xlu0 %2942, %v2424_v43  }
 0x346   : > { %2481 = vperm.xlu1 %2943, %v2427_v14   ;;  %2476 = vperm.xlu0 %2942, %v2426_v22  }
 0x34a   : > { %2491 = vperm.xlu1 %2943, %v2429_v46   ;;  %2486 = vperm.xlu0 %2942, %v2428_v32   ;;  %v4849_v46 = vld [vmem:[#allocation24_spill] sm:$0xff]  ;;  %v4850_v32 = vld [vmem:[#allocation19_spill] sm:$0xff] }
 0x34e   : > { %2501 = vperm.xlu1 %2943, %v2431_v6   ;;  %2496 = vperm.xlu0 %2942, %v2430_v25  }
 0x352   : > { %2511 = vperm.xlu1 %2943, %v2433_v42   ;;  %2506 = vperm.xlu0 %2942, %v2432_v34  }
 0x356   : > { %2521 = vperm.xlu1 %2943, %v2435_v41   ;;  %2516 = vperm.xlu0 %2942, %v2434_v33  }
 0x35a   : > { %2531 = vperm.xlu1 %2943, %v2437_v16   ;;  %2526 = vperm.xlu0 %2942, %v2436_v49   ;;  %v4852_v49 = vld [vmem:[#allocation30_spill] sm:$0xff] }
 0x35e   : > { %2541 = vperm.xlu1 %2943, %v2439_v47   ;;  %2536 = vperm.xlu0 %2942, %v2438_v7   ;;  %v4853_v7 = vld [vmem:[#allocation32_spill] sm:$0xff] }
 0x362   : > { %2551 = vperm.xlu1 %2943, %v2441_v2   ;;  %2546 = vperm.xlu0 %2942, %v2440_v20   ;;  %v4854_v20 = vld [vmem:[#allocation26_spill] sm:$0xff] }
 0x366   : > { %2561 = vperm.xlu1 %2943, %v2443_v40   ;;  %2556 = vperm.xlu0 %2942, %v2442_v38   ;;  %v4855_v38 = vld [vmem:[#allocation28_spill] sm:$0xff] }
 0x385   : > { %v2265_v45 = vpop.permute.xlu1 %2264  ;;  %v2255_v18 = vpop.permute.xlu0 %2254 }
 0x386   : > { %v2372_v10 = vmul.f32 %v2255_v18, %v3863_v61  ;;  %v2373_v0 = vmul.f32 %v2255_v18, %v3869_v11  ;;  %v2376_v59 = vmul.f32 %v2265_v45, %v3887_v12  ;;  %v2377_v58 = vmul.f32 %v2265_v45, %v3893_v17 }
 0x389   : > { %v2270_v31 = vpop.permute.xlu1 %2269  ;;  %v2260_v13 = vpop.permute.xlu0 %2259 }
 0x38a   : > { %v2374_v5 = vmul.f32 %v2260_v13, %v3875_v54  ;;  %v2375_v63 = vmul.f32 %v2260_v13, %v3881_v8  ;;  %v2378_v61 = vmul.f32 %v2270_v31, %v3899_v21  ;;  %v2379_v11 = vmul.f32 %v2270_v31, %v3905_v26  ;;  %v4851_v26 = vld [vmem:[#allocation21_spill] sm:$0xff] }
 0x38d   : > { %v2280_v24 = vpop.permute.xlu1 %2279  ;;  %v2275_v1 = vpop.permute.xlu0 %2274 }
 0x38e   : > { %v2382_v17 = vmul.f32 %v2280_v24, %v3923_v39  ;;  %v2383_v21 = vmul.f32 %v2280_v24, %v4849_v46  ;;  %v2380_v6 = vmul.f32 %v2275_v1, %v4850_v32  ;;  %v2381_v25 = vmul.f32 %v2275_v1, %v4851_v26 }
 0x391   : > { %v2290_v4 = vpop.permute.xlu1 %2289  ;;  %v2285_v19 = vpop.permute.xlu0 %2284 }
 0x392   : > { %v2386_v47 = vmul.f32 %v2290_v4, %v4852_v49  ;;  %v2387_v2 = vmul.f32 %v2290_v4, %v4853_v7  ;;  %v2384_v40 = vmul.f32 %v2285_v19, %v4854_v20  ;;  %v2385_v45 = vmul.f32 %v2285_v19, %v4855_v38  ;;  %v4858_v19 = vld [vmem:[#allocation34_spill] sm:$0xff] }
 0x395   : > { %v4581_v53 = vpop.permute.xlu1 %2299  ;;  %v4583_v50 = vpop.permute.xlu0 %2294 }
 0x399   : > { %v4585_v3 = vpop.permute.xlu1 %2309  ;;  %v4587_v30 = vpop.permute.xlu0 %2304 }
 0x39d   : > { %v4589_v55 = vpop.permute.xlu1 %2319  ;;  %v4591_v15 = vpop.permute.xlu0 %2314 }
 0x3a1   : > { %v4593_v60 = vpop.permute.xlu1 %2329  ;;  %v4595_v62 = vpop.permute.xlu0 %2324 }
 0x3a5   : > { %v4597_v35 = vpop.permute.xlu1 %2339  ;;  %v4599_v28 = vpop.permute.xlu0 %2334 }
 0x3a9   : > { %v4601_v44 = vpop.permute.xlu1 %2349  ;;  %v4603_v23 = vpop.permute.xlu0 %2344 }
 0x3ad   : > { %v4605_v57 = vpop.permute.xlu1 %2359  ;;  %v4607_v29 = vpop.permute.xlu0 %2354 }
 0x3b1   : > { %v4609_v37 = vpop.permute.xlu1 %2369  ;;  %v4611_v27 = vpop.permute.xlu0 %2364 }
 0x3b5   : > { %v2452_v51 = vpop.permute.xlu1 %2451  ;;  %v2447_v36 = vpop.permute.xlu0 %2446 }
 0x3b6   : > { %v2566_v56 = vadd.f32 %v2452_v51, %v2374_v5  ;;  %v2567_v9 = vadd.f32 %v2452_v51, %v2375_v63  ;;  %v2564_v48 = vadd.f32 %v2447_v36, %v2372_v10  ;;  %v2565_v52 = vadd.f32 %v2447_v36, %v2373_v0  ;;  %v4856_v0 = vld [vmem:[#allocation38_spill] sm:$0xff]  ;;  %v4857_v5 = vld [vmem:[#allocation40_spill] sm:$0xff] }
 0x3b7   : > { %v2390_v4 = vmul.f32 %v4581_v53, %v4856_v0  ;;  %v2391_v63 = vmul.f32 %v4581_v53, %v4857_v5  ;;  %v2388_v51 = vmul.f32 %v4583_v50, %v4858_v19  ;;  %v4859_v36 = vld [vmem:[#allocation36_spill] sm:$0xff] }
 0x3b8   : > { %2614 = vst [vmem:[%s3062_s5 + $0x10] sm:$0xff] %v2566_v56  ;;  %2615 = vst [vmem:[%s3062_s5 + $0x18] sm:$0xff] %v2567_v9  ;;  %v2389_v56 = vmul.f32 %v4583_v50, %v4859_v36  ;;  %v4862_v50 = vld [vmem:[#allocation42_spill] sm:$0xff] }
 0x3b9   : > { %2612 = vst [vmem:[%s3062_s5] sm:$0xff] %v2564_v48  ;;  %2613 = vst [vmem:[%s3062_s5 + $0x8] sm:$0xff] %v2565_v52  ;;  %v2462_v54 = vpop.permute.xlu1 %2461  ;;  %v2457_v8 = vpop.permute.xlu0 %2456  ;;  %v4875_v36 = vld [vmem:[#allocation22_spill] sm:$0xff] }
 0x3ba   : > { %v2570_v43 = vadd.f32 %v2462_v54, %v2378_v61  ;;  %v2571_v14 = vadd.f32 %v2462_v54, %v2379_v11  ;;  %v2568_v22 = vadd.f32 %v2457_v8, %v2376_v59  ;;  %v2569_v12 = vadd.f32 %v2457_v8, %v2377_v58  ;;  %v4860_v61 = vld [vmem:[#allocation9_spill] sm:$0xff]  ;;  %v4861_v54 = vld [vmem:[#allocation7_spill] sm:$0xff] }
 0x3bb   : > { %v2394_v11 = vmul.f32 %v4585_v3, %v4860_v61  ;;  %v2395_v8 = vmul.f32 %v4585_v3, %v4861_v54 }
 0x3bc   : > { %2618 = vst [vmem:[%s3062_s5 + $0x30] sm:$0xff] %v2570_v43  ;;  %2619 = vst [vmem:[%s3062_s5 + $0x38] sm:$0xff] %v2571_v14  ;;  %v2392_v43 = vmul.f32 %v4587_v30, %v4862_v50  ;;  %v4863_v14 = vld [vmem:[#allocation6_spill] sm:$0xff]  ;;  %v4879_v50 = vld [vmem:[#allocation29_spill] sm:$0xff] }
 0x3bd   : > { %2616 = vst [vmem:[%s3062_s5 + $0x20] sm:$0xff] %v2568_v22  ;;  %2617 = vst [vmem:[%s3062_s5 + $0x28] sm:$0xff] %v2569_v12  ;;  %v2472_v42 = vpop.permute.xlu1 %2471  ;;  %v2467_v34 = vpop.permute.xlu0 %2466  ;;  %v2393_v22 = vmul.f32 %v4587_v30, %v4863_v14  ;;  %v4866_v30 = vld [vmem:[#allocation11_spill] sm:$0xff] }
 0x3be   : > { %v2574_v41 = vadd.f32 %v2472_v42, %v2382_v17  ;;  %v2575_v33 = vadd.f32 %v2472_v42, %v2383_v21  ;;  %v2572_v16 = vadd.f32 %v2467_v34, %v2380_v6  ;;  %v2573_v39 = vadd.f32 %v2467_v34, %v2381_v25  ;;  %v4864_v6 = vld [vmem:[#allocation13_spill] sm:$0xff]  ;;  %v4865_v25 = vld [vmem:[#allocation14_spill] sm:$0xff] }
 0x3bf   : > { %v2398_v26 = vmul.f32 %v4589_v55, %v4864_v6  ;;  %v2399_v42 = vmul.f32 %v4589_v55, %v4865_v25  ;;  %v2396_v34 = vmul.f32 %v4591_v15, %v4866_v30  ;;  %v4883_v25 = vld [vmem:[#allocation37_spill] sm:$0xff] }
 0x3c0   : > { %2622 = vst [vmem:[%s3062_s5 + $0x50] sm:$0xff] %v2574_v41  ;;  %2623 = vst [vmem:[%s3062_s5 + $0x58] sm:$0xff] %v2575_v33  ;;  %v4867_v41 = vld [vmem:[#allocation12_spill] sm:$0xff] }
 0x3c1   : > { %2620 = vst [vmem:[%s3062_s5 + $0x40] sm:$0xff] %v2572_v16  ;;  %2621 = vst [vmem:[%s3062_s5 + $0x48] sm:$0xff] %v2573_v39  ;;  %v2482_v18 = vpop.permute.xlu1 %2481  ;;  %v2477_v31 = vpop.permute.xlu0 %2476  ;;  %v2397_v33 = vmul.f32 %v4591_v15, %v4867_v41  ;;  %v4870_v15 = vld [vmem:[#allocation15_spill] sm:$0xff] }
 0x3c2   : > { %v2578_v13 = vadd.f32 %v2482_v18, %v2386_v47  ;;  %v2579_v24 = vadd.f32 %v2482_v18, %v2387_v2  ;;  %v2576_v1 = vadd.f32 %v2477_v31, %v2384_v40  ;;  %v2577_v10 = vadd.f32 %v2477_v31, %v2385_v45  ;;  %v4868_v2 = vld [vmem:[#allocation17_spill] sm:$0xff]  ;;  %v4869_v40 = vld [vmem:[#allocation18_spill] sm:$0xff]  ;;  %v4871_v18 = vld [vmem:[#allocation16_spill] sm:$0xff] }
 0x3c3   : > { %v2402_v20 = vmul.f32 %v4593_v60, %v4868_v2  ;;  %v2403_v38 = vmul.f32 %v4593_v60, %v4869_v40  ;;  %v2400_v45 = vmul.f32 %v4595_v62, %v4870_v15  ;;  %v2401_v31 = vmul.f32 %v4595_v62, %v4871_v18  ;;  %v4874_v62 = vld [vmem:[#allocation20_spill] sm:$0xff] }
 0x3c4   : > { %2626 = vst [vmem:[%s3062_s5 + $0x70] sm:$0xff] %v2578_v13  ;;  %2627 = vst [vmem:[%s3062_s5 + $0x78] sm:$0xff] %v2579_v24  ;;  %v4887_v2 = vld [vmem:[#allocation44_spill] sm:$0xff] }
 0x3c5   : > { %2624 = vst [vmem:[%s3062_s5 + $0x60] sm:$0xff] %v2576_v1  ;;  %2625 = vst [vmem:[%s3062_s5 + $0x68] sm:$0xff] %v2577_v10  ;;  %v2492_v9 = vpop.permute.xlu1 %2491  ;;  %v2487_v48 = vpop.permute.xlu0 %2486 }
 0x3c6   : > { %v2582_v52 = vadd.f32 %v2492_v9, %v2390_v4  ;;  %v2583_v59 = vadd.f32 %v2492_v9, %v2391_v63  ;;  %v2580_v58 = vadd.f32 %v2487_v48, %v2388_v51  ;;  %v2581_v53 = vadd.f32 %v2487_v48, %v2389_v56  ;;  %v4872_v4 = vld [vmem:[#allocation23_spill] sm:$0xff]  ;;  %v4873_v63 = vld [vmem:[#allocation25_spill] sm:$0xff] }
 0x3c7   : > { %v2406_v5 = vmul.f32 %v4597_v35, %v4872_v4  ;;  %v2407_v19 = vmul.f32 %v4597_v35, %v4873_v63  ;;  %v2404_v51 = vmul.f32 %v4599_v28, %v4874_v62  ;;  %v2405_v56 = vmul.f32 %v4599_v28, %v4875_v36  ;;  %v4878_v28 = vld [vmem:[#allocation27_spill] sm:$0xff] }
 0x3c8   : > { %2630 = vst [vmem:[%s3062_s5 + $0x90] sm:$0xff] %v2582_v52  ;;  %2631 = vst [vmem:[%s3062_s5 + $0x98] sm:$0xff] %v2583_v59 }
 0x3c9   : > { %2628 = vst [vmem:[%s3062_s5 + $0x80] sm:$0xff] %v2580_v58  ;;  %2629 = vst [vmem:[%s3062_s5 + $0x88] sm:$0xff] %v2581_v53  ;;  %v2502_v12 = vpop.permute.xlu1 %2501  ;;  %v2497_v17 = vpop.permute.xlu0 %2496  ;;  %v4876_v53 = vld [vmem:[#allocation31_spill] sm:$0xff] }
 0x3ca   : > { %v2586_v46 = vadd.f32 %v2502_v12, %v2394_v11  ;;  %v2587_v21 = vadd.f32 %v2502_v12, %v2395_v8  ;;  %v2584_v32 = vadd.f32 %v2497_v17, %v2392_v43  ;;  %v2585_v3 = vadd.f32 %v2497_v17, %v2393_v22  ;;  %v4877_v11 = vld [vmem:[#allocation33_spill] sm:$0xff] }
 0x3cb   : > { %v2410_v61 = vmul.f32 %v4601_v44, %v4876_v53  ;;  %v2411_v54 = vmul.f32 %v4601_v44, %v4877_v11  ;;  %v2408_v8 = vmul.f32 %v4603_v23, %v4878_v28  ;;  %v2409_v43 = vmul.f32 %v4603_v23, %v4879_v50  ;;  %v4882_v23 = vld [vmem:[#allocation35_spill] sm:$0xff] }
 0x3cc   : > { %2634 = vst [vmem:[%s3062_s5 + $0xb0] sm:$0xff] %v2586_v46  ;;  %2635 = vst [vmem:[%s3062_s5 + $0xb8] sm:$0xff] %v2587_v21  ;;  %v4880_v21 = vld [vmem:[#allocation39_spill] sm:$0xff] }
 0x3cd   : > { %2632 = vst [vmem:[%s3062_s5 + $0xa0] sm:$0xff] %v2584_v32  ;;  %2633 = vst [vmem:[%s3062_s5 + $0xa8] sm:$0xff] %v2585_v3  ;;  %v2512_v16 = vpop.permute.xlu1 %2511  ;;  %v2507_v39 = vpop.permute.xlu0 %2506  ;;  %v2414_v32 = vmul.f32 %v4605_v57, %v4880_v21  ;;  %v4881_v3 = vld [vmem:[#allocation41_spill] sm:$0xff] }
 0x3ce   : > { %v2590_v49 = vadd.f32 %v2512_v16, %v2398_v26  ;;  %v2591_v47 = vadd.f32 %v2512_v16, %v2399_v42  ;;  %v2588_v7 = vadd.f32 %v2507_v39, %v2396_v34  ;;  %v2589_v55 = vadd.f32 %v2507_v39, %v2397_v33  ;;  %v4884_v39 = vld [vmem:[#allocation10_spill] sm:$0xff] }
 0x3cf   : > { %v2415_v6 = vmul.f32 %v4605_v57, %v4881_v3  ;;  %v2412_v26 = vmul.f32 %v4607_v29, %v4882_v23  ;;  %v2413_v42 = vmul.f32 %v4607_v29, %v4883_v25 }
 0x3d0   : > { %2638 = vst [vmem:[%s3062_s5 + $0xd0] sm:$0xff] %v2590_v49  ;;  %2639 = vst [vmem:[%s3062_s5 + $0xd8] sm:$0xff] %v2591_v47  ;;  %v2418_v49 = vmul.f32 %v4609_v37, %v4884_v39  ;;  %v4885_v47 = vld [vmem:[#allocation8_spill] sm:$0xff] }
 0x3d1   : > { %2636 = vst [vmem:[%s3062_s5 + $0xc0] sm:$0xff] %v2588_v7  ;;  %2637 = vst [vmem:[%s3062_s5 + $0xc8] sm:$0xff] %v2589_v55  ;;  %v2522_v13 = vpop.permute.xlu1 %2521  ;;  %v2517_v24 = vpop.permute.xlu0 %2516  ;;  %v2419_v29 = vmul.f32 %v4609_v37, %v4885_v47  ;;  %v4886_v7 = vld [vmem:[#allocation43_spill] sm:$0xff] }
 0x3d2   : > { %v2594_v1 = vadd.f32 %v2522_v13, %v2402_v20  ;;  %v2595_v10 = vadd.f32 %v2522_v13, %v2403_v38  ;;  %v2592_v0 = vadd.f32 %v2517_v24, %v2400_v45  ;;  %v2593_v60 = vadd.f32 %v2517_v24, %v2401_v31 }
 0x3d3   : > { %v2416_v55 = vmul.f32 %v4611_v27, %v4886_v7  ;;  %v2417_v20 = vmul.f32 %v4611_v27, %v4887_v2 }
 0x3d4   : > { %2642 = vst [vmem:[%s3062_s5 + $0xf0] sm:$0xff] %v2594_v1  ;;  %2643 = vst [vmem:[%s3062_s5 + $0xf8] sm:$0xff] %v2595_v10 }
 0x3d5   : > { %2640 = vst [vmem:[%s3062_s5 + $0xe0] sm:$0xff] %v2592_v0  ;;  %2641 = vst [vmem:[%s3062_s5 + $0xe8] sm:$0xff] %v2593_v60  ;;  %v2532_v9 = vpop.permute.xlu1 %2531  ;;  %v2527_v48 = vpop.permute.xlu0 %2526 }
 0x3d6   : > { %v2598_v52 = vadd.f32 %v2532_v9, %v2406_v5  ;;  %v2599_v59 = vadd.f32 %v2532_v9, %v2407_v19  ;;  %v2596_v58 = vadd.f32 %v2527_v48, %v2404_v51  ;;  %v2597_v35 = vadd.f32 %v2527_v48, %v2405_v56 }
 0x3d8   : > { %2646 = vst [vmem:[%s3062_s5 + $0x110] sm:$0xff] %v2598_v52  ;;  %2647 = vst [vmem:[%s3062_s5 + $0x118] sm:$0xff] %v2599_v59 }
 0x3d9   : > { %2644 = vst [vmem:[%s3062_s5 + $0x100] sm:$0xff] %v2596_v58  ;;  %2645 = vst [vmem:[%s3062_s5 + $0x108] sm:$0xff] %v2597_v35  ;;  %v2542_v14 = vpop.permute.xlu1 %2541  ;;  %v2537_v22 = vpop.permute.xlu0 %2536 }
 0x3da   : > { %v2602_v12 = vadd.f32 %v2542_v14, %v2410_v61  ;;  %v2603_v17 = vadd.f32 %v2542_v14, %v2411_v54  ;;  %v2600_v46 = vadd.f32 %v2537_v22, %v2408_v8  ;;  %v2601_v44 = vadd.f32 %v2537_v22, %v2409_v43 }
 0x3dc   : > { %2650 = vst [vmem:[%s3062_s5 + $0x130] sm:$0xff] %v2602_v12  ;;  %2651 = vst [vmem:[%s3062_s5 + $0x138] sm:$0xff] %v2603_v17 }
 0x3dd   : > { %2648 = vst [vmem:[%s3062_s5 + $0x120] sm:$0xff] %v2600_v46  ;;  %2649 = vst [vmem:[%s3062_s5 + $0x128] sm:$0xff] %v2601_v44  ;;  %v2552_v30 = vpop.permute.xlu1 %2551  ;;  %v2547_v34 = vpop.permute.xlu0 %2546 }
 0x3de   : > { %v2606_v41 = vadd.f32 %v2552_v30, %v2414_v32  ;;  %v2607_v33 = vadd.f32 %v2552_v30, %v2415_v6  ;;  %v2604_v16 = vadd.f32 %v2547_v34, %v2412_v26  ;;  %v2605_v57 = vadd.f32 %v2547_v34, %v2413_v42 }
 0x3e0   : > { %2654 = vst [vmem:[%s3062_s5 + $0x150] sm:$0xff] %v2606_v41  ;;  %2655 = vst [vmem:[%s3062_s5 + $0x158] sm:$0xff] %v2607_v33 }
 0x3e1   : > { %2652 = vst [vmem:[%s3062_s5 + $0x140] sm:$0xff] %v2604_v16  ;;  %2653 = vst [vmem:[%s3062_s5 + $0x148] sm:$0xff] %v2605_v57  ;;  %v2562_v40 = vpop.permute.xlu1 %2561  ;;  %v2557_v38 = vpop.permute.xlu0 %2556 }
 0x3e2   : > { %v2610_v15 = vadd.f32 %v2562_v40, %v2418_v49  ;;  %v2611_v45 = vadd.f32 %v2562_v40, %v2419_v29  ;;  %v2608_v18 = vadd.f32 %v2557_v38, %v2416_v55  ;;  %v2609_v31 = vadd.f32 %v2557_v38, %v2417_v20 }
 0x3e4   : > { %2658 = vst [vmem:[%s3062_s5 + $0x170] sm:$0xff] %v2610_v15  ;;  %2659 = vst [vmem:[%s3062_s5 + $0x178] sm:$0xff] %v2611_v45 }
 0x3e5   : > { %2656 = vst [vmem:[%s3062_s5 + $0x160] sm:$0xff] %v2608_v18  ;;  %2657 = vst [vmem:[%s3062_s5 + $0x168] sm:$0xff] %v2609_v31 }
 0x3e6 PF: > { %s14_s19 = sadd.s32 1, %s2982_s19   ;;  %s4888_s15 = smov %s2974_s17 }
 0x3e7   : > { %p11_p0 = scmp.ge.s32.totalorder %s14_s19, 6   ;;  %s4889_s16 = smov %s2978_s18 }
 0x3e8   : > { %s4890_s17 = smov %s4893_s20  ;;  %s4891_s18 = smov %s4897_s21 }
 0x3e9   :  { %13 = sbr.rel (!%p11_p0) target bundleno = 3 (0x3), region = 82 }

</bundles_post_ra>
